<compile_context>
chip_gen: v7x
topology: tpu7x:2x2x1
jax: 0.10.0
libtpu: 0.0.40
codegen_flags: <defaults>
</compile_context>

<pallas_src>
from functools import partial
from math import sqrt

import jax
import jax.numpy as jnp
from jax.experimental import pallas as pl
from jax.experimental.pallas import tpu as pltpu

C_IN = 64
C_OUT = 64
K = 3


def _round_up(x, m):
    return (x + m - 1) // m * m


def _cdiv(a, b):
    return -(-a // b)


def _pick_tile_h(H, W, vmem_budget_bytes=32 * 1024 * 1024):
    """Largest multiple-of-8 strip height whose working set fits the budget."""
    wp = _round_up(W + 2, 8)
    per_row = (2 * wp * 128 * 4      # double-buffered input strip (64 ch -> 128 lanes)
               + 2 * wp * 256 * 4    # 192-lane acc scratch + matmul temp (-> 256 lanes)
               + 2 * W * 128 * 4     # double-buffered output strip
               + W * 128 * 4)        # dx-reduce / ReLU temporary
    th_max = max(8, min(256, (vmem_budget_bytes // per_row) // 8 * 8))
    if th_max >= H:
        return _round_up(H, 8)
    ns = _cdiv(H, th_max)
    return _round_up(_cdiv(H, ns), 8)


def _conv_relu_kernel(xc_ref, xn_ref, w_ref, o_ref, acc_ref, *, compute_dtype):
    # xc_ref : (1, th, wp, C_IN)    padded-input strip (padded rows i*th .. i*th+th)
    # xn_ref : (1, 8,  wp, C_IN)    next 8 padded rows; only first 2 (halo) used
    # w_ref  : (3, C_IN, 3*C_OUT)   w_ref[dy][i, dx*C_OUT + o] = weight[o, i, dy, dx]
    # o_ref  : (1, th, W, C_OUT)
    # acc_ref: VMEM (th, wp, 3*C_OUT) float32 accumulator in the "192-lane" frame:
    #          acc[r, w', dx*C_OUT + o] = sum_dy x_pad[i*th + r + dy, w'] . w[o,:,dy,dx]
    th, wp, c = xc_ref.shape[1], xc_ref.shape[2], xc_ref.shape[3]
    w_out, cout = o_ref.shape[2], o_ref.shape[3]

    lhs_c = xc_ref[0].astype(compute_dtype).reshape(th * wp, c)          # (th*wp, 64)
    lhs_h = xn_ref[0][0:2].astype(compute_dtype).reshape(2 * wp, c)      # (2*wp, 64)

    # --- accumulate over dy in the 192-lane frame (row shifts only) -------------
    for dy in range(K):
        w_dy = w_ref[dy].astype(compute_dtype)                           # (64, 192)
        yc = jnp.dot(lhs_c, w_dy,
                     preferred_element_type=jnp.float32).reshape(th, wp, K * cout)
        if dy == 0:
            # dy == 0 contributions come from exactly the th strip rows and
            # cover every output row -> initializes the accumulator.
            acc_ref[...] = yc
        else:
            # strip rows [dy, th) feed output rows [0, th - dy)
            acc_ref[0:th - dy] = acc_ref[0:th - dy] + yc[dy:th]
            # halo rows feed the last `dy` output rows of this strip
            yh = jnp.dot(lhs_h, w_dy,
                         preferred_element_type=jnp.float32).reshape(2, wp, K * cout)
            acc_ref[th - dy:th] = acc_ref[th - dy:th] + yh[0:dy]

    # --- single dx tap reduction + ReLU -----------------------------------------
    y = acc_ref[...]                                                     # (th, wp, 192)
    out = (y[:, 0:w_out, 0:cout]
           + y[:, 1:w_out + 1, cout:2 * cout]
           + y[:, 2:w_out + 2, 2 * cout:3 * cout])                       # (th, W, 64)
    o_ref[...] = (jnp.maximum(out, 0.0)
                  .reshape(1, th, w_out, cout).astype(o_ref.dtype))


def conv_relu_block_nhwc(x, weight, *, tile_h=None, compute_dtype=jnp.float32,
                         vmem_limit_bytes=48 * 1024 * 1024):
    """x: (N, H, W, 64) NHWC float; weight: (64, 64, 3, 3) OIHW.  Returns NHWC."""
    N, H, W, C = x.shape
    assert C == C_IN
    th = int(tile_h) if tile_h is not None else _pick_tile_h(H, W)
    assert th % 8 == 0 and th >= 8
    ns = _cdiv(H, th)
    h_t = ns * th                      # output rows computed (extra rows sliced off)
    wp = _round_up(W + 2, 8)           # padded row length (1 left col + >=1 right cols)
    h_rows = h_t + th                  # padded rows; both H blockings divide this

    # zero-pad: 1 top row, rest-bottom rows, 1 left col, rest-right cols (all zeros).
    xp = jnp.pad(x, ((0, 0), (1, h_rows - H - 1), (1, wp - W - 1), (0, 0)))

    # OIHW -> (dy, C_in, dx*C_out)
    w_f = jnp.transpose(weight, (2, 1, 3, 0)).reshape(K, C_IN, K * C_OUT)

    out = pl.pallas_call(
        partial(_conv_relu_kernel, compute_dtype=compute_dtype),
        out_shape=jax.ShapeDtypeStruct((N, h_t, W, C_OUT), x.dtype),
        grid_spec=pltpu.PrefetchScalarGridSpec(
            num_scalar_prefetch=0,
            grid=(N, ns),
            in_specs=[
                # current strip: th padded rows starting at i*th
                pl.BlockSpec((1, th, wp, C_IN), lambda n, i: (n, i, 0, 0)),
                # halo view: 8 padded rows starting at (i+1)*th (first 2 used)
                pl.BlockSpec((1, 8, wp, C_IN),
                             lambda n, i: (n, (i + 1) * (th // 8), 0, 0)),
                # fused weights, resident across the whole grid
                pl.BlockSpec((K, C_IN, K * C_OUT), lambda n, i: (0, 0, 0)),
            ],
            out_specs=pl.BlockSpec((1, th, W, C_OUT), lambda n, i: (n, i, 0, 0)),
            scratch_shapes=[pltpu.VMEM((th, wp, K * C_OUT), jnp.float32)],
        ),
        compiler_params=pltpu.CompilerParams(
            dimension_semantics=("parallel", "parallel"),
            vmem_limit_bytes=vmem_limit_bytes,
        ),
    )(xp, xp, w_f)
    return out[:, :H]


def conv_relu_block(x_nchw, weight, *, tile_h=None, compute_dtype=jnp.float32):
    """PyTorch-parity wrapper: NCHW in / NCHW out.

    For a full VDSR stack, call conv_relu_block_nhwc directly and convert
    NCHW<->NHWC once at model entry/exit instead of per layer.
    """
    x = jnp.transpose(x_nchw, (0, 2, 3, 1))
    out = conv_relu_block_nhwc(x, weight, tile_h=tile_h, compute_dtype=compute_dtype)
    return jnp.transpose(out, (0, 3, 1, 2))


if __name__ == "__main__":
    key = jax.random.PRNGKey(0)
    kx, kw, kx2 = jax.random.split(key, 3)

    # batch=2, channels=64 (fixed by the module), spatial 16x16
    x = jax.random.normal(kx, (2, C_IN, 16, 16), dtype=jnp.float32)
    # Deterministic VDSR-style init: N(0, sqrt(2 / (k*k*C_out))), OIHW layout.
    std = sqrt(2.0 / (K * K * C_OUT))
    weight = std * jax.random.normal(kw, (C_OUT, C_IN, K, K), dtype=jnp.float32)

    def ref_fn(xr, wr):
        r = jax.lax.conv_general_dilated(
            xr, wr, window_strides=(1, 1), padding=((1, 1), (1, 1)),
            dimension_numbers=("NCHW", "OIHW", "NCHW"))
        return jnp.maximum(r, 0.0)

    out = jax.block_until_ready(conv_relu_block(x, weight))
    ref = ref_fn(x, weight)
    assert out.shape == ref.shape == (2, C_OUT, 16, 16)
    assert jnp.allclose(out, ref, atol=1e-3, rtol=1e-3), \
        float(jnp.max(jnp.abs(out - ref)))

    # Exercise the multi-strip halo path and ragged H / non-multiple W.
    x2 = jax.random.normal(kx2, (1, C_IN, 20, 12), dtype=jnp.float32)
    out2 = jax.block_until_ready(conv_relu_block(x2, weight, tile_h=8))
    ref2 = ref_fn(x2, weight)
    assert out2.shape == ref2.shape == (1, C_OUT, 20, 12)
    assert jnp.allclose(out2, ref2, atol=1e-3, rtol=1e-3), \
        float(jnp.max(jnp.abs(out2 - ref2)))

    print("KERNEL_OK")
</pallas_src>

<mosaic_0001>
module attributes {stable_mosaic.version = 11 : i64} {
  func.func @_conv_relu_kernel(%arg0: i32, %arg1: i32, %arg2: memref<1x16x24x64xf32, #tpu.memory_space<vmem>>, %arg3: memref<1x8x24x64xf32, #tpu.memory_space<vmem>>, %arg4: memref<3x64x192xf32, #tpu.memory_space<vmem>>, %arg5: memref<1x16x16x64xf32, #tpu.memory_space<vmem>>, %arg6: memref<16x24x192xf32, #tpu.memory_space<vmem>>) attributes {dimension_semantics = [#tpu.dimension_semantics<parallel>, #tpu.dimension_semantics<parallel>], iteration_bounds = array<i64: 2, 1>, scalar_prefetch = 0 : i64, scratch_operands = 1 : i64, tpu.core_type = #tpu.core_type<tc>, window_params = [{transform_indices = @transform_0, window_bounds = array<i64: 1, 16, 24, 64>}, {transform_indices = @transform_1, window_bounds = array<i64: 1, 8, 24, 64>}, {pipeline_mode = #tpu.pipeline_mode<synchronous>, transform_indices = @transform_2, window_bounds = array<i64: 3, 64, 192>}, {transform_indices = @transform_3, window_bounds = array<i64: 1, 16, 16, 64>}]} {
    %c0 = arith.constant 0 : index
    %c0_0 = arith.constant 0 : index
    %c0_1 = arith.constant 0 : index
    %c0_2 = arith.constant 0 : index
    %0 = vector.load %arg2[%c0, %c0_0, %c0_1, %c0_2] : memref<1x16x24x64xf32, #tpu.memory_space<vmem>>, vector<1x16x24x64xf32>
    %1 = vector.shape_cast %0 : vector<1x16x24x64xf32> to vector<16x24x64xf32>
    %2 = vector.shape_cast %1 : vector<16x24x64xf32> to vector<384x64xf32>
    %c0_3 = arith.constant 0 : index
    %c0_4 = arith.constant 0 : index
    %c0_5 = arith.constant 0 : index
    %c0_6 = arith.constant 0 : index
    %3 = vector.load %arg3[%c0_3, %c0_4, %c0_5, %c0_6] : memref<1x8x24x64xf32, #tpu.memory_space<vmem>>, vector<1x8x24x64xf32>
    %4 = vector.shape_cast %3 : vector<1x8x24x64xf32> to vector<8x24x64xf32>
    %5 = vector.extract_strided_slice %4 {offsets = [0, 0, 0], sizes = [2, 24, 64], strides = [1, 1, 1]} : vector<8x24x64xf32> to vector<2x24x64xf32>
    %6 = vector.shape_cast %5 : vector<2x24x64xf32> to vector<48x64xf32>
    %c0_7 = arith.constant 0 : index
    %c0_8 = arith.constant 0 : index
    %c0_9 = arith.constant 0 : index
    %7 = vector.load %arg4[%c0_7, %c0_8, %c0_9] : memref<3x64x192xf32, #tpu.memory_space<vmem>>, vector<1x64x192xf32>
    %8 = vector.shape_cast %7 : vector<1x64x192xf32> to vector<64x192xf32>
    %cst = arith.constant dense<0.000000e+00> : vector<384x192xf32>
    %9 = tpu.matmul %2, %8, %cst {dimension_numbers = #tpu.dot_dimension_numbers<[1], [0], [0], [1], [0, 0, 1, 1], [], []>} : vector<384x64xf32>, vector<64x192xf32>, vector<384x192xf32> -> vector<384x192xf32>
    %10 = vector.shape_cast %9 : vector<384x192xf32> to vector<16x24x192xf32>
    %c0_10 = arith.constant 0 : index
    %c0_11 = arith.constant 0 : index
    %c0_12 = arith.constant 0 : index
    %11 = vector.load %arg6[%c0_10, %c0_11, %c0_12] : memref<16x24x192xf32, #tpu.memory_space<vmem>>, vector<16x24x192xf32>
    tpu.vector_store %arg6[%c0_10, %c0_11, %c0_12], %10 {strides = array<i32>} : memref<16x24x192xf32, #tpu.memory_space<vmem>>, vector<16x24x192xf32>,
    %c1 = arith.constant 1 : index
    %c0_13 = arith.constant 0 : index
    %c0_14 = arith.constant 0 : index
    %12 = vector.load %arg4[%c1, %c0_13, %c0_14] : memref<3x64x192xf32, #tpu.memory_space<vmem>>, vector<1x64x192xf32>
    %13 = vector.shape_cast %12 : vector<1x64x192xf32> to vector<64x192xf32>
    %cst_15 = arith.constant dense<0.000000e+00> : vector<384x192xf32>
    %14 = tpu.matmul %2, %13, %cst_15 {dimension_numbers = #tpu.dot_dimension_numbers<[1], [0], [0], [1], [0, 0, 1, 1], [], []>} : vector<384x64xf32>, vector<64x192xf32>, vector<384x192xf32> -> vector<384x192xf32>
    %15 = vector.shape_cast %14 : vector<384x192xf32> to vector<16x24x192xf32>
    %c0_16 = arith.constant 0 : index
    %c0_17 = arith.constant 0 : index
    %c0_18 = arith.constant 0 : index
    %16 = vector.load %arg6[%c0_16, %c0_17, %c0_18] : memref<16x24x192xf32, #tpu.memory_space<vmem>>, vector<15x24x192xf32>
    %17 = vector.extract_strided_slice %15 {offsets = [1, 0, 0], sizes = [15, 24, 192], strides = [1, 1, 1]} : vector<16x24x192xf32> to vector<15x24x192xf32>
    %18 = arith.addf %16, %17 : vector<15x24x192xf32>
    %c0_19 = arith.constant 0 : index
    %c0_20 = arith.constant 0 : index
    %c0_21 = arith.constant 0 : index
    %19 = vector.load %arg6[%c0_19, %c0_20, %c0_21] : memref<16x24x192xf32, #tpu.memory_space<vmem>>, vector<15x24x192xf32>
    tpu.vector_store %arg6[%c0_19, %c0_20, %c0_21], %18 {strides = array<i32>} : memref<16x24x192xf32, #tpu.memory_space<vmem>>, vector<15x24x192xf32>,
    %cst_22 = arith.constant dense<0.000000e+00> : vector<48x192xf32>
    %20 = tpu.matmul %6, %13, %cst_22 {dimension_numbers = #tpu.dot_dimension_numbers<[1], [0], [0], [1], [0, 0, 1, 1], [], []>} : vector<48x64xf32>, vector<64x192xf32>, vector<48x192xf32> -> vector<48x192xf32>
    %21 = vector.shape_cast %20 : vector<48x192xf32> to vector<2x24x192xf32>
    %c15 = arith.constant 15 : index
    %c0_23 = arith.constant 0 : index
    %c0_24 = arith.constant 0 : index
    %22 = vector.load %arg6[%c15, %c0_23, %c0_24] : memref<16x24x192xf32, #tpu.memory_space<vmem>>, vector<1x24x192xf32>
    %23 = vector.extract_strided_slice %21 {offsets = [0, 0, 0], sizes = [1, 24, 192], strides = [1, 1, 1]} : vector<2x24x192xf32> to vector<1x24x192xf32>
    %24 = arith.addf %22, %23 : vector<1x24x192xf32>
    %c15_25 = arith.constant 15 : index
    %c0_26 = arith.constant 0 : index
    %c0_27 = arith.constant 0 : index
    %25 = vector.load %arg6[%c15_25, %c0_26, %c0_27] : memref<16x24x192xf32, #tpu.memory_space<vmem>>, vector<1x24x192xf32>
    tpu.vector_store %arg6[%c15_25, %c0_26, %c0_27], %24 {strides = array<i32>} : memref<16x24x192xf32, #tpu.memory_space<vmem>>, vector<1x24x192xf32>,
    %c2 = arith.constant 2 : index
    %c0_28 = arith.constant 0 : index
    %c0_29 = arith.constant 0 : index
    %26 = vector.load %arg4[%c2, %c0_28, %c0_29] : memref<3x64x192xf32, #tpu.memory_space<vmem>>, vector<1x64x192xf32>
    %27 = vector.shape_cast %26 : vector<1x64x192xf32> to vector<64x192xf32>
    %cst_30 = arith.constant dense<0.000000e+00> : vector<384x192xf32>
    %28 = tpu.matmul %2, %27, %cst_30 {dimension_numbers = #tpu.dot_dimension_numbers<[1], [0], [0], [1], [0, 0, 1, 1], [], []>} : vector<384x64xf32>, vector<64x192xf32>, vector<384x192xf32> -> vector<384x192xf32>
    %29 = vector.shape_cast %28 : vector<384x192xf32> to vector<16x24x192xf32>
    %c0_31 = arith.constant 0 : index
    %c0_32 = arith.constant 0 : index
    %c0_33 = arith.constant 0 : index
    %30 = vector.load %arg6[%c0_31, %c0_32, %c0_33] : memref<16x24x192xf32, #tpu.memory_space<vmem>>, vector<14x24x192xf32>
    %31 = vector.extract_strided_slice %29 {offsets = [2, 0, 0], sizes = [14, 24, 192], strides = [1, 1, 1]} : vector<16x24x192xf32> to vector<14x24x192xf32>
    %32 = arith.addf %30, %31 : vector<14x24x192xf32>
    %c0_34 = arith.constant 0 : index
    %c0_35 = arith.constant 0 : index
    %c0_36 = arith.constant 0 : index
    %33 = vector.load %arg6[%c0_34, %c0_35, %c0_36] : memref<16x24x192xf32, #tpu.memory_space<vmem>>, vector<14x24x192xf32>
    tpu.vector_store %arg6[%c0_34, %c0_35, %c0_36], %32 {strides = array<i32>} : memref<16x24x192xf32, #tpu.memory_space<vmem>>, vector<14x24x192xf32>,
    %cst_37 = arith.constant dense<0.000000e+00> : vector<48x192xf32>
    %34 = tpu.matmul %6, %27, %cst_37 {dimension_numbers = #tpu.dot_dimension_numbers<[1], [0], [0], [1], [0, 0, 1, 1], [], []>} : vector<48x64xf32>, vector<64x192xf32>, vector<48x192xf32> -> vector<48x192xf32>
    %35 = vector.shape_cast %34 : vector<48x192xf32> to vector<2x24x192xf32>
    %c14 = arith.constant 14 : index
    %c0_38 = arith.constant 0 : index
    %c0_39 = arith.constant 0 : index
    %36 = vector.load %arg6[%c14, %c0_38, %c0_39] : memref<16x24x192xf32, #tpu.memory_space<vmem>>, vector<2x24x192xf32>
    %37 = arith.addf %36, %35 : vector<2x24x192xf32>
    %c14_40 = arith.constant 14 : index
    %c0_41 = arith.constant 0 : index
    %c0_42 = arith.constant 0 : index
    %38 = vector.load %arg6[%c14_40, %c0_41, %c0_42] : memref<16x24x192xf32, #tpu.memory_space<vmem>>, vector<2x24x192xf32>
    tpu.vector_store %arg6[%c14_40, %c0_41, %c0_42], %37 {strides = array<i32>} : memref<16x24x192xf32, #tpu.memory_space<vmem>>, vector<2x24x192xf32>,
    %c0_43 = arith.constant 0 : index
    %c0_44 = arith.constant 0 : index
    %c0_45 = arith.constant 0 : index
    %39 = vector.load %arg6[%c0_43, %c0_44, %c0_45] : memref<16x24x192xf32, #tpu.memory_space<vmem>>, vector<16x24x192xf32>
    %40 = vector.extract_strided_slice %39 {offsets = [0, 0, 0], sizes = [16, 16, 64], strides = [1, 1, 1]} : vector<16x24x192xf32> to vector<16x16x64xf32>
    %41 = vector.extract_strided_slice %39 {offsets = [0, 1, 64], sizes = [16, 16, 64], strides = [1, 1, 1]} : vector<16x24x192xf32> to vector<16x16x64xf32>
    %42 = arith.addf %40, %41 : vector<16x16x64xf32>
    %43 = vector.extract_strided_slice %39 {offsets = [0, 2, 128], sizes = [16, 16, 64], strides = [1, 1, 1]} : vector<16x24x192xf32> to vector<16x16x64xf32>
    %44 = arith.addf %42, %43 : vector<16x16x64xf32>
    %cst_46 = arith.constant 0.000000e+00 : f32
    %45 = vector.broadcast %cst_46 : f32 to vector<16x16x64xf32>
    %46 = arith.maximumf %44, %45 : vector<16x16x64xf32>
    %47 = vector.shape_cast %46 : vector<16x16x64xf32> to vector<1x16x16x64xf32>
    %c0_47 = arith.constant 0 : index
    %c0_48 = arith.constant 0 : index
    %c0_49 = arith.constant 0 : index
    %c0_50 = arith.constant 0 : index
    %48 = vector.load %arg5[%c0_47, %c0_48, %c0_49, %c0_50] : memref<1x16x16x64xf32, #tpu.memory_space<vmem>>, vector<1x16x16x64xf32>
    tpu.vector_store %arg5[%c0_47, %c0_48, %c0_49, %c0_50], %47 {strides = array<i32>} : memref<1x16x16x64xf32, #tpu.memory_space<vmem>>, vector<1x16x16x64xf32>,
    return
  }
  func.func @transform_0(%arg0: i32, %arg1: i32) -> (i32, i32, i32, i32) {
    %c0_i32 = arith.constant 0 : i32
    %c0_i32_0 = arith.constant 0 : i32
    %c0_i32_1 = arith.constant 0 : i32
    return %arg0, %arg1, %c0_i32, %c0_i32_0 : i32, i32, i32, i32
  }
  func.func @transform_1(%arg0: i32, %arg1: i32) -> (i32, i32, i32, i32) {
    %c1_i32 = arith.constant 1 : i32
    %0 = arith.addi %arg1, %c1_i32 : i32
    %c2_i32 = arith.constant 2 : i32
    %1 = arith.muli %0, %c2_i32 : i32
    %c0_i32 = arith.constant 0 : i32
    %c0_i32_0 = arith.constant 0 : i32
    %c0_i32_1 = arith.constant 0 : i32
    return %arg0, %1, %c0_i32, %c0_i32_0 : i32, i32, i32, i32
  }
  func.func @transform_2(%arg0: i32, %arg1: i32) -> (i32, i32, i32) {
    %c0_i32 = arith.constant 0 : i32
    %c0_i32_0 = arith.constant 0 : i32
    %c0_i32_1 = arith.constant 0 : i32
    %c0_i32_2 = arith.constant 0 : i32
    return %c0_i32, %c0_i32_0, %c0_i32_1 : i32, i32, i32
  }
  func.func @transform_3(%arg0: i32, %arg1: i32) -> (i32, i32, i32, i32) {
    %c0_i32 = arith.constant 0 : i32
    %c0_i32_0 = arith.constant 0 : i32
    %c0_i32_1 = arith.constant 0 : i32
    return %arg0, %arg1, %c0_i32, %c0_i32_0 : i32, i32, i32, i32
  }
}

</mosaic_0001>

<bundles_post_ra>
// kernel: tpu_custom_call.1
= control target key start
LH: loop header
LB: loop body
LE: loop exit
PB: predicated region body
PF: predicated region fallthrough
CT: control target
= control target key end

     0   :  { %s5513_s0 = inlined_call_operand.hbm [shape: f32[2,32,24,64], index: 0, kind: input, shape index: {}]   ;;  %s5514_s1 = inlined_call_operand.hbm [shape: f32[2,32,24,64], index: 1, kind: input, shape index: {}]   ;;  %s5515_s2 = inlined_call_operand.hbm [shape: f32[3,64,192], index: 2, kind: input, shape index: {}]   ;;  %s5516_s3 = inlined_call_operand.hbm [shape: f32[2,16,16,64], index: 3, kind: output, shape index: {}]  }
   0x1   :  { %5521 = sst [smem:[#allocation16_spill]] %s5513_s0 }
   0x2   :  { %5522 = sst [smem:[#allocation17_spill]] %s5515_s2 }
   0x3   :  { %8 = vsyncpa [#allocation4], 0 }
   0x4   :  { %10 = vsyncpa [#allocation4 + $0x1], 0 }
   0x5   :  { %11 = vsyncpa [#allocation7], 0 }
   0x6   :  { %13 = vsyncpa [#allocation7 + $0x1], 0 }
   0x7   :  { %14 = vsyncpa [#allocation5], 0 }
   0x8   :  { %16 = vsyncpa [#allocation5 + $0x1], 0  ;;  %s3778_s12 = smov 0   ;;  %s3780_s13 = smov 0  }
   0x9   :  { %s3782_s14 = smov 0   ;;  %s3784_s15 = smov 0  }
   0xa   :  { %s3786_s16 = smov 0   ;;  %s3788_s17 = smov 0  }
   0xb LB: > { %s3809_s18 = sadd.s32 4294967295, %s3744_s17   ;;  %s3207_s19 = sadd.s32 4294967294, %s3744_s17   ;;  %s3744_s17 = sphi %s3788_s17, %s22_s17   ;;  %s3740_s16 = sphi %s3786_s16, %s5547_s16   ;;  %s3736_s15 = sphi %s3784_s15, %s5546_s15   ;;  %s3732_s14 = sphi %s3782_s14, %s5545_s14   ;;  %s3728_s13 = sphi %s3780_s13, %s5544_s13   ;;  %s3724_s12 = sphi %s3778_s12, %s5543_s12  }
   0xc   : > { %p56_p0 = scmp.ne.s32.totalorder %s3728_s13, %s3724_s12  ;;  %p5517_p1 = scmp.eq.s32.totalorder %s3809_s18, 0 }
   0xd   : > { %p141_p3 = scmp.eq.s32.totalorder %s3207_s19, 1  ;;  %p3208_p5 = scmp.ge.s32.totalorder %s3744_s17, 1 }
   0xe   : > { %p3818_p4 = por %p5517_p1, %p56_p0  ;;  %p148_p7 = scmp.lt.s32.totalorder %s3744_s17, 3 }
   0xf   : > { %p3823_p6 = por %p141_p3, %p56_p0  ;;  %s3746_s23 = smov [#allocation8]  }
  0x10   : > { %s5523_s20 = scalar_select %p3818_p4, 1, 0 }
  0x11   : > { %s5524_s21 = scalar_select %p3823_p6, 1, 0 }
  0x12   : > { %p3828_p8 = pnand %p3208_p5, %p148_p7  ;;  %s160_s24 = sshll.u32 %s3746_s23, 4  ;;  %s161_s24 = int_to_ptr.vmem [resolvable:$true] %s160_s24 }
  0x13   : > { %s34_s26 = sadd.s32 1, %s3740_s16  ;;  %s5527_s2 = sld [smem:[#allocation17_spill]] }
  0x14   : > { %s5525_s22 = scalar_select %p3828_p8, 1, 0 }
  0x15   : > { %p3481_p9 = pneg %p3828_p8 }
  0x17   : > { %p3837_p11 = pnand %p3481_p9, %p5517_p1 }
  0x19   : > { %s3565_s29 = scalar_lea.hbm %s5527_s2, 6144  ;;  %p3567_p13 = pneg %p3837_p11 }
  0x1a   : > { %p3566_p12 = scmp.ne.s32.totalorder %s5527_s2, %s3565_s29  ;;  %p3572_p5 = scmp.lt.u32.totalorder %s3565_s29, %s5527_s2 }
  0x1c   : > { %p3568_p0 = pnand %p3567_p13, %p3566_p12 }
  0x1e   : > { %p3569_p3 = pneg %p3568_p0 }
  0x20   : > { %p3574_p7 = pnand %p3572_p5, %p3569_p3 }
  0x22   : > { %3577 = shalt.err (!%p3574_p7)
}
  0x23   : > { %s3578_s7 = scalar_lea.vmem %s161_s24, 6144  ;;  %p3586_p2 = scmp.lt.s32.totalorder %s161_s24, %s161_s24 }
  0x24   : > { %p3579_p9 = scmp.ne.s32.totalorder %s161_s24, %s3578_s7  ;;  %p3587_p6 = scmp.lt.s32.totalorder %s3578_s7, %s3578_s7 }
  0x26   : > { %p3581_p10 = pnand %p3579_p9, %p3567_p13  ;;  %p3588_p4 = por %p3587_p6, %p3586_p2 }
  0x28   : > { %p3582_p1 = pneg %p3581_p10 }
  0x2a   : > { %p3589_p8 = pnand %p3588_p4, %p3582_p1 }
  0x2c   : > { %3592 = shalt.err (!%p3589_p8)
}
  0x2d   : > { %s3747_s8 = smov 256   ;;  %s3748_s9 = smov 16  }
  0x2e   : > { %3484 = dma.hbm_to_vmem [thread:$0]  (!%p3837_p11), %s5527_s2, 6144, %s161_s24, [#allocation7], %s3747_s8, %s3747_s8, %s3748_s9  }
  0x2f   : > { %p36_p1 = scmp.ge.s32.totalorder %s34_s26, 2  ;;  %s43_s19 = sadd.s32 1, %s3732_s14 }
  0x30   : > { %p50_p2 = scmp.ne.s32.totalorder %s3732_s14, %s3728_s13  ;;  %p51_p4 = scmp.eq.s32.totalorder %s3744_s17, 0 }
  0x31   : > { %s5549_s26 = smov (%p36_p1, %s34_s26), 0  ;;  %p5529_p8 = scmp.eq.s32.totalorder %s3809_s18, 1 }
  0x32   : > { %5528 = sst [smem:[#allocation14_spill]] %s5549_s26  ;;  %p52_p6 = por %p51_p4, %p50_p2 }
  0x33   : > { %p3866_p10 = por %p5529_p8, %p50_p2  ;;  %s38_s25 = ssub.s32 %s3740_s16, %s5549_s26 }
  0x34   : > { %p3497_p12 = scmp.lt.s32.totalorder %s3744_s17, 2  ;;  %p41_p13 = scmp.eq.s32.totalorder %s38_s25, 0 }
  0x35   : > { %s3874_s27 = sand.u32 1, %s3732_s14   ;;  %s3467_s29 = smul.u32 12288, %s3740_s16 }
  0x36   : > { %s3466_s24 = smul.u32 384, %s3874_s27  ;;  %p3881_p11 = pnand %p3497_p12, %p52_p6 }
  0x37   : > { %s3878_s28 = scalar_select %p41_p13, %s3732_s14, %s43_s19  }
  0x38   : > { %s178_s30 = scalar_lea.vmem [#allocation3], %s3466_s24  ;;  %s5533_s0 = sld [smem:[#allocation16_spill]] }
  0x39   : > { %5531 = sst [smem:[#allocation15_spill]] %s3878_s28  ;;  %s188_s4 = sshll.u32 %s178_s30, 4  ;;  %s3892_s4 = int_to_ptr.vmem [resolvable:$true] %s188_s4 }
  0x3a   : > { %s175_s10 = scalar_lea.sflag [#allocation4], %s3874_s27  ;;  %p3595_p3 = pneg %p3881_p11 }
  0x3e   : > { %s3890_s8 = scalar_lea.hbm %s5533_s0, %s3467_s29  ;;  %s3598_s24 = scalar_lea.hbm %s5533_s0, 24576 }
  0x3f   : > { %s3593_s11 = scalar_lea.hbm %s3890_s8, 6144  ;;  %p3599_p9 = scmp.lt.u32.totalorder %s3890_s8, %s5533_s0 }
  0x40   : > { %p3594_p0 = scmp.ne.s32.totalorder %s3890_s8, %s3593_s11  ;;  %p3600_p1 = scmp.lt.u32.totalorder %s3598_s24, %s3593_s11 }
  0x41   : > { %p3602_p4 = scmp.lt.u32.totalorder %s3593_s11, %s3890_s8 }
  0x42   : > { %p3596_p5 = pnand %p3595_p3, %p3594_p0  ;;  %p3601_p2 = por %p3600_p1, %p3599_p9 }
  0x44   : > { %p3597_p7 = pneg %p3596_p5  ;;  %p3603_p6 = por %p3602_p4, %p3601_p2 }
  0x46   : > { %p3604_p8 = pnand %p3603_p6, %p3597_p7 }
  0x48   : > { %3607 = shalt.err (!%p3604_p8)
}
  0x49   : > { %s3608_s7 = scalar_lea.vmem %s3892_s4, 6144  ;;  %s3749_s19 = smov [#allocation3]  }
  0x4a   : > { %p3609_p12 = scmp.ne.s32.totalorder %s3892_s4, %s3608_s7  ;;  %s3613_s25 = sshll.u32 %s3749_s19, 4  ;;  %s3614_s25 = int_to_ptr.vmem [resolvable:$false] %s3613_s25 }
  0x4b   : > { %s3615_s30 = scalar_lea.vmem %s3614_s25, 12288  ;;  %p3616_p5 = scmp.lt.s32.totalorder %s3892_s4, %s3614_s25 }
  0x4c   : > { %p3611_p13 = pnand %p3609_p12, %p3595_p3  ;;  %p3617_p9 = scmp.lt.s32.totalorder %s3615_s30, %s3608_s7 }
  0x4e   : > { %p3612_p0 = pneg %p3611_p13  ;;  %p3618_p1 = por %p3617_p9, %p3616_p5 }
  0x50   : > { %p3619_p2 = pnand %p3618_p1, %p3612_p0 }
  0x52   : > { %3622 = shalt.err (!%p3619_p2)
}
  0x53   : > { %s3750_s11 = smov 128   ;;  %s3751_s24 = smov 8  }
  0x54   : > { %3488 = dma.hbm_to_vmem [thread:$0]  (!%p3881_p11), %s3890_s8, 6144, %s3892_s4, %s175_s10, %s3750_s11, %s3750_s11, %s3751_s24  }
  0x55   : > { %s3468_s6 = smul.u32 192, %s3874_s27  ;;  %s3128_s25 = scalar_lea.hbm %s5514_s1, %s3467_s29 }
  0x56   : > { %s3932_s30 = scalar_lea.hbm %s3128_s25, 6144  ;;  %s5534_s2 = sand.u32 1, %s3744_s17  }
  0x57   : > { %s202_s9 = scalar_lea.vmem [#allocation6], %s3468_s6  ;;  %s3938_s26 = scalar_lea.sflag [#allocation7], %s5534_s2 }
  0x58   : > { %s214_s0 = sshll.u32 %s202_s9, 4  ;;  %s3653_s28 = scalar_lea.hbm %s3128_s25, 9216  ;;  %s3934_s0 = int_to_ptr.vmem [resolvable:$true] %s214_s0 }
  0x59   : > { %p3624_p7 = scmp.ne.s32.totalorder %s3932_s30, %s3653_s28  ;;  %s3628_s4 = scalar_lea.hbm %s5514_s1, 24576 }
  0x5a   : > { %p3629_p8 = scmp.lt.u32.totalorder %s3932_s30, %s5514_s1  ;;  %p3630_p12 = scmp.lt.u32.totalorder %s3628_s4, %s3653_s28 }
  0x5b   : > { %p3626_p4 = pnand %p3624_p7, %p3595_p3  ;;  %p3632_p0 = scmp.lt.u32.totalorder %s3653_s28, %s3932_s30 }
  0x5c   : > { %p3631_p13 = por %p3630_p12, %p3629_p8 }
  0x5d   : > { %p3627_p6 = pneg %p3626_p4 }
  0x5e   : > { %p3633_p5 = por %p3632_p0, %p3631_p13 }
  0x60   : > { %p3634_p9 = pnand %p3633_p5, %p3627_p6 }
  0x62   : > { %3637 = shalt.err (!%p3634_p9)
}
  0x63   : > { %s3638_s2 = scalar_lea.vmem %s3934_s0, 3072  ;;  %s3752_s9 = smov [#allocation6]  }
  0x64   : > { %p3639_p1 = scmp.ne.s32.totalorder %s3934_s0, %s3638_s2  ;;  %s3643_s6 = sshll.u32 %s3752_s9, 4  ;;  %s3644_s6 = int_to_ptr.vmem [resolvable:$false] %s3643_s6 }
  0x65   : > { %s3645_s7 = scalar_lea.vmem %s3644_s6, 6144  ;;  %p3646_p4 = scmp.lt.s32.totalorder %s3934_s0, %s3644_s6 }
  0x66   : > { %p3641_p2 = pnand %p3639_p1, %p3595_p3  ;;  %p3647_p8 = scmp.lt.s32.totalorder %s3645_s7, %s3638_s2 }
  0x68   : > { %p3642_p7 = pneg %p3641_p2  ;;  %p3648_p12 = por %p3647_p8, %p3646_p4 }
  0x6a   : > { %p3649_p13 = pnand %p3648_p12, %p3642_p7 }
  0x6c   : > { %3652 = shalt.err (!%p3649_p13)
}
  0x6d   : > { %3491 = dma.hbm_to_vmem [thread:$0]  (!%p3881_p11), %s3932_s30, 3072, %s3934_s0, %s3938_s26, %s3750_s11, %s3750_s11, %s3751_s24  }
  0x6e   : > { %p5535_p3 = scmp.ne.s32.totalorder %s5525_s22, 0 }
  0x6f   : > { %s3969_s28 = sand.u32 (!%p5535_p3), 1, %s3728_s13   ;;  %p5536_p6 = scmp.ne.s32.totalorder (!%p5535_p3), %s5523_s20, 0 }
  0x70   : > { %226 = sbr.rel (%p5535_p3) target bundleno = 813 (0x32d), region = 32  ;;  %s229_s25 = scalar_lea.sflag (!%p5535_p3), [#allocation4], %s3969_s28 }
  0x71   : > { %s3469_s19 = smul.u32 (!%p5535_p3), 384, %s3969_s28 }
  0x73   : > { %s3973_s27 = scalar_lea.vmem (!%p5535_p3), [#allocation3], %s3469_s19 }
  0x77   : > { %3707 = dma.done.wait (%p5536_p6), %s229_s25, 6144  }
  0x78   : > { %3709 = vsyncadd (%p5536_p6), %s229_s25, 4294961152  ;;  %s237_s0 = sand.u32 1, %s3809_s18   ;;  %s3470_s22 = smul.u32 192, %s3969_s28 }
  0x79   : > { %s238_s26 = scalar_lea.sflag [#allocation7], %s237_s0 }
  0x7a   : > { %s3981_s5 = scalar_lea.vmem [#allocation6], %s3470_s22 }
  0x7b   : > { %3711 = dma.done.wait (%p5536_p6), %s238_s26, 3072  }
  0x7c   : > { %3713 = vsyncadd (%p5536_p6), %s238_s26, 4294964224  ;;  %p5537_p11 = scmp.eq.s32.totalorder %s3809_s18, 0 }
  0x7e   : > { %3715 = dma.done.wait (%p5537_p11), [#allocation7], 6144   ;;  %p5538_p0 = pmov %p5537_p11 }
  0x7f   : > { %v3753_v0 = vmov 0.0   ;;  %v333_v1 = vld [vmem:[#allocation8 + $0x8] sm:$0xff]  ;;  %v335_v2 = vld [vmem:[#allocation8 + $0x18] sm:$0xff]  ;;  %v332_v6 = vld [vmem:[#allocation8] sm:$0xff]  ;;  %vm348_vm0 = vcmask 523264   ;;  %vm2600_vm1 = vcmask 1046528  }
  0x80   : > { %3717 = vsyncadd (%p5538_p0), [#allocation7], 4294961152  ;;  %557 = vmatprep.mubr.f32.mxu0 %v3753_v0  ;;  %1125 = vmatprep.mubr.f32.mxu1 %v3753_v0  ;;  %v944_v3 = vld [vmem:[#allocation8 + $0x88] sm:$0xff]  ;;  %v3378_v4 = vpack.c.bf16 %v335_v2, %v333_v1  ;;  %v946_v5 = vld [vmem:[#allocation8 + $0x98] sm:$0xff]  ;;  %s3754_s18 = smov 64   ;;  %vm2857_vm2 = vcmask 1045504  }
  0x81   : > { %v334_v7 = vld [vmem:[#allocation8 + $0x10] sm:$0xff]  ;;  %v3993_v8 = vpack.c.bf16 %v946_v5, %v944_v3  ;;  %v943_v10 = vld [vmem:[#allocation8 + $0x80] sm:$0xff]  ;;  %v337_v12 = vld [vmem:[#allocation8 + $0x28] sm:$0xff]  ;;  %s3215_s20 = sshll.u32 %s3969_s28, 8  ;;  %s3377_s24 = sshll.u32 %s3736_s15, 12 }
  0x82   : > { %v3380_v9 = vpack.c.bf16 %v334_v7, %v332_v6  ;;  %v945_v11 = vld [vmem:[#allocation8 + $0x90] sm:$0xff]  ;;  %3379 = vmatprep.subr.bf16.mxu0 %v3378_v4  ;;  %v339_v14 = vld [vmem:[#allocation8 + $0x38] sm:$0xff]  ;;  %v948_v15 = vld [vmem:[#allocation8 + $0xa8] sm:$0xff]  ;;  %s5338_s11 = scalar_lea.vmem [#allocation9], %s3215_s20  ;;  %s5460_s8 = scalar_lea.hbm %s5516_s3, %s3377_s24 }
  0x83   : > { %v3995_v13 = vpack.c.bf16 %v945_v11, %v943_v10  ;;  %v950_v16 = vld [vmem:[#allocation8 + $0xb8] sm:$0xff]  ;;  %3458 = vmatprep.subr.bf16.mxu1 %v3993_v8  ;;  %v3382_v17 = vpack.c.bf16 %v339_v14, %v337_v12  ;;  %v336_v19 = vld [vmem:[#allocation8 + $0x20] sm:$0xff]  ;;  %v338_v20 = vld [vmem:[#allocation8 + $0x30] sm:$0xff]  ;;  %s3083_s30 = sshll.u32 %s5338_s11, 4  ;;  %s3067_s15 = scalar_lea.sflag [#allocation5], %s3969_s28  ;;  %s5462_s30 = int_to_ptr.vmem [resolvable:$true] %s3083_s30 }
  0x84   : > { %3381 = vmatpush1.bf16.msra.mxu0 %v3380_v9  ;;  %v3998_v18 = vpack.c.bf16 %v950_v16, %v948_v15  ;;  %v947_v21 = vld [vmem:[#allocation8 + $0xa0] sm:$0xff]  ;;  %v3384_v22 = vpack.c.bf16 %v338_v20, %v336_v19  ;;  %v949_v23 = vld [vmem:[#allocation8 + $0xb0] sm:$0xff]  ;;  %v341_v24 = vld [vmem:[#allocation8 + $0x48] sm:$0xff]  ;;  %s3654_s10 = scalar_lea.vmem %s5462_s30, 4096  ;;  %s3755_s2 = smov [#allocation9]  }
  0x85   : > { %3462 = vmatpush1.bf16.msra.mxu1 %v3995_v13  ;;  %v343_v25 = vld [vmem:[#allocation8 + $0x58] sm:$0xff]  ;;  %3383 = vmatprep.subr.bf16.mxu0 %v3382_v17  ;;  %v4002_v26 = vpack.c.bf16 %v949_v23, %v947_v21  ;;  %v952_v28 = vld [vmem:[#allocation8 + $0xc8] sm:$0xff]  ;;  %v340_v30 = vld [vmem:[#allocation8 + $0x40] sm:$0xff]  ;;  %p3655_p5 = scmp.ne.s32.totalorder %s5462_s30, %s3654_s10  ;;  %s3658_s9 = sshll.u32 %s3755_s2, 4  ;;  %s3659_s9 = int_to_ptr.vmem [resolvable:$false] %s3658_s9 }
  0x86   : > { %3459 = vmatprep.subr.bf16.mxu1 %v3998_v18  ;;  %v3386_v27 = vpack.c.bf16 %v343_v25, %v341_v24  ;;  %v954_v29 = vld [vmem:[#allocation8 + $0xd8] sm:$0xff]  ;;  %v342_v32 = vld [vmem:[#allocation8 + $0x50] sm:$0xff]  ;;  %v951_v33 = vld [vmem:[#allocation8 + $0xc0] sm:$0xff]  ;;  %s3660_s6 = scalar_lea.vmem %s3659_s9, 8192  ;;  %p3661_p2 = scmp.lt.s32.totalorder %s5462_s30, %s3659_s9 }
  0x87   : > { %v4004_v31 = vpack.c.bf16 %v954_v29, %v952_v28  ;;  %v953_v34 = vld [vmem:[#allocation8 + $0xd0] sm:$0xff]  ;;  %v3388_v35 = vpack.c.bf16 %v342_v32, %v340_v30  ;;  %v345_v36 = vld [vmem:[#allocation8 + $0x68] sm:$0xff]  ;;  %v347_v37 = vld [vmem:[#allocation8 + $0x78] sm:$0xff]  ;;  %p3656_p9 = pnand %p3655_p5, %p3866_p10  ;;  %p3662_p7 = scmp.lt.s32.totalorder %s3660_s6, %s3654_s10 }
  0x88   : > { %3385 = vmatpush1.bf16.msra.mxu0 %v3384_v22  ;;  %v956_v38 = vld [vmem:[#allocation8 + $0xe8] sm:$0xff]  ;;  %v4007_v39 = vpack.c.bf16 %v953_v34, %v951_v33  ;;  %v3390_v40 = vpack.c.bf16 %v347_v37, %v345_v36  ;;  %v958_v41 = vld [vmem:[#allocation8 + $0xf8] sm:$0xff]  ;;  %v344_v42 = vld [vmem:[#allocation8 + $0x60] sm:$0xff] }
  0x89   : > { %3463 = vmatpush1.bf16.msra.mxu1 %v4002_v26  ;;  %3387 = vmatprep.subr.bf16.mxu0 %v3386_v27  ;;  %v346_v43 = vld [vmem:[#allocation8 + $0x70] sm:$0xff]  ;;  %v4010_v44 = vpack.c.bf16 %v958_v41, %v956_v38  ;;  %v955_v45 = vld [vmem:[#allocation8 + $0xe0] sm:$0xff]  ;;  %v1710_v47 = vld [vmem:[#allocation8 + $0x108] sm:$0xff]  ;;  %p3657_p1 = pneg %p3656_p9  ;;  %p3663_p4 = por %p3662_p7, %p3661_p2 }
  0x8a   : > { %3460 = vmatprep.subr.bf16.mxu1 %v4004_v31  ;;  %v957_v46 = vld [vmem:[#allocation8 + $0xf0] sm:$0xff]  ;;  %v1712_v48 = vld [vmem:[#allocation8 + $0x118] sm:$0xff]  ;;  %v3392_v49 = vpack.c.bf16 %v346_v43, %v344_v42  ;;  %v1709_v52 = vld [vmem:[#allocation8 + $0x100] sm:$0xff] }
  0x8b   : > { %v4013_v50 = vpack.c.bf16 %v957_v46, %v955_v45  ;;  %v4016_v51 = vpack.c.bf16 %v1712_v48, %v1710_v47  ;;  %v1711_v53 = vld [vmem:[#allocation8 + $0x110] sm:$0xff]  ;;  %v4019_v54 = vld [vmem:[%s3973_s27] sm:$0xff]  ;;  %v1714_v57 = vld [vmem:[#allocation8 + $0x128] sm:$0xff]  ;;  %p3664_p8 = pnand %p3663_p4, %p3657_p1 }
  0x8c   : > { %3389 = vmatpush1.bf16.msra.mxu0 %v3388_v35  ;;  %v4023_v55 = vld [vmem:[%s3973_s27 + $0x90] sm:$0xff]  ;;  %v4025_v56 = vpack.c.bf16 %v1711_v53, %v1709_v52  ;;  %v1716_v58 = vld [vmem:[#allocation8 + $0x138] sm:$0xff]  ;;  %v1713_v60 = vld [vmem:[#allocation8 + $0x120] sm:$0xff] }
  0x8d   : > { %3464 = vmatpush1.bf16.msra.mxu1 %v4007_v39  ;;  %3391 = vmatprep.subr.bf16.mxu0 %v3390_v40  ;;  %v4029_v59 = vpack.c.bf16 %v1716_v58, %v1714_v57  ;;  %v1715_v61 = vld [vmem:[#allocation8 + $0x130] sm:$0xff]  ;;  %v4037_v62 = vld [vmem:[%s3973_s27 + $0x8] sm:$0xff]  ;;  %v4042_v63 = vld [vmem:[%s3973_s27 + $0x98] sm:$0xff] }
  0x8e   : > { %3461 = vmatprep.subr.bf16.mxu1 %v4010_v44  ;;  %v4044_v1 = vpack.c.bf16 %v1715_v61, %v1713_v60  ;;  %v4051_v2 = vld [vmem:[%s3973_s27 + $0x10] sm:$0xff]  ;;  %v1718_v3 = vld [vmem:[#allocation8 + $0x148] sm:$0xff]  ;;  %v1720_v4 = vld [vmem:[#allocation8 + $0x158] sm:$0xff] }
  0x8f   : > { %v1717_v5 = vld [vmem:[#allocation8 + $0x140] sm:$0xff]  ;;  %v4062_v7 = vpack.c.bf16 %v1720_v4, %v1718_v3  ;;  %v1719_v9 = vld [vmem:[#allocation8 + $0x150] sm:$0xff]  ;;  %v4074_v11 = vld [vmem:[%s3973_s27 + $0x18] sm:$0xff] }
  0x90   : > { %3393 = vmatpush1.bf16.msra.mxu0 %v3392_v49  ;;  %v4059_v6 = vld [vmem:[%s3973_s27 + $0xa0] sm:$0xff]  ;;  %v4065_v10 = vpack.c.bf16 %v1719_v9, %v1717_v5  ;;  %v1722_v12 = vld [vmem:[#allocation8 + $0x168] sm:$0xff]  ;;  %v1724_v14 = vld [vmem:[#allocation8 + $0x178] sm:$0xff] }
  0x91   : > { %3465 = vmatpush1.bf16.msra.mxu1 %v4013_v50  ;;  %3395 = vmatprep.subr.bf16.mxu0 %v3993_v8  ;;  %v4078_v15 = vld [vmem:[%s3973_s27 + $0xa8] sm:$0xff]  ;;  %v4081_v16 = vpack.c.bf16 %v1724_v14, %v1722_v12  ;;  %v1721_v17 = vld [vmem:[#allocation8 + $0x160] sm:$0xff]  ;;  %v1723_v19 = vld [vmem:[#allocation8 + $0x170] sm:$0xff] }
  0x92   : > { %3427 = vmatprep.subr.bf16.mxu1 %v4016_v51  ;;  %v4083_v20 = vpack.c.bf16 %v1723_v19, %v1721_v17  ;;  %v4093_v21 = vld [vmem:[%s3973_s27 + $0x20] sm:$0xff]  ;;  %v4097_v22 = vld [vmem:[%s3973_s27 + $0xb0] sm:$0xff]  ;;  %v4108_v23 = vld [vmem:[%s3973_s27 + $0x28] sm:$0xff] }
  0x93   : > { %3216 = vmatmul.mubr.msk.f32.vlgmr.msra.gmra.mrb[0].mxu0 %vm348_vm0, %v4019_v54  ;;  %v4112_v24 = vld [vmem:[%s3973_s27 + $0xb8] sm:$0xff]  ;;  %v4122_v25 = vld [vmem:[%s3973_s27 + $0x30] sm:$0xff]  ;;  %v4126_v27 = vld [vmem:[%s3973_s27 + $0xc0] sm:$0xff] }
  0x94   : > { %3282 = vmatmul.mubr.msk.f32.vlgmr.msra.gmra.mrb[0].mxu1 %vm348_vm0, %v4023_v55  ;;  %563 = vmatprep.mubr.f32.mxu0 %v3753_v0  ;;  %v4138_v28 = vld [vmem:[%s3973_s27 + $0xc8] sm:$0xff]  ;;  %v4146_v29 = vld [vmem:[%s3973_s27 + $0x40] sm:$0xff]  ;;  %v4150_v30 = vld [vmem:[%s3973_s27 + $0xd0] sm:$0xff] }
  0x95   : > { %3429 = vmatpush1.bf16.msra.mxu1 %v4025_v56  ;;  %1131 = vmatprep.mubr.f32.mxu1 %v3753_v0  ;;  %v4158_v32 = vld [vmem:[%s3973_s27 + $0x48] sm:$0xff]  ;;  %v4162_v33 = vld [vmem:[%s3973_s27 + $0xd8] sm:$0xff]  ;;  %v4170_v34 = vld [vmem:[%s3973_s27 + $0x50] sm:$0xff] }
  0x96   : > { %3397 = vmatpush1.bf16.msra.mxu0 %v3995_v13  ;;  %3431 = vmatprep.subr.bf16.mxu1 %v4029_v59  ;;  %v4174_v35 = vld [vmem:[%s3973_s27 + $0xe0] sm:$0xff]  ;;  %v4182_v36 = vld [vmem:[%s3973_s27 + $0x58] sm:$0xff]  ;;  %v4186_v37 = vld [vmem:[%s3973_s27 + $0xe8] sm:$0xff] }
  0x97   : > { %3217 = vmatmul.mubr.msk.f32.gmra.mrb[2].mxu0 %vm348_vm0, %v4037_v62  ;;  %3399 = vmatprep.subr.bf16.mxu0 %v3998_v18  ;;  %v4194_v38 = vld [vmem:[%s3973_s27 + $0x60] sm:$0xff]  ;;  %v4198_v40 = vld [vmem:[%s3973_s27 + $0xf0] sm:$0xff]  ;;  %v4206_v41 = vld [vmem:[%s3973_s27 + $0x68] sm:$0xff] }
  0x98   : > { %3283 = vmatmul.mubr.msk.f32.gmra.mrb[2].mxu1 %vm348_vm0, %v4042_v63  ;;  %569 = vmatprep.mubr.f32.mxu0 %v3753_v0  ;;  %v4210_v42 = vld [vmem:[%s3973_s27 + $0xf8] sm:$0xff]  ;;  %v4218_v43 = vld [vmem:[%s3973_s27 + $0x70] sm:$0xff]  ;;  %v4222_v45 = vld [vmem:[%s3973_s27 + $0x100] sm:$0xff] }
  0x99   : > { %1137 = vmatprep.mubr.f32.mxu1 %v3753_v0  ;;  %3433 = vmatpush1.bf16.msra.mxu1 %v4044_v1  ;;  %v4230_v46 = vld [vmem:[%s3973_s27 + $0x78] sm:$0xff]  ;;  %v4234_v47 = vld [vmem:[%s3973_s27 + $0x108] sm:$0xff]  ;;  %v4242_v48 = vld [vmem:[%s3973_s27 + $0x80] sm:$0xff] }
  0x9a   : > { %3401 = vmatpush1.bf16.msra.mxu0 %v4002_v26  ;;  %3435 = vmatprep.subr.bf16.mxu1 %v4062_v7  ;;  %v4246_v49 = vld [vmem:[%s3973_s27 + $0x110] sm:$0xff]  ;;  %v4254_v52 = vld [vmem:[%s3973_s27 + $0x88] sm:$0xff]  ;;  %v4258_v53 = vld [vmem:[%s3973_s27 + $0x118] sm:$0xff] }
  0x9b   : > { %3218 = vmatmul.mubr.msk.f32.gmra.mrb[4].mxu0 %vm348_vm0, %v4051_v2  ;;  %3403 = vmatprep.subr.bf16.mxu0 %v4004_v31  ;;  %v4267_v57 = vld [vmem:[%s3973_s27 + $0x120] sm:$0xff]  ;;  %v4276_v58 = vld [vmem:[%s3973_s27 + $0x128] sm:$0xff]  ;;  %v4285_v60 = vld [vmem:[%s3973_s27 + $0x130] sm:$0xff] }
  0x9c   : > { %3284 = vmatmul.mubr.msk.f32.gmra.mrb[4].mxu1 %vm348_vm0, %v4059_v6  ;;  %575 = vmatprep.mubr.f32.mxu0 %v3753_v0  ;;  %v4294_v61 = vld [vmem:[%s3973_s27 + $0x138] sm:$0xff]  ;;  %v4303_v3 = vld [vmem:[%s3973_s27 + $0x140] sm:$0xff]  ;;  %v4312_v4 = vld [vmem:[%s3973_s27 + $0x148] sm:$0xff] }
  0x9d   : > { %1143 = vmatprep.mubr.f32.mxu1 %v3753_v0  ;;  %3437 = vmatpush1.bf16.msra.mxu1 %v4065_v10  ;;  %v4321_v5 = vld [vmem:[%s3973_s27 + $0x150] sm:$0xff]  ;;  %v4330_v9 = vld [vmem:[%s3973_s27 + $0x158] sm:$0xff]  ;;  %v4339_v12 = vld [vmem:[%s3973_s27 + $0x160] sm:$0xff] }
  0x9e   : > { %3439 = vmatprep.subr.bf16.mxu1 %v4081_v16  ;;  %3405 = vmatpush1.bf16.msra.mxu0 %v4007_v39  ;;  %v4348_v14 = vld [vmem:[%s3973_s27 + $0x168] sm:$0xff]  ;;  %v4357_v17 = vld [vmem:[%s3973_s27 + $0x170] sm:$0xff]  ;;  %v4366_v19 = vld [vmem:[%s3973_s27 + $0x178] sm:$0xff] }
  0x9f   : > { %3219 = vmatmul.mubr.msk.f32.gmra.mrb[6].mxu0 %vm348_vm0, %v4074_v11  ;;  %3407 = vmatprep.subr.bf16.mxu0 %v4010_v44 }
  0xa0   : > { %3285 = vmatmul.mubr.msk.f32.gmra.mrb[6].mxu1 %vm348_vm0, %v4078_v15  ;;  %581 = vmatprep.mubr.f32.mxu0 %v3753_v0 }
  0xa1   : > { %1149 = vmatprep.mubr.f32.mxu1 %v3753_v0  ;;  %3441 = vmatpush1.bf16.msra.mxu1 %v4083_v20 }
  0xa2   : > { %3409 = vmatpush1.bf16.msra.mxu0 %v4013_v50 }
  0xa3   : > { %3220 = vmatmul.mubr.msk.f32.gmra.mrb[8].mxu0 %vm348_vm0, %v4093_v21  ;;  %3411 = vmatprep.subr.bf16.mxu0 %v3993_v8  ;;  %v4134_v8 = vld [vmem:[%s3973_s27 + $0x38] sm:$0xff] }
  0xa4   : > { %3286 = vmatmul.mubr.msk.f32.gmra.mrb[8].mxu1 %vm348_vm0, %v4097_v22  ;;  %587 = vmatprep.mubr.f32.mxu0 %v3753_v0 }
  0xa5   : > { %1155 = vmatprep.mubr.f32.mxu1 %v3753_v0 }
  0xa7   : > { %3221 = vmatmul.mubr.msk.f32.gmra.mrb[10].mxu0 %vm348_vm0, %v4108_v23 }
  0xa8   : > { %3287 = vmatmul.mubr.msk.f32.gmra.mrb[10].mxu1 %vm348_vm0, %v4112_v24  ;;  %593 = vmatprep.mubr.f32.mxu0 %v3753_v0 }
  0xa9   : > { %1161 = vmatprep.mubr.f32.mxu1 %v3753_v0 }
  0xab   : > { %3222 = vmatmul.mubr.msk.f32.gmra.mrb[12].mxu0 %vm348_vm0, %v4122_v25 }
  0xac   : > { %3288 = vmatmul.mubr.msk.f32.gmra.mrb[12].mxu1 %vm348_vm0, %v4126_v27  ;;  %599 = vmatprep.mubr.f32.mxu0 %v3753_v0 }
  0xad   : > { %1167 = vmatprep.mubr.f32.mxu1 %v3753_v0 }
  0xaf   : > { %3223 = vmatmul.mubr.msk.f32.gmra.mrb[14].mxu0 %vm348_vm0, %v4134_v8 }
  0xb0   : > { %3289 = vmatmul.mubr.msk.f32.gmra.mrb[14].mxu1 %vm348_vm0, %v4138_v28  ;;  %605 = vmatprep.mubr.f32.mxu0 %v3753_v0 }
  0xb1   : > { %1173 = vmatprep.mubr.f32.mxu1 %v3753_v0 }
  0xb3   : > { %3224 = vmatmul.mubr.msk.f32.gmra.mrb[16].mxu0 %vm348_vm0, %v4146_v29 }
  0xb4   : > { %3290 = vmatmul.mubr.msk.f32.gmra.mrb[16].mxu1 %vm348_vm0, %v4150_v30  ;;  %611 = vmatprep.mubr.f32.mxu0 %v3753_v0 }
  0xb5   : > { %1179 = vmatprep.mubr.f32.mxu1 %v3753_v0 }
  0xb7   : > { %3225 = vmatmul.mubr.msk.f32.gmra.mrb[18].mxu0 %vm348_vm0, %v4158_v32 }
  0xb8   : > { %3291 = vmatmul.mubr.msk.f32.gmra.mrb[18].mxu1 %vm348_vm0, %v4162_v33  ;;  %617 = vmatprep.mubr.f32.mxu0 %v3753_v0 }
  0xb9   : > { %1185 = vmatprep.mubr.f32.mxu1 %v3753_v0 }
  0xbb   : > { %3226 = vmatmul.mubr.msk.f32.gmra.mrb[20].mxu0 %vm348_vm0, %v4170_v34 }
  0xbc   : > { %3292 = vmatmul.mubr.msk.f32.gmra.mrb[20].mxu1 %vm348_vm0, %v4174_v35  ;;  %623 = vmatprep.mubr.f32.mxu0 %v3753_v0 }
  0xbd   : > { %1191 = vmatprep.mubr.f32.mxu1 %v3753_v0 }
  0xbf   : > { %3227 = vmatmul.mubr.msk.f32.gmra.mrb[22].mxu0 %vm348_vm0, %v4182_v36 }
  0xc0   : > { %3293 = vmatmul.mubr.msk.f32.gmra.mrb[22].mxu1 %vm348_vm0, %v4186_v37  ;;  %629 = vmatprep.mubr.f32.mxu0 %v3753_v0 }
  0xc1   : > { %1197 = vmatprep.mubr.f32.mxu1 %v3753_v0 }
  0xc3   : > { %3228 = vmatmul.mubr.msk.f32.gmra.mrb[24].mxu0 %vm348_vm0, %v4194_v38 }
  0xc4   : > { %3294 = vmatmul.mubr.msk.f32.gmra.mrb[24].mxu1 %vm348_vm0, %v4198_v40  ;;  %635 = vmatprep.mubr.f32.mxu0 %v3753_v0 }
  0xc5   : > { %1203 = vmatprep.mubr.f32.mxu1 %v3753_v0 }
  0xc7   : > { %3229 = vmatmul.mubr.msk.f32.gmra.mrb[26].mxu0 %vm348_vm0, %v4206_v41 }
  0xc8   : > { %3295 = vmatmul.mubr.msk.f32.gmra.mrb[26].mxu1 %vm348_vm0, %v4210_v42  ;;  %641 = vmatprep.mubr.f32.mxu0 %v3753_v0 }
  0xc9   : > { %1209 = vmatprep.mubr.f32.mxu1 %v3753_v0 }
  0xcb   : > { %3230 = vmatmul.mubr.msk.f32.gmra.mrb[28].mxu0 %vm348_vm0, %v4218_v43 }
  0xcc   : > { %3296 = vmatmul.mubr.msk.f32.gmra.mrb[28].mxu1 %vm348_vm0, %v4222_v45  ;;  %647 = vmatprep.mubr.f32.mxu0 %v3753_v0 }
  0xcd   : > { %1215 = vmatprep.mubr.f32.mxu1 %v3753_v0 }
  0xcf   : > { %3231 = vmatmul.mubr.msk.f32.gmra.mrb[30].mxu0 %vm348_vm0, %v4230_v46 }
  0xd0   : > { %3297 = vmatmul.mubr.msk.f32.gmra.mrb[30].mxu1 %vm348_vm0, %v4234_v47  ;;  %653 = vmatprep.mubr.f32.mxu0 %v3753_v0 }
  0xd1   : > { %1221 = vmatprep.mubr.f32.mxu1 %v3753_v0 }
  0xd3   : > { %3232 = vmatmul.mubr.msk.f32.gmra.mrb[32].mxu0 %vm348_vm0, %v4242_v48 }
  0xd4   : > { %3298 = vmatmul.mubr.msk.f32.gmra.mrb[32].mxu1 %vm348_vm0, %v4246_v49  ;;  %659 = vmatprep.mubr.f32.mxu0 %v3753_v0 }
  0xd5   : > { %1227 = vmatprep.mubr.f32.mxu1 %v3753_v0 }
  0xd7   : > { %3233 = vmatmul.mubr.msk.f32.gmra.mrb[34].mxu0 %vm348_vm0, %v4254_v52 }
  0xd8   : > { %3299 = vmatmul.mubr.msk.f32.gmra.mrb[34].mxu1 %vm348_vm0, %v4258_v53  ;;  %665 = vmatprep.mubr.f32.mxu0 %v3753_v0 }
  0xd9   : > { %1233 = vmatprep.mubr.f32.mxu1 %v3753_v0 }
  0xdb   : > { %3234 = vmatmul.mubr.msk.f32.gmra.mrb[36].mxu0 %vm348_vm0, %v4023_v55 }
  0xdc   : > { %3300 = vmatmul.mubr.msk.f32.gmra.mrb[36].mxu1 %vm348_vm0, %v4267_v57  ;;  %671 = vmatprep.mubr.f32.mxu0 %v3753_v0 }
  0xdd   : > { %1239 = vmatprep.mubr.f32.mxu1 %v3753_v0 }
  0xdf   : > { %3235 = vmatmul.mubr.msk.f32.gmra.mrb[38].mxu0 %vm348_vm0, %v4042_v63 }
  0xe0   : > { %3301 = vmatmul.mubr.msk.f32.gmra.mrb[38].mxu1 %vm348_vm0, %v4276_v58  ;;  %677 = vmatprep.mubr.f32.mxu0 %v3753_v0 }
  0xe1   : > { %1245 = vmatprep.mubr.f32.mxu1 %v3753_v0 }
  0xe3   : > { %3236 = vmatmul.mubr.msk.f32.gmra.mrb[40].mxu0 %vm348_vm0, %v4059_v6 }
  0xe4   : > { %3302 = vmatmul.mubr.msk.f32.gmra.mrb[40].mxu1 %vm348_vm0, %v4285_v60  ;;  %683 = vmatprep.mubr.f32.mxu0 %v3753_v0 }
  0xe5   : > { %1251 = vmatprep.mubr.f32.mxu1 %v3753_v0 }
  0xe7   : > { %3237 = vmatmul.mubr.msk.f32.gmra.mrb[42].mxu0 %vm348_vm0, %v4078_v15 }
  0xe8   : > { %3303 = vmatmul.mubr.msk.f32.gmra.mrb[42].mxu1 %vm348_vm0, %v4294_v61  ;;  %689 = vmatprep.mubr.f32.mxu0 %v3753_v0 }
  0xe9   : > { %1257 = vmatprep.mubr.f32.mxu1 %v3753_v0 }
  0xeb   : > { %3238 = vmatmul.mubr.msk.f32.gmra.mrb[44].mxu0 %vm348_vm0, %v4097_v22 }
  0xec   : > { %3304 = vmatmul.mubr.msk.f32.gmra.mrb[44].mxu1 %vm348_vm0, %v4303_v3  ;;  %695 = vmatprep.mubr.f32.mxu0 %v3753_v0 }
  0xed   : > { %1263 = vmatprep.mubr.f32.mxu1 %v3753_v0 }
  0xef   : > { %3239 = vmatmul.mubr.msk.f32.gmra.mrb[46].mxu0 %vm348_vm0, %v4112_v24 }
  0xf0   : > { %3305 = vmatmul.mubr.msk.f32.gmra.mrb[46].mxu1 %vm348_vm0, %v4312_v4  ;;  %701 = vmatprep.mubr.f32.mxu0 %v3753_v0 }
  0xf1   : > { %1269 = vmatprep.mubr.f32.mxu1 %v3753_v0 }
  0xf3   : > { %3240 = vmatmul.mubr.msk.f32.gmra.mrb[48].mxu0 %vm348_vm0, %v4126_v27 }
  0xf4   : > { %3306 = vmatmul.mubr.msk.f32.gmra.mrb[48].mxu1 %vm348_vm0, %v4321_v5  ;;  %707 = vmatprep.mubr.f32.mxu0 %v3753_v0 }
  0xf5   : > { %1275 = vmatprep.mubr.f32.mxu1 %v3753_v0 }
  0xf7   : > { %3241 = vmatmul.mubr.msk.f32.gmra.mrb[50].mxu0 %vm348_vm0, %v4138_v28 }
  0xf8   : > { %3307 = vmatmul.mubr.msk.f32.gmra.mrb[50].mxu1 %vm348_vm0, %v4330_v9  ;;  %713 = vmatprep.mubr.f32.mxu0 %v3753_v0 }
  0xf9   : > { %1281 = vmatprep.mubr.f32.mxu1 %v3753_v0 }
  0xfb   : > { %3242 = vmatmul.mubr.msk.f32.gmra.mrb[52].mxu0 %vm348_vm0, %v4150_v30 }
  0xfc   : > { %3308 = vmatmul.mubr.msk.f32.gmra.mrb[52].mxu1 %vm348_vm0, %v4339_v12  ;;  %719 = vmatprep.mubr.f32.mxu0 %v3753_v0 }
  0xfd   : > { %1287 = vmatprep.mubr.f32.mxu1 %v3753_v0 }
  0xff   : > { %3243 = vmatmul.mubr.msk.f32.gmra.mrb[54].mxu0 %vm348_vm0, %v4162_v33 }
 0x100   : > { %3309 = vmatmul.mubr.msk.f32.gmra.mrb[54].mxu1 %vm348_vm0, %v4348_v14  ;;  %725 = vmatprep.mubr.f32.mxu0 %v3753_v0 }
 0x101   : > { %1293 = vmatprep.mubr.f32.mxu1 %v3753_v0 }
 0x103   : > { %3244 = vmatmul.mubr.msk.f32.gmra.mrb[56].mxu0 %vm348_vm0, %v4174_v35 }
 0x104   : > { %3310 = vmatmul.mubr.msk.f32.gmra.mrb[56].mxu1 %vm348_vm0, %v4357_v17  ;;  %731 = vmatprep.mubr.f32.mxu0 %v3753_v0 }
 0x105   : > { %1299 = vmatprep.mubr.f32.mxu1 %v3753_v0 }
 0x107   : > { %3245 = vmatmul.mubr.msk.f32.gmra.mrb[58].mxu0 %vm348_vm0, %v4186_v37 }
 0x108   : > { %3311 = vmatmul.mubr.msk.f32.gmra.mrb[58].mxu1 %vm348_vm0, %v4366_v19  ;;  %737 = vmatprep.mubr.f32.mxu0 %v3753_v0 }
 0x109   : > { %1789 = vmatprep.mubr.f32.mxu1 %v3753_v0 }
 0x10b   : > { %3246 = vmatmul.mubr.msk.f32.gmra.mrb[60].mxu0 %vm348_vm0, %v4198_v40 }
 0x10c   : > { %3318 = vmatmul.mubr.msk.f32.vlgmr.msra.gmra.mrb[60].mxu1 %vm348_vm0, %v4019_v54  ;;  %743 = vmatprep.mubr.f32.mxu0 %v3753_v0 }
 0x10d   : > { %1793 = vmatprep.mubr.f32.mxu1 %v3753_v0 }
 0x10f   : > { %3247 = vmatmul.mubr.msk.f32.gmra.mrb[62].mxu0 %vm348_vm0, %v4210_v42 }
 0x110   : > { %3319 = vmatmul.mubr.msk.f32.gmra.mrb[62].mxu1 %vm348_vm0, %v4037_v62  ;;  %749 = vmatprep.mubr.f32.mxu0 %v3753_v0 }
 0x111   : > { %1797 = vmatprep.mubr.f32.mxu1 %v3753_v0 }
 0x113   : > { %3248 = vmatmul.mubr.msk.f32.gmra.mrb[64].mxu0 %vm348_vm0, %v4222_v45 }
 0x114   : > { %3320 = vmatmul.mubr.msk.f32.gmra.mrb[64].mxu1 %vm348_vm0, %v4051_v2  ;;  %755 = vmatprep.mubr.f32.mxu0 %v3753_v0 }
 0x115   : > { %1801 = vmatprep.mubr.f32.mxu1 %v3753_v0 }
 0x117   : > { %3249 = vmatmul.mubr.msk.f32.gmra.mrb[66].mxu0 %vm348_vm0, %v4234_v47 }
 0x118   : > { %3321 = vmatmul.mubr.msk.f32.gmra.mrb[66].mxu1 %vm348_vm0, %v4074_v11  ;;  %761 = vmatprep.mubr.f32.mxu0 %v3753_v0 }
 0x119   : > { %1805 = vmatprep.mubr.f32.mxu1 %v3753_v0 }
 0x11b   : > { %3250 = vmatmul.mubr.msk.f32.gmra.mrb[68].mxu0 %vm348_vm0, %v4246_v49 }
 0x11c   : > { %3322 = vmatmul.mubr.msk.f32.gmra.mrb[68].mxu1 %vm348_vm0, %v4093_v21  ;;  %767 = vmatprep.mubr.f32.mxu0 %v3753_v0 }
 0x11d   : > { %1809 = vmatprep.mubr.f32.mxu1 %v3753_v0 }
 0x11f   : > { %3251 = vmatmul.mubr.msk.f32.gmra.mrb[70].mxu0 %vm348_vm0, %v4258_v53 }
 0x120   : > { %3323 = vmatmul.mubr.msk.f32.gmra.mrb[70].mxu1 %vm348_vm0, %v4108_v23  ;;  %773 = vmatprep.mubr.f32.mxu0 %v3753_v0 }
 0x121   : > { %1813 = vmatprep.mubr.f32.mxu1 %v3753_v0 }
 0x123   : > { %3252 = vmatmul.mubr.msk.f32.gmra.mrb[72].mxu0 %vm348_vm0, %v4267_v57 }
 0x124   : > { %3324 = vmatmul.mubr.msk.f32.gmra.mrb[72].mxu1 %vm348_vm0, %v4122_v25  ;;  %779 = vmatprep.mubr.f32.mxu0 %v3753_v0 }
 0x125   : > { %1819 = vmatprep.mubr.f32.mxu1 %v3753_v0 }
 0x127   : > { %3253 = vmatmul.mubr.msk.f32.gmra.mrb[74].mxu0 %vm348_vm0, %v4276_v58 }
 0x128   : > { %3325 = vmatmul.mubr.msk.f32.gmra.mrb[74].mxu1 %vm348_vm0, %v4134_v8  ;;  %785 = vmatprep.mubr.f32.mxu0 %v3753_v0 }
 0x129   : > { %1825 = vmatprep.mubr.f32.mxu1 %v3753_v0 }
 0x12b   : > { %3254 = vmatmul.mubr.msk.f32.gmra.mrb[76].mxu0 %vm348_vm0, %v4285_v60 }
 0x12c   : > { %3326 = vmatmul.mubr.msk.f32.gmra.mrb[76].mxu1 %vm348_vm0, %v4146_v29  ;;  %791 = vmatprep.mubr.f32.mxu0 %v3753_v0 }
 0x12d   : > { %1831 = vmatprep.mubr.f32.mxu1 %v3753_v0 }
 0x12f   : > { %3255 = vmatmul.mubr.msk.f32.gmra.mrb[78].mxu0 %vm348_vm0, %v4294_v61 }
 0x130   : > { %3327 = vmatmul.mubr.msk.f32.gmra.mrb[78].mxu1 %vm348_vm0, %v4158_v32  ;;  %797 = vmatprep.mubr.f32.mxu0 %v3753_v0 }
 0x131   : > { %1837 = vmatprep.mubr.f32.mxu1 %v3753_v0 }
 0x133   : > { %3256 = vmatmul.mubr.msk.f32.gmra.mrb[80].mxu0 %vm348_vm0, %v4303_v3 }
 0x134   : > { %3328 = vmatmul.mubr.msk.f32.gmra.mrb[80].mxu1 %vm348_vm0, %v4170_v34  ;;  %803 = vmatprep.mubr.f32.mxu0 %v3753_v0 }
 0x135   : > { %1843 = vmatprep.mubr.f32.mxu1 %v3753_v0 }
 0x137   : > { %3257 = vmatmul.mubr.msk.f32.gmra.mrb[82].mxu0 %vm348_vm0, %v4312_v4 }
 0x138   : > { %3329 = vmatmul.mubr.msk.f32.gmra.mrb[82].mxu1 %vm348_vm0, %v4182_v36  ;;  %809 = vmatprep.mubr.f32.mxu0 %v3753_v0 }
 0x139   : > { %1849 = vmatprep.mubr.f32.mxu1 %v3753_v0 }
 0x13b   : > { %3258 = vmatmul.mubr.msk.f32.gmra.mrb[84].mxu0 %vm348_vm0, %v4321_v5 }
 0x13c   : > { %3330 = vmatmul.mubr.msk.f32.gmra.mrb[84].mxu1 %vm348_vm0, %v4194_v38  ;;  %815 = vmatprep.mubr.f32.mxu0 %v3753_v0 }
 0x13d   : > { %1855 = vmatprep.mubr.f32.mxu1 %v3753_v0 }
 0x13f   : > { %3259 = vmatmul.mubr.msk.f32.gmra.mrb[86].mxu0 %vm348_vm0, %v4330_v9 }
 0x140   : > { %3331 = vmatmul.mubr.msk.f32.gmra.mrb[86].mxu1 %vm348_vm0, %v4206_v41  ;;  %821 = vmatprep.mubr.f32.mxu0 %v3753_v0 }
 0x141   : > { %1861 = vmatprep.mubr.f32.mxu1 %v3753_v0 }
 0x143   : > { %3260 = vmatmul.mubr.msk.f32.gmra.mrb[88].mxu0 %vm348_vm0, %v4339_v12 }
 0x144   : > { %3332 = vmatmul.mubr.msk.f32.gmra.mrb[88].mxu1 %vm348_vm0, %v4218_v43  ;;  %827 = vmatprep.mubr.f32.mxu0 %v3753_v0 }
 0x145   : > { %1867 = vmatprep.mubr.f32.mxu1 %v3753_v0 }
 0x147   : > { %3261 = vmatmul.mubr.msk.f32.gmra.mrb[90].mxu0 %vm348_vm0, %v4348_v14 }
 0x148   : > { %3333 = vmatmul.mubr.msk.f32.gmra.mrb[90].mxu1 %vm348_vm0, %v4230_v46  ;;  %833 = vmatprep.mubr.f32.mxu0 %v3753_v0 }
 0x149   : > { %1873 = vmatprep.mubr.f32.mxu1 %v3753_v0 }
 0x14b   : > { %3262 = vmatmul.mubr.msk.f32.gmra.mrb[92].mxu0 %vm348_vm0, %v4357_v17 }
 0x14c   : > { %3334 = vmatmul.mubr.msk.f32.gmra.mrb[92].mxu1 %vm348_vm0, %v4242_v48  ;;  %839 = vmatprep.mubr.f32.mxu0 %v3753_v0 }
 0x14d   : > { %1879 = vmatprep.mubr.f32.mxu1 %v3753_v0 }
 0x14f   : > { %3263 = vmatmul.mubr.msk.f32.gmra.mrb[94].mxu0 %vm348_vm0, %v4366_v19 }
 0x150   : > { %3335 = vmatmul.mubr.msk.f32.gmra.mrb[94].mxu1 %vm348_vm0, %v4254_v52  ;;  %1023 = vmatprep.mubr.f32.mxu0 %v3753_v0 }
 0x151   : > { %1885 = vmatprep.mubr.f32.mxu1 %v3753_v0 }
 0x153   : > { %3264 = vmatmul.mubr.msk.f32.vlgmr.msra.gmra.mrb[96].mxu0 %vm348_vm0, %v4019_v54 }
 0x154   : > { %3336 = vmatmul.mubr.msk.f32.gmra.mrb[96].mxu1 %vm348_vm0, %v4023_v55  ;;  %1027 = vmatprep.mubr.f32.mxu0 %v3753_v0 }
 0x155   : > { %1891 = vmatprep.mubr.f32.mxu1 %v3753_v0  ;;  %3413 = vmatpush1.bf16.msra.mxu0 %v3995_v13 }
 0x156   : > { %3415 = vmatprep.subr.bf16.mxu0 %v3998_v18 }
 0x157   : > { %3265 = vmatmul.mubr.msk.f32.gmra.mrb[98].mxu0 %vm348_vm0, %v4037_v62 }
 0x158   : > { %3337 = vmatmul.mubr.msk.f32.gmra.mrb[98].mxu1 %vm348_vm0, %v4042_v63  ;;  %1031 = vmatprep.mubr.f32.mxu0 %v3753_v0 }
 0x159   : > { %1897 = vmatprep.mubr.f32.mxu1 %v3753_v0  ;;  %3417 = vmatpush1.bf16.msra.mxu0 %v4002_v26 }
 0x15a   : > { %3419 = vmatprep.subr.bf16.mxu0 %v4004_v31 }
 0x15b   : > { %3266 = vmatmul.mubr.msk.f32.gmra.mrb[100].mxu0 %vm348_vm0, %v4051_v2 }
 0x15c   : > { %3338 = vmatmul.mubr.msk.f32.gmra.mrb[100].mxu1 %vm348_vm0, %v4059_v6  ;;  %1035 = vmatprep.mubr.f32.mxu0 %v3753_v0 }
 0x15d   : > { %1903 = vmatprep.mubr.f32.mxu1 %v3753_v0  ;;  %3421 = vmatpush1.bf16.msra.mxu0 %v4007_v39 }
 0x15e   : > { %3423 = vmatprep.subr.bf16.mxu0 %v4010_v44 }
 0x15f   : > { %3267 = vmatmul.mubr.msk.f32.gmra.mrb[102].mxu0 %vm348_vm0, %v4074_v11 }
 0x160   : > { %3339 = vmatmul.mubr.msk.f32.gmra.mrb[102].mxu1 %vm348_vm0, %v4078_v15  ;;  %1041 = vmatprep.mubr.f32.mxu0 %v3753_v0 }
 0x161   : > { %1909 = vmatprep.mubr.f32.mxu1 %v3753_v0  ;;  %3425 = vmatpush1.bf16.msra.mxu0 %v4013_v50 }
 0x162   : > { %3443 = vmatprep.subr.bf16.mxu0 %v4016_v51 }
 0x163   : > { %3268 = vmatmul.mubr.msk.f32.gmra.mrb[104].mxu0 %vm348_vm0, %v4093_v21 }
 0x164   : > { %3340 = vmatmul.mubr.msk.f32.gmra.mrb[104].mxu1 %vm348_vm0, %v4097_v22  ;;  %1047 = vmatprep.mubr.f32.mxu0 %v3753_v0 }
 0x165   : > { %1915 = vmatprep.mubr.f32.mxu1 %v3753_v0 }
 0x166   : > { %v559_v13 = vpop.f32.mrb[0].mxu0 }
 0x167   : > { %v4520_v18 = vpop.f32.mrb[0].mxu1  ;;  %3269 = vmatmul.mubr.msk.f32.gmra.mrb[106].mxu0 %vm348_vm0, %v4108_v23  ;;  %846 = vst [vmem:[#allocation2] sm:$0xff] %v559_v13  ;;  %v561_v26 = vpop.f32.mrb[1].mxu0 }
 0x168   : > { %v4524_v31 = vpop.f32.mrb[1].mxu1  ;;  %3341 = vmatmul.mubr.msk.f32.gmra.mrb[106].mxu1 %vm348_vm0, %v4112_v24  ;;  %1053 = vmatprep.mubr.f32.mxu0 %v3753_v0  ;;  %847 = vst.msk [vmem:[#allocation2 + $0x8] sm:$0xff] %vm348_vm0, %v561_v26 }
 0x169   : > { %1921 = vmatprep.mubr.f32.mxu1 %v3753_v0 }
 0x16a   : > { %v565_v39 = vpop.f32.mrb[2].mxu0 }
 0x16b   : > { %v4531_v44 = vpop.f32.mrb[2].mxu1  ;;  %3270 = vmatmul.mubr.msk.f32.gmra.mrb[108].mxu0 %vm348_vm0, %v4122_v25  ;;  %848 = vst [vmem:[#allocation2 + $0x10] sm:$0xff] %v565_v39  ;;  %v567_v50 = vpop.f32.mrb[3].mxu0 }
 0x16c   : > { %v4535_v51 = vpop.f32.mrb[3].mxu1  ;;  %3342 = vmatmul.mubr.msk.f32.gmra.mrb[108].mxu1 %vm348_vm0, %v4126_v27  ;;  %1059 = vmatprep.mubr.f32.mxu0 %v3753_v0  ;;  %849 = vst.msk [vmem:[#allocation2 + $0x18] sm:$0xff] %vm348_vm0, %v567_v50 }
 0x16d   : > { %1927 = vmatprep.mubr.f32.mxu1 %v3753_v0 }
 0x16e   : > { %v571_v54 = vpop.f32.mrb[4].mxu0 }
 0x16f   : > { %v4542_v55 = vpop.f32.mrb[4].mxu1  ;;  %3271 = vmatmul.mubr.msk.f32.gmra.mrb[110].mxu0 %vm348_vm0, %v4134_v8  ;;  %850 = vst [vmem:[#allocation2 + $0x20] sm:$0xff] %v571_v54  ;;  %v573_v62 = vpop.f32.mrb[5].mxu0 }
 0x170   : > { %v4546_v63 = vpop.f32.mrb[5].mxu1  ;;  %3343 = vmatmul.mubr.msk.f32.gmra.mrb[110].mxu1 %vm348_vm0, %v4138_v28  ;;  %1065 = vmatprep.mubr.f32.mxu0 %v3753_v0  ;;  %851 = vst.msk [vmem:[#allocation2 + $0x28] sm:$0xff] %vm348_vm0, %v573_v62 }
 0x171   : > { %1933 = vmatprep.mubr.f32.mxu1 %v3753_v0 }
 0x172   : > { %v577_v2 = vpop.f32.mrb[6].mxu0 }
 0x173   : > { %v4553_v6 = vpop.f32.mrb[6].mxu1  ;;  %3272 = vmatmul.mubr.msk.f32.gmra.mrb[112].mxu0 %vm348_vm0, %v4146_v29  ;;  %852 = vst [vmem:[#allocation2 + $0x30] sm:$0xff] %v577_v2  ;;  %v579_v11 = vpop.f32.mrb[7].mxu0 }
 0x174   : > { %v4557_v15 = vpop.f32.mrb[7].mxu1  ;;  %3344 = vmatmul.mubr.msk.f32.gmra.mrb[112].mxu1 %vm348_vm0, %v4150_v30  ;;  %1071 = vmatprep.mubr.f32.mxu0 %v3753_v0  ;;  %853 = vst.msk [vmem:[#allocation2 + $0x38] sm:$0xff] %vm348_vm0, %v579_v11 }
 0x175   : > { %1939 = vmatprep.mubr.f32.mxu1 %v3753_v0 }
 0x176   : > { %v583_v21 = vpop.f32.mrb[8].mxu0 }
 0x177   : > { %v4564_v22 = vpop.f32.mrb[8].mxu1  ;;  %3273 = vmatmul.mubr.msk.f32.gmra.mrb[114].mxu0 %vm348_vm0, %v4158_v32  ;;  %854 = vst [vmem:[#allocation2 + $0x40] sm:$0xff] %v583_v21  ;;  %v585_v23 = vpop.f32.mrb[9].mxu0 }
 0x178   : > { %v4568_v24 = vpop.f32.mrb[9].mxu1  ;;  %3345 = vmatmul.mubr.msk.f32.gmra.mrb[114].mxu1 %vm348_vm0, %v4162_v33  ;;  %1077 = vmatprep.mubr.f32.mxu0 %v3753_v0  ;;  %855 = vst.msk [vmem:[#allocation2 + $0x48] sm:$0xff] %vm348_vm0, %v585_v23 }
 0x179   : > { %1945 = vmatprep.mubr.f32.mxu1 %v3753_v0 }
 0x17a   : > { %v589_v25 = vpop.f32.mrb[10].mxu0 }
 0x17b   : > { %v4575_v27 = vpop.f32.mrb[10].mxu1  ;;  %3274 = vmatmul.mubr.msk.f32.gmra.mrb[116].mxu0 %vm348_vm0, %v4170_v34  ;;  %856 = vst [vmem:[#allocation2 + $0x50] sm:$0xff] %v589_v25  ;;  %v591_v8 = vpop.f32.mrb[11].mxu0 }
 0x17c   : > { %v4579_v28 = vpop.f32.mrb[11].mxu1  ;;  %3346 = vmatmul.mubr.msk.f32.gmra.mrb[116].mxu1 %vm348_vm0, %v4174_v35  ;;  %1083 = vmatprep.mubr.f32.mxu0 %v3753_v0  ;;  %857 = vst.msk [vmem:[#allocation2 + $0x58] sm:$0xff] %vm348_vm0, %v591_v8 }
 0x17d   : > { %1951 = vmatprep.mubr.f32.mxu1 %v3753_v0 }
 0x17e   : > { %v595_v29 = vpop.f32.mrb[12].mxu0 }
 0x17f   : > { %v4586_v30 = vpop.f32.mrb[12].mxu1  ;;  %3275 = vmatmul.mubr.msk.f32.gmra.mrb[118].mxu0 %vm348_vm0, %v4182_v36  ;;  %858 = vst [vmem:[#allocation2 + $0x60] sm:$0xff] %v595_v29  ;;  %v597_v32 = vpop.f32.mrb[13].mxu0 }
 0x180   : > { %v4590_v33 = vpop.f32.mrb[13].mxu1  ;;  %3347 = vmatmul.mubr.msk.f32.gmra.mrb[118].mxu1 %vm348_vm0, %v4186_v37  ;;  %1089 = vmatprep.mubr.f32.mxu0 %v3753_v0  ;;  %859 = vst.msk [vmem:[#allocation2 + $0x68] sm:$0xff] %vm348_vm0, %v597_v32 }
 0x181   : > { %1957 = vmatprep.mubr.f32.mxu1 %v3753_v0 }
 0x182   : > { %v601_v34 = vpop.f32.mrb[14].mxu0 }
 0x183   : > { %v4597_v35 = vpop.f32.mrb[14].mxu1  ;;  %3276 = vmatmul.mubr.msk.f32.gmra.mrb[120].mxu0 %vm348_vm0, %v4194_v38  ;;  %860 = vst [vmem:[#allocation2 + $0x70] sm:$0xff] %v601_v34  ;;  %v603_v36 = vpop.f32.mrb[15].mxu0 }
 0x184   : > { %v4601_v13 = vpop.f32.mrb[15].mxu1  ;;  %3348 = vmatmul.mubr.msk.f32.gmra.mrb[120].mxu1 %vm348_vm0, %v4198_v40  ;;  %1095 = vmatprep.mubr.f32.mxu0 %v3753_v0  ;;  %861 = vst.msk [vmem:[#allocation2 + $0x78] sm:$0xff] %vm348_vm0, %v603_v36 }
 0x185   : > { %1963 = vmatprep.mubr.f32.mxu1 %v3753_v0 }
 0x186   : > { %v607_v37 = vpop.f32.mrb[16].mxu0 }
 0x187   : > { %v4608_v26 = vpop.f32.mrb[16].mxu1  ;;  %3277 = vmatmul.mubr.msk.f32.gmra.mrb[122].mxu0 %vm348_vm0, %v4206_v41  ;;  %862 = vst [vmem:[#allocation2 + $0x80] sm:$0xff] %v607_v37  ;;  %v609_v38 = vpop.f32.mrb[17].mxu0 }
 0x188   : > { %v4612_v39 = vpop.f32.mrb[17].mxu1  ;;  %3349 = vmatmul.mubr.msk.f32.gmra.mrb[122].mxu1 %vm348_vm0, %v4210_v42  ;;  %1101 = vmatprep.mubr.f32.mxu0 %v3753_v0  ;;  %863 = vst.msk [vmem:[#allocation2 + $0x88] sm:$0xff] %vm348_vm0, %v609_v38 }
 0x189   : > { %1969 = vmatprep.mubr.f32.mxu1 %v3753_v0 }
 0x18a   : > { %v613_v40 = vpop.f32.mrb[18].mxu0 }
 0x18b   : > { %v4619_v50 = vpop.f32.mrb[18].mxu1  ;;  %3278 = vmatmul.mubr.msk.f32.gmra.mrb[124].mxu0 %vm348_vm0, %v4218_v43  ;;  %864 = vst [vmem:[#allocation2 + $0x90] sm:$0xff] %v613_v40  ;;  %v615_v41 = vpop.f32.mrb[19].mxu0 }
 0x18c   : > { %v4623_v54 = vpop.f32.mrb[19].mxu1  ;;  %3350 = vmatmul.mubr.msk.f32.gmra.mrb[124].mxu1 %vm348_vm0, %v4222_v45  ;;  %1107 = vmatprep.mubr.f32.mxu0 %v3753_v0  ;;  %865 = vst.msk [vmem:[#allocation2 + $0x98] sm:$0xff] %vm348_vm0, %v615_v41 }
 0x18d   : > { %1975 = vmatprep.mubr.f32.mxu1 %v3753_v0 }
 0x18e   : > { %v619_v42 = vpop.f32.mrb[20].mxu0 }
 0x18f   : > { %v4630_v62 = vpop.f32.mrb[20].mxu1  ;;  %3279 = vmatmul.mubr.msk.f32.gmra.mrb[126].mxu0 %vm348_vm0, %v4230_v46  ;;  %866 = vst [vmem:[#allocation2 + $0xa0] sm:$0xff] %v619_v42  ;;  %v621_v43 = vpop.f32.mrb[21].mxu0 }
 0x190   : > { %v4634_v2 = vpop.f32.mrb[21].mxu1  ;;  %3351 = vmatmul.mubr.msk.f32.gmra.mrb[126].mxu1 %vm348_vm0, %v4234_v47  ;;  %1113 = vmatprep.mubr.f32.mxu0 %v3753_v0  ;;  %867 = vst.msk [vmem:[#allocation2 + $0xa8] sm:$0xff] %vm348_vm0, %v621_v43 }
 0x191   : > { %1981 = vmatprep.mubr.f32.mxu1 %v3753_v0 }
 0x192   : > { %v625_v45 = vpop.f32.mrb[22].mxu0 }
 0x193   : > { %v4641_v11 = vpop.f32.mrb[22].mxu1  ;;  %3280 = vmatmul.mubr.msk.f32.gmra.mrb[128].mxu0 %vm348_vm0, %v4242_v48  ;;  %868 = vst [vmem:[#allocation2 + $0xb0] sm:$0xff] %v625_v45  ;;  %v627_v46 = vpop.f32.mrb[23].mxu0 }
 0x194   : > { %v4645_v21 = vpop.f32.mrb[23].mxu1  ;;  %3352 = vmatmul.mubr.msk.f32.gmra.mrb[128].mxu1 %vm348_vm0, %v4246_v49  ;;  %1119 = vmatprep.mubr.f32.mxu0 %v3753_v0  ;;  %869 = vst.msk [vmem:[#allocation2 + $0xb8] sm:$0xff] %vm348_vm0, %v627_v46  ;;  %v4663_v49 = vld [vmem:[%s3981_s5] sm:$0xff] }
 0x195   : > { %1987 = vmatprep.mubr.f32.mxu1 %v3753_v0 }
 0x196   : > { %v631_v47 = vpop.f32.mrb[24].mxu0 }
 0x197   : > { %v4652_v23 = vpop.f32.mrb[24].mxu1  ;;  %3281 = vmatmul.mubr.msk.f32.gmra.mrb[130].mxu0 %vm348_vm0, %v4254_v52  ;;  %870 = vst [vmem:[#allocation2 + $0xc0] sm:$0xff] %v631_v47  ;;  %v633_v48 = vpop.f32.mrb[25].mxu0 }
 0x198   : > { %v4656_v25 = vpop.f32.mrb[25].mxu1  ;;  %3353 = vmatmul.mubr.msk.f32.gmra.mrb[130].mxu1 %vm348_vm0, %v4258_v53  ;;  %1658 = vmatprep.mubr.f32.mxu0 %v3753_v0  ;;  %871 = vst.msk [vmem:[#allocation2 + $0xc8] sm:$0xff] %vm348_vm0, %v633_v48  ;;  %v4677_v53 = vld [vmem:[%s3981_s5 + $0x8] sm:$0xff] }
 0x199   : > { %1993 = vmatprep.mubr.f32.mxu1 %v3753_v0 }
 0x19a   : > { %v637_v8 = vpop.f32.mrb[26].mxu0 }
 0x19b   : > { %v4666_v29 = vpop.f32.mrb[26].mxu1  ;;  %3312 = vmatmul.mubr.msk.f32.vlgmr.msra.gmra.mrb[132].mxu0 %vm348_vm0, %v4663_v49  ;;  %872 = vst [vmem:[#allocation2 + $0xd0] sm:$0xff] %v637_v8  ;;  %v639_v52 = vpop.f32.mrb[27].mxu0 }
 0x19c   : > { %v4670_v32 = vpop.f32.mrb[27].mxu1  ;;  %3354 = vmatmul.mubr.msk.f32.gmra.mrb[132].mxu1 %vm348_vm0, %v4267_v57  ;;  %1664 = vmatprep.mubr.f32.mxu0 %v3753_v0  ;;  %873 = vst.msk [vmem:[#allocation2 + $0xd8] sm:$0xff] %vm348_vm0, %v639_v52 }
 0x19d   : > { %1999 = vmatprep.mubr.f32.mxu1 %v3753_v0  ;;  %3445 = vmatpush1.bf16.msra.mxu0 %v4025_v56  ;;  %v4693_v56 = vld [vmem:[%s3981_s5 + $0x10] sm:$0xff] }
 0x19e   : > { %v643_v34 = vpop.f32.mrb[28].mxu0  ;;  %3447 = vmatprep.subr.bf16.mxu0 %v4029_v59 }
 0x19f   : > { %v4682_v36 = vpop.f32.mrb[28].mxu1  ;;  %3313 = vmatmul.mubr.msk.f32.gmra.mrb[134].mxu0 %vm348_vm0, %v4677_v53  ;;  %874 = vst [vmem:[#allocation2 + $0xe0] sm:$0xff] %v643_v34  ;;  %v645_v57 = vpop.f32.mrb[29].mxu0 }
 0x1a0   : > { %v4686_v37 = vpop.f32.mrb[29].mxu1  ;;  %3355 = vmatmul.mubr.msk.f32.gmra.mrb[134].mxu1 %vm348_vm0, %v4276_v58  ;;  %875 = vst.msk [vmem:[#allocation2 + $0xe8] sm:$0xff] %vm348_vm0, %v645_v57  ;;  %1670 = vmatprep.mubr.f32.mxu0 %v3753_v0 }
 0x1a1   : > { %2005 = vmatprep.mubr.f32.mxu1 %v3753_v0  ;;  %3449 = vmatpush1.bf16.msra.mxu0 %v4044_v1  ;;  %v4712_v1 = vld [vmem:[%s3981_s5 + $0x18] sm:$0xff] }
 0x1a2   : > { %v649_v59 = vpop.f32.mrb[30].mxu0  ;;  %3451 = vmatprep.subr.bf16.mxu0 %v4062_v7 }
 0x1a3   : > { %v4699_v38 = vadd.f32 %v4520_v18, %v649_v59  ;;  %v4701_v40 = vpop.f32.mrb[30].mxu1  ;;  %v651_v58 = vpop.f32.mrb[31].mxu0  ;;  %3314 = vmatmul.mubr.msk.f32.gmra.mrb[136].mxu0 %vm348_vm0, %v4693_v56 }
 0x1a4   : > { %877 = vst.msk [vmem:[#allocation2 + $0xf8] sm:$0xff] %vm348_vm0, %v651_v58  ;;  %v4706_v41 = vpop.f32.mrb[31].mxu1  ;;  %3356 = vmatmul.mubr.msk.f32.gmra.mrb[136].mxu1 %vm348_vm0, %v4285_v60  ;;  %1676 = vmatprep.mubr.f32.mxu0 %v3753_v0 }
 0x1a5   : > { %2011 = vmatprep.mubr.f32.mxu1 %v3753_v0  ;;  %3453 = vmatpush1.bf16.msra.mxu0 %v4065_v10  ;;  %v4731_v10 = vld [vmem:[%s3981_s5 + $0x20] sm:$0xff] }
 0x1a6   : > { %v655_v7 = vpop.f32.mrb[32].mxu0  ;;  %3455 = vmatprep.subr.bf16.mxu0 %v4081_v16 }
 0x1a7   : > { %v4718_v18 = vadd.f32 %v4531_v44, %v655_v7  ;;  %v4720_v42 = vpop.f32.mrb[32].mxu1  ;;  %v657_v43 = vpop.f32.mrb[33].mxu0  ;;  %3315 = vmatmul.mubr.msk.f32.gmra.mrb[138].mxu0 %vm348_vm0, %v4712_v1 }
 0x1a8   : > { %879 = vst.msk [vmem:[#allocation2 + $0x108] sm:$0xff] %vm348_vm0, %v657_v43  ;;  %v4725_v60 = vpop.f32.mrb[33].mxu1  ;;  %3357 = vmatmul.mubr.msk.f32.gmra.mrb[138].mxu1 %vm348_vm0, %v4294_v61  ;;  %1680 = vmatprep.mubr.f32.mxu0 %v3753_v0 }
 0x1a9   : > { %2017 = vmatprep.mubr.f32.mxu1 %v3753_v0  ;;  %3457 = vmatpush1.bf16.msra.mxu0 %v4083_v20  ;;  %v4750_v20 = vld [vmem:[%s3981_s5 + $0x28] sm:$0xff] }
 0x1aa   : > { %v661_v16 = vpop.f32.mrb[34].mxu0 }
 0x1ab   : > { %v1337_v44 = vld [vmem:[#allocation2 + $0xf8] sm:$0xff]  ;;  %v4736_v45 = vadd.f32 %v4542_v55, %v661_v16  ;;  %v4738_v46 = vpop.f32.mrb[34].mxu1  ;;  %v663_v47 = vpop.f32.mrb[35].mxu0  ;;  %3316 = vmatmul.mubr.msk.f32.gmra.mrb[140].mxu0 %vm348_vm0, %v4731_v10 }
 0x1ac   : > { %v1427_v61 = vadd.f32 %v1337_v44, %v4524_v31  ;;  %881 = vst.msk [vmem:[#allocation2 + $0x118] sm:$0xff] %vm348_vm0, %v663_v47  ;;  %v4744_v48 = vpop.f32.mrb[35].mxu1  ;;  %3358 = vmatmul.mubr.msk.f32.gmra.mrb[140].mxu1 %vm348_vm0, %v4303_v3  ;;  %1684 = vmatprep.mubr.f32.mxu0 %v3753_v0 }
 0x1ad   : > { %2023 = vmatprep.mubr.f32.mxu1 %v3753_v0 }
 0x1ae   : > { %1517 = vst.msk [vmem:[#allocation2 + $0xf8] sm:$0xff] %vm348_vm0, %v1427_v61  ;;  %v667_v55 = vpop.f32.mrb[36].mxu0 }
 0x1af   : > { %v1339_v8 = vld [vmem:[#allocation2 + $0x108] sm:$0xff]  ;;  %v4755_v52 = vadd.f32 %v4553_v6, %v667_v55  ;;  %v4757_v31 = vpop.f32.mrb[36].mxu1  ;;  %v669_v34 = vpop.f32.mrb[37].mxu0  ;;  %3317 = vmatmul.mubr.msk.f32.gmra.mrb[142].mxu0 %vm348_vm0, %v4750_v20 }
 0x1b0   : > { %v1429_v3 = vadd.f32 %v1339_v8, %v4535_v51  ;;  %883 = vst.msk [vmem:[#allocation2 + $0x128] sm:$0xff] %vm348_vm0, %v669_v34  ;;  %v4763_v57 = vpop.f32.mrb[37].mxu1  ;;  %3359 = vmatmul.mubr.msk.f32.gmra.mrb[142].mxu1 %vm348_vm0, %v4312_v4  ;;  %2382 = vmatprep.mubr.f32.mxu0 %v3753_v0 }
 0x1b1   : > { %2029 = vmatprep.mubr.f32.mxu1 %v3753_v0 }
 0x1b2   : > { %1519 = vst.msk [vmem:[#allocation2 + $0x108] sm:$0xff] %vm348_vm0, %v1429_v3  ;;  %v673_v6 = vpop.f32.mrb[38].mxu0 }
 0x1b3   : > { %v1341_v59 = vld [vmem:[#allocation2 + $0x118] sm:$0xff]  ;;  %v4771_v58 = vadd.f32 %v4564_v22, %v673_v6  ;;  %v4773_v7 = vpop.f32.mrb[38].mxu1  ;;  %v675_v51 = vpop.f32.mrb[39].mxu0  ;;  %3366 = vmatmul.mubr.msk.f32.vlgmr.msra.gmra.mrb[144].mxu0 %vm348_vm0, %v4663_v49 }
 0x1b4   : > { %v1431_v43 = vadd.f32 %v1341_v59, %v4546_v63  ;;  %885 = vst.msk [vmem:[#allocation2 + $0x138] sm:$0xff] %vm348_vm0, %v675_v51  ;;  %v4779_v4 = vpop.f32.mrb[39].mxu1  ;;  %3360 = vmatmul.mubr.msk.f32.gmra.mrb[144].mxu1 %vm348_vm0, %v4321_v5  ;;  %2388 = vmatprep.mubr.f32.mxu0 %v3753_v0 }
 0x1b5   : > { %2035 = vmatprep.mubr.f32.mxu1 %v3753_v0 }
 0x1b6   : > { %1521 = vst.msk [vmem:[#allocation2 + $0x118] sm:$0xff] %vm348_vm0, %v1431_v43  ;;  %v679_v22 = vpop.f32.mrb[40].mxu0 }
 0x1b7   : > { %v1343_v16 = vld [vmem:[#allocation2 + $0x128] sm:$0xff]  ;;  %v4787_v44 = vadd.f32 %v4575_v27, %v679_v22  ;;  %v4789_v49 = vpop.f32.mrb[40].mxu1  ;;  %v681_v63 = vpop.f32.mrb[41].mxu0  ;;  %3367 = vmatmul.mubr.msk.f32.gmra.mrb[146].mxu0 %vm348_vm0, %v4677_v53 }
 0x1b8   : > { %v1433_v47 = vadd.f32 %v1343_v16, %v4557_v15  ;;  %887 = vst.msk [vmem:[#allocation2 + $0x148] sm:$0xff] %vm348_vm0, %v681_v63  ;;  %v4795_v5 = vpop.f32.mrb[41].mxu1  ;;  %3361 = vmatmul.mubr.msk.f32.gmra.mrb[146].mxu1 %vm348_vm0, %v4330_v9  ;;  %2394 = vmatprep.mubr.f32.mxu0 %v3753_v0 }
 0x1b9   : > { %2041 = vmatprep.mubr.f32.mxu1 %v3753_v0 }
 0x1ba   : > { %1523 = vst.msk [vmem:[#allocation2 + $0x128] sm:$0xff] %vm348_vm0, %v1433_v47  ;;  %v685_v27 = vpop.f32.mrb[42].mxu0 }
 0x1bb   : > { %v1345_v61 = vld [vmem:[#allocation2 + $0x138] sm:$0xff]  ;;  %v4803_v55 = vadd.f32 %v4586_v30, %v685_v27  ;;  %v4805_v53 = vpop.f32.mrb[42].mxu1  ;;  %v687_v15 = vpop.f32.mrb[43].mxu0  ;;  %3368 = vmatmul.mubr.msk.f32.gmra.mrb[148].mxu0 %vm348_vm0, %v4693_v56 }
 0x1bc   : > { %v1435_v8 = vadd.f32 %v1345_v61, %v4568_v24  ;;  %889 = vst.msk [vmem:[#allocation2 + $0x158] sm:$0xff] %vm348_vm0, %v687_v15  ;;  %v4811_v9 = vpop.f32.mrb[43].mxu1  ;;  %3362 = vmatmul.mubr.msk.f32.gmra.mrb[148].mxu1 %vm348_vm0, %v4339_v12  ;;  %2400 = vmatprep.mubr.f32.mxu0 %v3753_v0 }
 0x1bd   : > { %2047 = vmatprep.mubr.f32.mxu1 %v3753_v0 }
 0x1be   : > { %1525 = vst.msk [vmem:[#allocation2 + $0x138] sm:$0xff] %vm348_vm0, %v1435_v8  ;;  %v691_v30 = vpop.f32.mrb[44].mxu0 }
 0x1bf   : > { %v1347_v34 = vld [vmem:[#allocation2 + $0x148] sm:$0xff]  ;;  %v4819_v3 = vadd.f32 %v4597_v35, %v691_v30  ;;  %v4821_v56 = vpop.f32.mrb[44].mxu1  ;;  %v693_v24 = vpop.f32.mrb[45].mxu0  ;;  %3369 = vmatmul.mubr.msk.f32.gmra.mrb[150].mxu0 %vm348_vm0, %v4712_v1 }
 0x1c0   : > { %v1437_v6 = vadd.f32 %v1347_v34, %v4579_v28  ;;  %891 = vst.msk [vmem:[#allocation2 + $0x168] sm:$0xff] %vm348_vm0, %v693_v24  ;;  %v4827_v12 = vpop.f32.mrb[45].mxu1  ;;  %3363 = vmatmul.mubr.msk.f32.gmra.mrb[150].mxu1 %vm348_vm0, %v4348_v14  ;;  %2406 = vmatprep.mubr.f32.mxu0 %v3753_v0 }
 0x1c1   : > { %2053 = vmatprep.mubr.f32.mxu1 %v3753_v0 }
 0x1c2   : > { %1527 = vst.msk [vmem:[#allocation2 + $0x148] sm:$0xff] %vm348_vm0, %v1437_v6  ;;  %v697_v35 = vpop.f32.mrb[46].mxu0 }
 0x1c3   : > { %v1349_v59 = vld [vmem:[#allocation2 + $0x158] sm:$0xff]  ;;  %v4835_v51 = vadd.f32 %v4608_v26, %v697_v35  ;;  %v4837_v1 = vpop.f32.mrb[46].mxu1  ;;  %v699_v28 = vpop.f32.mrb[47].mxu0  ;;  %3370 = vmatmul.mubr.msk.f32.gmra.mrb[152].mxu0 %vm348_vm0, %v4731_v10 }
 0x1c4   : > { %v1439_v43 = vadd.f32 %v1349_v59, %v4590_v33  ;;  %893 = vst.msk [vmem:[#allocation2 + $0x178] sm:$0xff] %vm348_vm0, %v699_v28  ;;  %v4843_v14 = vpop.f32.mrb[47].mxu1  ;;  %3364 = vmatmul.mubr.msk.f32.gmra.mrb[152].mxu1 %vm348_vm0, %v4357_v17  ;;  %2412 = vmatprep.mubr.f32.mxu0 %v3753_v0 }
 0x1c5   : > { %2059 = vmatprep.mubr.f32.mxu1 %v3753_v0 }
 0x1c6   : > { %1529 = vst.msk [vmem:[#allocation2 + $0x158] sm:$0xff] %vm348_vm0, %v1439_v43  ;;  %v703_v26 = vpop.f32.mrb[48].mxu0 }
 0x1c7   : > { %v1351_v22 = vld [vmem:[#allocation2 + $0x168] sm:$0xff]  ;;  %v4851_v16 = vadd.f32 %v4619_v50, %v703_v26  ;;  %v4853_v10 = vpop.f32.mrb[48].mxu1  ;;  %v705_v33 = vpop.f32.mrb[49].mxu0  ;;  %3371 = vmatmul.mubr.msk.f32.gmra.mrb[154].mxu0 %vm348_vm0, %v4750_v20 }
 0x1c8   : > { %v1441_v63 = vadd.f32 %v1351_v22, %v4601_v13  ;;  %895 = vst.msk [vmem:[#allocation2 + $0x188] sm:$0xff] %vm348_vm0, %v705_v33  ;;  %v4859_v17 = vpop.f32.mrb[49].mxu1  ;;  %3365 = vmatmul.mubr.msk.f32.gmra.mrb[154].mxu1 %vm348_vm0, %v4366_v19 }
 0x1ca   : > { %1531 = vst.msk [vmem:[#allocation2 + $0x168] sm:$0xff] %vm348_vm0, %v1441_v63  ;;  %v709_v0 = vpop.f32.mrb[50].mxu0 }
 0x1cb   : > { %v1353_v50 = vld [vmem:[#allocation2 + $0x178] sm:$0xff]  ;;  %v1446_v47 = vadd.f32 %v4630_v62, %v709_v0  ;;  %v4865_v27 = vpop.f32.mrb[50].mxu1  ;;  %v711_v61 = vpop.f32.mrb[51].mxu0 }
 0x1cc   : > { %v1443_v20 = vadd.f32 %v1353_v50, %v4612_v39  ;;  %897 = vst.msk [vmem:[#allocation2 + $0x198] sm:$0xff] %vm348_vm0, %v711_v61  ;;  %v4869_v13 = vpop.f32.mrb[51].mxu1 }
 0x1cd   : > { %1536 = vst [vmem:[#allocation2 + $0x190] sm:$0xff] %v1446_v47 }
 0x1ce   : > { %1533 = vst.msk [vmem:[#allocation2 + $0x178] sm:$0xff] %vm348_vm0, %v1443_v20  ;;  %v715_v15 = vpop.f32.mrb[52].mxu0 }
 0x1cf   : > { %v1355_v19 = vld [vmem:[#allocation2 + $0x188] sm:$0xff]  ;;  %v1448_v8 = vadd.f32 %v4641_v11, %v715_v15  ;;  %v4873_v30 = vpop.f32.mrb[52].mxu1  ;;  %v717_v34 = vpop.f32.mrb[53].mxu0 }
 0x1d0   : > { %v1445_v62 = vadd.f32 %v1355_v19, %v4623_v54  ;;  %899 = vst.msk [vmem:[#allocation2 + $0x1a8] sm:$0xff] %vm348_vm0, %v717_v34  ;;  %v4877_v24 = vpop.f32.mrb[53].mxu1 }
 0x1d1   : > { %1538 = vst [vmem:[#allocation2 + $0x1a0] sm:$0xff] %v1448_v8 }
 0x1d2   : > { %1535 = vst.msk [vmem:[#allocation2 + $0x188] sm:$0xff] %vm348_vm0, %v1445_v62  ;;  %v721_v39 = vpop.f32.mrb[54].mxu0 }
 0x1d3   : > { %v1357_v6 = vld [vmem:[#allocation2 + $0x198] sm:$0xff]  ;;  %v1450_v35 = vadd.f32 %v4652_v23, %v721_v39  ;;  %v4881_v59 = vpop.f32.mrb[54].mxu1  ;;  %v723_v28 = vpop.f32.mrb[55].mxu0 }
 0x1d4   : > { %v1447_v11 = vadd.f32 %v1357_v6, %v4634_v2  ;;  %901 = vst.msk [vmem:[#allocation2 + $0x1b8] sm:$0xff] %vm348_vm0, %v723_v28  ;;  %v4885_v43 = vpop.f32.mrb[55].mxu1 }
 0x1d5   : > { %1540 = vst [vmem:[#allocation2 + $0x1b0] sm:$0xff] %v1450_v35 }
 0x1d6   : > { %1537 = vst.msk [vmem:[#allocation2 + $0x198] sm:$0xff] %vm348_vm0, %v1447_v11  ;;  %v727_v54 = vpop.f32.mrb[56].mxu0 }
 0x1d7   : > { %v1359_v26 = vld [vmem:[#allocation2 + $0x1a8] sm:$0xff]  ;;  %v1452_v22 = vadd.f32 %v4666_v29, %v727_v54  ;;  %v4889_v33 = vpop.f32.mrb[56].mxu1  ;;  %v729_v63 = vpop.f32.mrb[57].mxu0 }
 0x1d8   : > { %v1449_v23 = vadd.f32 %v1359_v26, %v4645_v21  ;;  %903 = vst.msk [vmem:[#allocation2 + $0x1c8] sm:$0xff] %vm348_vm0, %v729_v63  ;;  %v4893_v0 = vpop.f32.mrb[57].mxu1 }
 0x1d9   : > { %1542 = vst [vmem:[#allocation2 + $0x1c0] sm:$0xff] %v1452_v22 }
 0x1da   : > { %1539 = vst.msk [vmem:[#allocation2 + $0x1a8] sm:$0xff] %vm348_vm0, %v1449_v23  ;;  %v733_v2 = vpop.f32.mrb[58].mxu0 }
 0x1db   : > { %v1361_v50 = vld [vmem:[#allocation2 + $0x1b8] sm:$0xff]  ;;  %v1454_v47 = vadd.f32 %v4682_v36, %v733_v2  ;;  %v4897_v61 = vpop.f32.mrb[58].mxu1  ;;  %v735_v20 = vpop.f32.mrb[59].mxu0 }
 0x1dc   : > { %v1451_v29 = vadd.f32 %v1361_v50, %v4656_v25  ;;  %905 = vst.msk [vmem:[#allocation2 + $0x1d8] sm:$0xff] %vm348_vm0, %v735_v20  ;;  %v4901_v15 = vpop.f32.mrb[59].mxu1 }
 0x1dd   : > { %1544 = vst [vmem:[#allocation2 + $0x1d0] sm:$0xff] %v1454_v47 }
 0x1de   : > { %1541 = vst.msk [vmem:[#allocation2 + $0x1b8] sm:$0xff] %vm348_vm0, %v1451_v29  ;;  %v739_v21 = vpop.f32.mrb[60].mxu0 }
 0x1df   : > { %v1363_v19 = vld [vmem:[#allocation2 + $0x1c8] sm:$0xff]  ;;  %v1456_v8 = vadd.f32 %v4701_v40, %v739_v21  ;;  %v1791_v34 = vpop.f32.mrb[60].mxu1  ;;  %v741_v62 = vpop.f32.mrb[61].mxu0 }
 0x1e0   : > { %v1453_v36 = vadd.f32 %v1363_v19, %v4670_v32  ;;  %907 = vst.msk [vmem:[#allocation2 + $0x1e8] sm:$0xff] %vm348_vm0, %v741_v62  ;;  %v1792_v39 = vpop.f32.mrb[61].mxu1 }
 0x1e1   : > { %1546 = vst [vmem:[#allocation2 + $0x1e0] sm:$0xff] %v1456_v8 }
 0x1e2   : > { %1543 = vst.msk [vmem:[#allocation2 + $0x1c8] sm:$0xff] %vm348_vm0, %v1453_v36  ;;  %v745_v25 = vpop.f32.mrb[62].mxu0 }
 0x1e3   : > { %v1365_v6 = vld [vmem:[#allocation2 + $0x1d8] sm:$0xff]  ;;  %v1458_v35 = vadd.f32 %v4720_v42, %v745_v25  ;;  %v1795_v28 = vpop.f32.mrb[62].mxu1  ;;  %v747_v11 = vpop.f32.mrb[63].mxu0 }
 0x1e4   : > { %v1455_v54 = vadd.f32 %v1365_v6, %v4686_v37  ;;  %909 = vst.msk [vmem:[#allocation2 + $0x1f8] sm:$0xff] %vm348_vm0, %v747_v11  ;;  %v1796_v40 = vpop.f32.mrb[63].mxu1 }
 0x1e5   : > { %1548 = vst [vmem:[#allocation2 + $0x1f0] sm:$0xff] %v1458_v35 }
 0x1e6   : > { %1545 = vst.msk [vmem:[#allocation2 + $0x1d8] sm:$0xff] %vm348_vm0, %v1455_v54  ;;  %v751_v32 = vpop.f32.mrb[64].mxu0 }
 0x1e7   : > { %v1367_v26 = vld [vmem:[#allocation2 + $0x1e8] sm:$0xff]  ;;  %v1460_v22 = vadd.f32 %v4738_v46, %v751_v32  ;;  %v1799_v63 = vpop.f32.mrb[64].mxu1  ;;  %v753_v23 = vpop.f32.mrb[65].mxu0 }
 0x1e8   : > { %v1457_v2 = vadd.f32 %v1367_v26, %v4706_v41  ;;  %911 = vst.msk [vmem:[#allocation2 + $0x208] sm:$0xff] %vm348_vm0, %v753_v23  ;;  %v1800_v42 = vpop.f32.mrb[65].mxu1 }
 0x1e9   : > { %1550 = vst [vmem:[#allocation2 + $0x200] sm:$0xff] %v1460_v22 }
 0x1ea   : > { %1547 = vst.msk [vmem:[#allocation2 + $0x1e8] sm:$0xff] %vm348_vm0, %v1457_v2  ;;  %v757_v37 = vpop.f32.mrb[66].mxu0 }
 0x1eb   : > { %v1369_v50 = vld [vmem:[#allocation2 + $0x1f8] sm:$0xff]  ;;  %v1462_v47 = vadd.f32 %v4757_v31, %v757_v37  ;;  %v1803_v20 = vpop.f32.mrb[66].mxu1  ;;  %v759_v29 = vpop.f32.mrb[67].mxu0 }
 0x1ec   : > { %v1459_v21 = vadd.f32 %v1369_v50, %v4725_v60  ;;  %913 = vst.msk [vmem:[#allocation2 + $0x218] sm:$0xff] %vm348_vm0, %v759_v29  ;;  %v1804_v46 = vpop.f32.mrb[67].mxu1 }
 0x1ed   : > { %1552 = vst [vmem:[#allocation2 + $0x210] sm:$0xff] %v1462_v47 }
 0x1ee   : > { %1549 = vst.msk [vmem:[#allocation2 + $0x1f8] sm:$0xff] %vm348_vm0, %v1459_v21  ;;  %v763_v41 = vpop.f32.mrb[68].mxu0 }
 0x1ef   : > { %v1371_v19 = vld [vmem:[#allocation2 + $0x208] sm:$0xff]  ;;  %v1464_v8 = vadd.f32 %v4773_v7, %v763_v41  ;;  %v1807_v34 = vpop.f32.mrb[68].mxu1  ;;  %v765_v62 = vpop.f32.mrb[69].mxu0 }
 0x1f0   : > { %v1461_v36 = vadd.f32 %v1371_v19, %v4744_v48  ;;  %915 = vst.msk [vmem:[#allocation2 + $0x228] sm:$0xff] %vm348_vm0, %v765_v62  ;;  %v1808_v31 = vpop.f32.mrb[69].mxu1 }
 0x1f1   : > { %1554 = vst [vmem:[#allocation2 + $0x220] sm:$0xff] %v1464_v8 }
 0x1f2   : > { %1551 = vst.msk [vmem:[#allocation2 + $0x208] sm:$0xff] %vm348_vm0, %v1461_v36  ;;  %v769_v60 = vpop.f32.mrb[70].mxu0 }
 0x1f3   : > { %v1373_v39 = vld [vmem:[#allocation2 + $0x218] sm:$0xff]  ;;  %v1466_v25 = vadd.f32 %v4789_v49, %v769_v60  ;;  %v1811_v6 = vpop.f32.mrb[70].mxu1  ;;  %v771_v35 = vpop.f32.mrb[71].mxu0 }
 0x1f4   : > { %v1463_v28 = vadd.f32 %v1373_v39, %v4763_v57  ;;  %917 = vst.msk [vmem:[#allocation2 + $0x238] sm:$0xff] %vm348_vm0, %v771_v35  ;;  %v1812_v7 = vpop.f32.mrb[71].mxu1 }
 0x1f5   : > { %1556 = vst [vmem:[#allocation2 + $0x230] sm:$0xff] %v1466_v25 }
 0x1f6   : > { %1553 = vst.msk [vmem:[#allocation2 + $0x218] sm:$0xff] %vm348_vm0, %v1463_v28  ;;  %v775_v48 = vpop.f32.mrb[72].mxu0 }
 0x1f7   : > { %v1375_v11 = vld [vmem:[#allocation2 + $0x228] sm:$0xff]  ;;  %v1468_v54 = vadd.f32 %v4805_v53, %v775_v48  ;;  %v4929_v40 = vpop.f32.mrb[72].mxu1  ;;  %v777_v32 = vpop.f32.mrb[73].mxu0 }
 0x1f8   : > { %v1465_v26 = vadd.f32 %v1375_v11, %v4779_v4  ;;  %919 = vst.msk [vmem:[#allocation2 + $0x248] sm:$0xff] %vm348_vm0, %v777_v32  ;;  %v4933_v49 = vpop.f32.mrb[73].mxu1 }
 0x1f9   : > { %1558 = vst [vmem:[#allocation2 + $0x240] sm:$0xff] %v1468_v54 }
 0x1fa   : > { %1555 = vst.msk [vmem:[#allocation2 + $0x228] sm:$0xff] %vm348_vm0, %v1465_v26  ;;  %v781_v57 = vpop.f32.mrb[74].mxu0 }
 0x1fb   : > { %v1377_v22 = vld [vmem:[#allocation2 + $0x238] sm:$0xff]  ;;  %v1470_v63 = vadd.f32 %v4821_v56, %v781_v57  ;;  %v4937_v23 = vpop.f32.mrb[74].mxu1  ;;  %v783_v2 = vpop.f32.mrb[75].mxu0 }
 0x1fc   : > { %v1467_v53 = vadd.f32 %v1377_v22, %v4795_v5  ;;  %921 = vst.msk [vmem:[#allocation2 + $0x258] sm:$0xff] %vm348_vm0, %v783_v2  ;;  %v4941_v42 = vpop.f32.mrb[75].mxu1 }
 0x1fd   : > { %1560 = vst [vmem:[#allocation2 + $0x250] sm:$0xff] %v1470_v63 }
 0x1fe   : > { %1557 = vst.msk [vmem:[#allocation2 + $0x238] sm:$0xff] %vm348_vm0, %v1467_v53  ;;  %v787_v4 = vpop.f32.mrb[76].mxu0 }
 0x1ff   : > { %v1379_v37 = vld [vmem:[#allocation2 + $0x248] sm:$0xff]  ;;  %v1472_v50 = vadd.f32 %v4837_v1, %v787_v4  ;;  %v4945_v47 = vpop.f32.mrb[76].mxu1  ;;  %v789_v20 = vpop.f32.mrb[77].mxu0 }
 0x200   : > { %v1469_v56 = vadd.f32 %v1379_v37, %v4811_v9  ;;  %923 = vst.msk [vmem:[#allocation2 + $0x268] sm:$0xff] %vm348_vm0, %v789_v20  ;;  %v4949_v29 = vpop.f32.mrb[77].mxu1 }
 0x201   : > { %1562 = vst [vmem:[#allocation2 + $0x260] sm:$0xff] %v1472_v50 }
 0x202   : > { %1559 = vst.msk [vmem:[#allocation2 + $0x248] sm:$0xff] %vm348_vm0, %v1469_v56  ;;  %v793_v5 = vpop.f32.mrb[78].mxu0 }
 0x203   : > { %v1381_v21 = vld [vmem:[#allocation2 + $0x258] sm:$0xff]  ;;  %v1474_v46 = vadd.f32 %v4853_v10, %v793_v5  ;;  %v4953_v41 = vpop.f32.mrb[78].mxu1  ;;  %v795_v19 = vpop.f32.mrb[79].mxu0 }
 0x204   : > { %v1471_v1 = vadd.f32 %v1381_v21, %v4827_v12  ;;  %925 = vst.msk [vmem:[#allocation2 + $0x278] sm:$0xff] %vm348_vm0, %v795_v19  ;;  %v4957_v8 = vpop.f32.mrb[79].mxu1 }
 0x205   : > { %1564 = vst [vmem:[#allocation2 + $0x270] sm:$0xff] %v1474_v46 }
 0x206   : > { %1561 = vst.msk [vmem:[#allocation2 + $0x258] sm:$0xff] %vm348_vm0, %v1471_v1  ;;  %v799_v9 = vpop.f32.mrb[80].mxu0 }
 0x207   : > { %v1383_v34 = vld [vmem:[#allocation2 + $0x268] sm:$0xff]  ;;  %v1476_v62 = vadd.f32 %v4865_v27, %v799_v9  ;;  %v4961_v36 = vpop.f32.mrb[80].mxu1  ;;  %v801_v31 = vpop.f32.mrb[81].mxu0 }
 0x208   : > { %v1473_v10 = vadd.f32 %v1383_v34, %v4843_v14  ;;  %927 = vst.msk [vmem:[#allocation2 + $0x288] sm:$0xff] %vm348_vm0, %v801_v31  ;;  %v4965_v60 = vpop.f32.mrb[81].mxu1 }
 0x209   : > { %1566 = vst [vmem:[#allocation2 + $0x280] sm:$0xff] %v1476_v62 }
 0x20a   : > { %1563 = vst.msk [vmem:[#allocation2 + $0x268] sm:$0xff] %vm348_vm0, %v1473_v10  ;;  %v805_v12 = vpop.f32.mrb[82].mxu0 }
 0x20b   : > { %v1385_v39 = vld [vmem:[#allocation2 + $0x278] sm:$0xff]  ;;  %v1478_v25 = vadd.f32 %v4873_v30, %v805_v12  ;;  %v4969_v6 = vpop.f32.mrb[82].mxu1  ;;  %v807_v35 = vpop.f32.mrb[83].mxu0 }
 0x20c   : > { %v1475_v27 = vadd.f32 %v1385_v39, %v4859_v17  ;;  %929 = vst.msk [vmem:[#allocation2 + $0x298] sm:$0xff] %vm348_vm0, %v807_v35  ;;  %v4973_v28 = vpop.f32.mrb[83].mxu1 }
 0x20d   : > { %1568 = vst [vmem:[#allocation2 + $0x290] sm:$0xff] %v1478_v25 }
 0x20e   : > { %1565 = vst.msk [vmem:[#allocation2 + $0x278] sm:$0xff] %vm348_vm0, %v1475_v27  ;;  %v811_v14 = vpop.f32.mrb[84].mxu0 }
 0x20f   : > { %v1387_v7 = vld [vmem:[#allocation2 + $0x288] sm:$0xff]  ;;  %v1480_v48 = vadd.f32 %v4881_v59, %v811_v14  ;;  %v4977_v11 = vpop.f32.mrb[84].mxu1  ;;  %v813_v54 = vpop.f32.mrb[85].mxu0 }
 0x210   : > { %v1477_v30 = vadd.f32 %v1387_v7, %v4869_v13  ;;  %931 = vst.msk [vmem:[#allocation2 + $0x2a8] sm:$0xff] %vm348_vm0, %v813_v54  ;;  %v4981_v32 = vpop.f32.mrb[85].mxu1 }
 0x211   : > { %1570 = vst [vmem:[#allocation2 + $0x2a0] sm:$0xff] %v1480_v48 }
 0x212   : > { %1567 = vst.msk [vmem:[#allocation2 + $0x288] sm:$0xff] %vm348_vm0, %v1477_v30  ;;  %v817_v17 = vpop.f32.mrb[86].mxu0 }
 0x213   : > { %v1389_v26 = vld [vmem:[#allocation2 + $0x298] sm:$0xff]  ;;  %v1482_v57 = vadd.f32 %v4889_v33, %v817_v17  ;;  %v4985_v22 = vpop.f32.mrb[86].mxu1  ;;  %v819_v63 = vpop.f32.mrb[87].mxu0 }
 0x214   : > { %v1479_v59 = vadd.f32 %v1389_v26, %v4877_v24  ;;  %933 = vst.msk [vmem:[#allocation2 + $0x2b8] sm:$0xff] %vm348_vm0, %v819_v63  ;;  %v4989_v2 = vpop.f32.mrb[87].mxu1  ;;  %v1306_v63 = vld [vmem:[#allocation2] sm:$0xff] }
 0x215   : > { %1572 = vst [vmem:[#allocation2 + $0x2b0] sm:$0xff] %v1482_v57 }
 0x216   : > { %1569 = vst.msk [vmem:[#allocation2 + $0x298] sm:$0xff] %vm348_vm0, %v1479_v59  ;;  %v823_v13 = vpop.f32.mrb[88].mxu0 }
 0x217   : > { %v1391_v53 = vld [vmem:[#allocation2 + $0x2a8] sm:$0xff]  ;;  %v1484_v4 = vadd.f32 %v4897_v61, %v823_v13  ;;  %v4993_v37 = vpop.f32.mrb[88].mxu1  ;;  %v825_v50 = vpop.f32.mrb[89].mxu0 }
 0x218   : > { %v1481_v33 = vadd.f32 %v1391_v53, %v4885_v43  ;;  %935 = vst.msk [vmem:[#allocation2 + $0x2c8] sm:$0xff] %vm348_vm0, %v825_v50  ;;  %v4997_v20 = vpop.f32.mrb[89].mxu1 }
 0x219   : > { %1574 = vst [vmem:[#allocation2 + $0x2c0] sm:$0xff] %v1484_v4  ;;  %v1307_v4 = vld [vmem:[#allocation2 + $0x8] sm:$0xff] }
 0x21a   : > { %1571 = vst.msk [vmem:[#allocation2 + $0x2a8] sm:$0xff] %vm348_vm0, %v1481_v33  ;;  %v5000_v24 = vpop.f32.mrb[90].mxu0 }
 0x21b   : > { %v1393_v56 = vld [vmem:[#allocation2 + $0x2b8] sm:$0xff]  ;;  %v5002_v5 = vpop.f32.mrb[90].mxu1  ;;  %v831_v21 = vpop.f32.mrb[91].mxu0 }
 0x21c   : > { %v1483_v61 = vadd.f32 %v1393_v56, %v4893_v0  ;;  %v5005_v46 = vpop.f32.mrb[91].mxu1  ;;  %937 = vst.msk [vmem:[#allocation2 + $0x2d8] sm:$0xff] %vm348_vm0, %v831_v21  ;;  %v2097_v21 = vld [vmem:[#allocation2 + $0xf8] sm:$0xff] }
 0x21e   : > { %1573 = vst.msk [vmem:[#allocation2 + $0x2b8] sm:$0xff] %vm348_vm0, %v1483_v61  ;;  %v5009_v43 = vpop.f32.mrb[92].mxu0 }
 0x21f   : > { %v1395_v19 = vld [vmem:[#allocation2 + $0x2c8] sm:$0xff]  ;;  %v5011_v1 = vpop.f32.mrb[92].mxu1  ;;  %v837_v9 = vpop.f32.mrb[93].mxu0 }
 0x220   : > { %v1485_v34 = vadd.f32 %v1395_v19, %v4901_v15  ;;  %v5014_v62 = vpop.f32.mrb[93].mxu1  ;;  %939 = vst.msk [vmem:[#allocation2 + $0x2e8] sm:$0xff] %vm348_vm0, %v837_v9 }
 0x222   : > { %1575 = vst.msk [vmem:[#allocation2 + $0x2c8] sm:$0xff] %vm348_vm0, %v1485_v34  ;;  %v5018_v0 = vpop.f32.mrb[94].mxu0  ;;  %v1308_v34 = vld [vmem:[#allocation2 + $0x10] sm:$0xff] }
 0x223   : > { %v5020_v31 = vpop.f32.mrb[94].mxu1  ;;  %v843_v10 = vpop.f32.mrb[95].mxu0 }
 0x224   : > { %v5022_v12 = vpop.f32.mrb[95].mxu1  ;;  %941 = vst.msk [vmem:[#allocation2 + $0x2f8] sm:$0xff] %vm348_vm0, %v843_v10 }
 0x226   : > { %v1025_v39 = vpop.f32.mrb[96].mxu0 }
 0x227   : > { %v5025_v25 = vpop.f32.mrb[96].mxu1  ;;  %v1026_v35 = vpop.f32.mrb[97].mxu0 }
 0x228   : > { %v5027_v15 = vpop.f32.mrb[97].mxu1 }
 0x22a   : > { %v1029_v27 = vpop.f32.mrb[98].mxu0 }
 0x22b   : > { %v5029_v14 = vpop.f32.mrb[98].mxu1  ;;  %v1030_v7 = vpop.f32.mrb[99].mxu0  ;;  %v1309_v27 = vld [vmem:[#allocation2 + $0x18] sm:$0xff] }
 0x22c   : > { %v5031_v48 = vpop.f32.mrb[99].mxu1 }
 0x22e   : > { %v1033_v54 = vpop.f32.mrb[100].mxu0 }
 0x22f   : > { %v5033_v30 = vpop.f32.mrb[100].mxu1  ;;  %v1034_v17 = vpop.f32.mrb[101].mxu0 }
 0x230   : > { %v5035_v26 = vpop.f32.mrb[101].mxu1  ;;  %v2099_v17 = vld [vmem:[#allocation2 + $0x108] sm:$0xff] }
 0x232   : > { %v1037_v57 = vpop.f32.mrb[102].mxu0 }
 0x233   : > { %v1396_v59 = vadd.f32 %v1306_v63, %v1037_v57  ;;  %v1905_v13 = vpop.f32.mrb[102].mxu1  ;;  %v1039_v53 = vpop.f32.mrb[103].mxu0 }
 0x234   : > { %v2180_v50 = vadd.f32 %v1905_v13, %v4699_v38  ;;  %v1397_v33 = vadd.f32 %v1307_v4, %v1039_v53  ;;  %v1907_v56 = vpop.f32.mrb[103].mxu1 }
 0x235   : > { %v2150_v61 = vadd.f32 %v4929_v40, %v1396_v59  ;;  %v2181_v19 = vadd.f32 %v2097_v21, %v1907_v56  ;;  %v1310_v59 = vld [vmem:[#allocation2 + $0x20] sm:$0xff]  ;;  %v1311_v56 = vld [vmem:[#allocation2 + $0x28] sm:$0xff] }
 0x236   : > { %2264 = vst [vmem:[#allocation2 + $0xf0] sm:$0xff] %v2180_v50  ;;  %1487 = vst.msk [vmem:[#allocation2 + $0x8] sm:$0xff] %vm348_vm0, %v1397_v33  ;;  %v1043_v9 = vpop.f32.mrb[104].mxu0  ;;  %v2626_v13 = vrot.slane %v2180_v50, 1 }
 0x237   : > { %2234 = vst [vmem:[#allocation2] sm:$0xff] %v2150_v61  ;;  %2265 = vst.msk [vmem:[#allocation2 + $0xf8] sm:$0xff] %vm348_vm0, %v2181_v19  ;;  %v1398_v10 = vadd.f32 %v1308_v34, %v1043_v9  ;;  %v1911_v39 = vpop.f32.mrb[104].mxu1  ;;  %v1045_v35 = vpop.f32.mrb[105].mxu0  ;;  %v2101_v9 = vld [vmem:[#allocation2 + $0x118] sm:$0xff] }
 0x238   : > { %v2182_v38 = vadd.f32 %v1911_v39, %v4718_v18  ;;  %v1399_v7 = vadd.f32 %v1309_v27, %v1045_v35  ;;  %v1913_v54 = vpop.f32.mrb[105].mxu1 }
 0x239   : > { %v5043_v40 = vadd.f32 %v4937_v23, %v1398_v10  ;;  %v2183_v57 = vadd.f32 %v2099_v17, %v1913_v54  ;;  %v2601_v54 = vrot.slane %v2150_v61, 1 }
 0x23a   : > { %2266 = vst [vmem:[#allocation2 + $0x100] sm:$0xff] %v2182_v38  ;;  %1489 = vst.msk [vmem:[#allocation2 + $0x18] sm:$0xff] %vm348_vm0, %v1399_v7  ;;  %v1049_v63 = vpop.f32.mrb[106].mxu0  ;;  %v2627_v53 = vrot.slane %v2182_v38, 1  ;;  %v1312_v38 = vld [vmem:[#allocation2 + $0x30] sm:$0xff] }
 0x23b   : > { %2236 = vst [vmem:[#allocation2 + $0x10] sm:$0xff] %v5043_v40  ;;  %2267 = vst.msk [vmem:[#allocation2 + $0x108] sm:$0xff] %vm348_vm0, %v2183_v57  ;;  %v1400_v18 = vadd.f32 %v1310_v59, %v1049_v63  ;;  %v1917_v4 = vpop.f32.mrb[106].mxu1  ;;  %v1051_v33 = vpop.f32.mrb[107].mxu0  ;;  %v2602_v10 = vrot.slane %v5043_v40, 1  ;;  %v1313_v63 = vld [vmem:[#allocation2 + $0x38] sm:$0xff] }
 0x23c   : > { %v2184_v23 = vadd.f32 %v1917_v4, %v4736_v45  ;;  %v1401_v21 = vadd.f32 %v1311_v56, %v1051_v33  ;;  %v1919_v19 = vpop.f32.mrb[107].mxu1  ;;  %v2628_v34 = vsel %vm2600_vm1, %v2626_v13, %v2627_v53 }
 0x23d   : > { %v2067_v39 = vld [vmem:[#allocation2 + $0x8] sm:$0xff]  ;;  %v5052_v50 = vadd.f32 %v4945_v47, %v1400_v18  ;;  %v2185_v35 = vadd.f32 %v2101_v9, %v1919_v19  ;;  %2701 = vrot.lane.b32.xlu0 %v2628_v34, %s3754_s18  ;;  %v2603_v61 = vsel %vm2600_vm1, %v2601_v54, %v2602_v10 }
 0x23e   : > { %v2151_v27 = vadd.f32 %v2067_v39, %v4933_v49  ;;  %1491 = vst.msk [vmem:[#allocation2 + $0x28] sm:$0xff] %vm348_vm0, %v1401_v21  ;;  %v1055_v45 = vpop.f32.mrb[108].mxu0  ;;  %v2629_v7 = vrot.slane %v2184_v23, 1  ;;  %v2103_v18 = vld [vmem:[#allocation2 + $0x128] sm:$0xff] }
 0x23f   : > { %2238 = vst [vmem:[#allocation2 + $0x20] sm:$0xff] %v5052_v50  ;;  %2269 = vst.msk [vmem:[#allocation2 + $0x118] sm:$0xff] %vm348_vm0, %v2185_v35  ;;  %v1402_v17 = vadd.f32 %v1312_v38, %v1055_v45  ;;  %v1923_v57 = vpop.f32.mrb[108].mxu1  ;;  %v1057_v47 = vpop.f32.mrb[109].mxu0  ;;  %v1315_v34 = vld [vmem:[#allocation2 + $0x48] sm:$0xff] }
 0x240   : > { %2235 = vst.msk [vmem:[#allocation2 + $0x8] sm:$0xff] %vm348_vm0, %v2151_v27  ;;  %v2186_v59 = vadd.f32 %v1923_v57, %v4755_v52  ;;  %v1403_v13 = vadd.f32 %v1313_v63, %v1057_v47  ;;  %v1925_v49 = vpop.f32.mrb[109].mxu1  ;;  %v2630_v4 = vsel %vm2600_vm1, %v2627_v53, %v2629_v7  ;;  %v1314_v53 = vld [vmem:[#allocation2 + $0x40] sm:$0xff]  ;;  %v1316_v57 = vld [vmem:[#allocation2 + $0x50] sm:$0xff] }
 0x241   : > { %v2069_v33 = vld [vmem:[#allocation2 + $0x18] sm:$0xff]  ;;  %v5066_v56 = vadd.f32 %v4953_v41, %v1402_v17  ;;  %v2187_v23 = vadd.f32 %v2103_v18, %v1925_v49  ;;  %2703 = vrot.lane.b32.xlu1 %v2630_v4, %s3754_s18  ;;  %2681 = vrot.lane.b32.xlu0 %v2603_v61, %s3754_s18 }
 0x242   : > { %v2153_v52 = vadd.f32 %v2069_v33, %v4941_v42  ;;  %2270 = vst [vmem:[#allocation2 + $0x120] sm:$0xff] %v2186_v59  ;;  %1493 = vst.msk [vmem:[#allocation2 + $0x38] sm:$0xff] %vm348_vm0, %v1403_v13  ;;  %v1061_v21 = vpop.f32.mrb[110].mxu0  ;;  %v2105_v42 = vld [vmem:[#allocation2 + $0x138] sm:$0xff]  ;;  %v2631_v47 = vrot.slane %v2186_v59, 1  ;;  %v2107_v33 = vld [vmem:[#allocation2 + $0x148] sm:$0xff] }
 0x243   : > { %2240 = vst [vmem:[#allocation2 + $0x30] sm:$0xff] %v5066_v56  ;;  %2271 = vst.msk [vmem:[#allocation2 + $0x128] sm:$0xff] %vm348_vm0, %v2187_v23  ;;  %v1404_v19 = vadd.f32 %v1314_v53, %v1061_v21  ;;  %v1929_v9 = vpop.f32.mrb[110].mxu1  ;;  %v1063_v41 = vpop.f32.mrb[111].mxu0  ;;  %v1317_v18 = vld [vmem:[#allocation2 + $0x58] sm:$0xff] }
 0x244   : > { %2237 = vst.msk [vmem:[#allocation2 + $0x18] sm:$0xff] %vm348_vm0, %v2153_v52  ;;  %v2188_v39 = vadd.f32 %v1929_v9, %v4771_v58  ;;  %v1405_v35 = vadd.f32 %v1315_v34, %v1063_v41  ;;  %v1931_v27 = vpop.f32.mrb[111].mxu1 }
 0x245   : > { %v2071_v45 = vld [vmem:[#allocation2 + $0x28] sm:$0xff]  ;;  %v5077_v38 = vadd.f32 %v4961_v36, %v1404_v19  ;;  %v2189_v7 = vadd.f32 %v2105_v42, %v1931_v27  ;;  %v2604_v36 = vrot.slane %v5052_v50, 1  ;;  %v1318_v19 = vld [vmem:[#allocation2 + $0x60] sm:$0xff]  ;;  %v2109_v42 = vld [vmem:[#allocation2 + $0x158] sm:$0xff] }
 0x246   : > { %v2155_v54 = vadd.f32 %v2071_v45, %v4949_v29  ;;  %2272 = vst [vmem:[#allocation2 + $0x130] sm:$0xff] %v2188_v39  ;;  %1495 = vst.msk [vmem:[#allocation2 + $0x48] sm:$0xff] %vm348_vm0, %v1405_v35  ;;  %v1067_v17 = vpop.f32.mrb[112].mxu0  ;;  %v2632_v63 = vrot.slane %v2188_v39, 1  ;;  %v1319_v39 = vld [vmem:[#allocation2 + $0x68] sm:$0xff] }
 0x247   : > { %2242 = vst [vmem:[#allocation2 + $0x40] sm:$0xff] %v5077_v38  ;;  %2273 = vst.msk [vmem:[#allocation2 + $0x138] sm:$0xff] %vm348_vm0, %v2189_v7  ;;  %v1406_v58 = vadd.f32 %v1316_v57, %v1067_v17  ;;  %v1935_v13 = vpop.f32.mrb[112].mxu1  ;;  %v1069_v49 = vpop.f32.mrb[113].mxu0  ;;  %v2607_v7 = vrot.slane %v5077_v38, 1 }
 0x248   : > { %2239 = vst.msk [vmem:[#allocation2 + $0x28] sm:$0xff] %vm348_vm0, %v2155_v54  ;;  %v2190_v29 = vadd.f32 %v1935_v13, %v4787_v44  ;;  %v1407_v4 = vadd.f32 %v1317_v18, %v1069_v49  ;;  %v1937_v61 = vpop.f32.mrb[113].mxu1  ;;  %v2633_v59 = vsel %vm2600_vm1, %v2631_v47, %v2632_v63  ;;  %v2606_v47 = vrot.slane %v5066_v56, 1  ;;  %v2111_v18 = vld [vmem:[#allocation2 + $0x168] sm:$0xff] }
 0x249   : > { %v2073_v23 = vld [vmem:[#allocation2 + $0x38] sm:$0xff]  ;;  %v5088_v52 = vadd.f32 %v4969_v6, %v1406_v58  ;;  %v2191_v21 = vadd.f32 %v2107_v33, %v1937_v61  ;;  %2705 = vrot.lane.b32.xlu0 %v2633_v59, %s3754_s18  ;;  %v2605_v6 = vsel %vm2600_vm1, %v2602_v10, %v2604_v36  ;;  %v1320_v10 = vld [vmem:[#allocation2 + $0x70] sm:$0xff]  ;;  %v1322_v59 = vld [vmem:[#allocation2 + $0x80] sm:$0xff] }
 0x24a   : > { %v2157_v53 = vadd.f32 %v2073_v23, %v4957_v8  ;;  %1497 = vst.msk [vmem:[#allocation2 + $0x58] sm:$0xff] %vm348_vm0, %v1407_v4  ;;  %v1073_v50 = vpop.f32.mrb[114].mxu0  ;;  %v2634_v9 = vrot.slane %v2190_v29, 1  ;;  %v1321_v58 = vld [vmem:[#allocation2 + $0x78] sm:$0xff]  ;;  %v2608_v36 = vsel %vm2600_vm1, %v2606_v47, %v2607_v7 }
 0x24b   : > { %2244 = vst [vmem:[#allocation2 + $0x50] sm:$0xff] %v5088_v52  ;;  %2275 = vst.msk [vmem:[#allocation2 + $0x148] sm:$0xff] %vm348_vm0, %v2191_v21  ;;  %v1408_v44 = vadd.f32 %v1318_v19, %v1073_v50  ;;  %v1941_v41 = vpop.f32.mrb[114].mxu1  ;;  %v1075_v34 = vpop.f32.mrb[115].mxu0  ;;  %v2609_v56 = vrot.slane %v5088_v52, 1  ;;  %v1323_v50 = vld [vmem:[#allocation2 + $0x88] sm:$0xff] }
 0x24c   : > { %2241 = vst.msk [vmem:[#allocation2 + $0x38] sm:$0xff] %vm348_vm0, %v2157_v53  ;;  %v5100_v8 = vadd.f32 %v1941_v41, %v4803_v55  ;;  %v1409_v35 = vadd.f32 %v1319_v39, %v1075_v34  ;;  %v1943_v27 = vpop.f32.mrb[115].mxu1  ;;  %v2635_v45 = vsel %vm2600_vm1, %v2632_v63, %v2634_v9  ;;  %v2113_v41 = vld [vmem:[#allocation2 + $0x178] sm:$0xff] }
 0x24d   : > { %v2075_v54 = vld [vmem:[#allocation2 + $0x48] sm:$0xff]  ;;  %v5105_v17 = vadd.f32 %v4977_v11, %v1408_v44  ;;  %v2193_v57 = vadd.f32 %v2109_v42, %v1943_v27  ;;  %2707 = vrot.lane.b32.xlu1 %v2635_v45, %s3754_s18  ;;  %2683 = vrot.lane.b32.xlu0 %v2605_v6, %s3754_s18  ;;  %v2610_v39 = vsel %vm2600_vm1, %v2607_v7, %v2609_v56  ;;  %v1326_v56 = vld [vmem:[#allocation2 + $0xa0] sm:$0xff] }
 0x24e   : > { %v2159_v40 = vadd.f32 %v2075_v54, %v4965_v60  ;;  %1499 = vst.msk [vmem:[#allocation2 + $0x68] sm:$0xff] %vm348_vm0, %v1409_v35  ;;  %v1079_v55 = vpop.f32.mrb[116].mxu0  ;;  %v2636_v23 = vrot.slane %v5100_v8, 1  ;;  %v1324_v54 = vld [vmem:[#allocation2 + $0x90] sm:$0xff] }
 0x24f   : > { %2246 = vst [vmem:[#allocation2 + $0x60] sm:$0xff] %v5105_v17  ;;  %2277 = vst.msk [vmem:[#allocation2 + $0x158] sm:$0xff] %vm348_vm0, %v2193_v57  ;;  %v1947_v38 = vpop.f32.mrb[116].mxu1  ;;  %v1410_v11 = vadd.f32 %v1320_v10, %v1079_v55  ;;  %v1081_v63 = vpop.f32.mrb[117].mxu0  ;;  %v2611_v42 = vrot.slane %v5105_v17, 1  ;;  %v1325_v55 = vld [vmem:[#allocation2 + $0x98] sm:$0xff] }
 0x250   : > { %2243 = vst.msk [vmem:[#allocation2 + $0x48] sm:$0xff] %vm348_vm0, %v2159_v40  ;;  %v5116_v13 = vadd.f32 %v1947_v38, %v4819_v3  ;;  %v1411_v60 = vadd.f32 %v1321_v58, %v1081_v63  ;;  %v1949_v49 = vpop.f32.mrb[117].mxu1 }
 0x251   : > { %v2077_v29 = vld [vmem:[#allocation2 + $0x58] sm:$0xff]  ;;  %v5121_v4 = vadd.f32 %v4985_v22, %v1410_v11  ;;  %v2195_v61 = vadd.f32 %v2111_v18, %v1949_v49  ;;  %2685 = vrot.lane.b32.xlu1 %v2608_v36, %s3754_s18  ;;  %v2115_v11 = vld [vmem:[#allocation2 + $0x188] sm:$0xff] }
 0x252   : > { %v2161_v33 = vadd.f32 %v2077_v29, %v4973_v28  ;;  %1501 = vst.msk [vmem:[#allocation2 + $0x78] sm:$0xff] %vm348_vm0, %v1411_v60  ;;  %v1085_v3 = vpop.f32.mrb[118].mxu0  ;;  %v2637_v21 = vrot.slane %v5116_v13, 1 }
 0x253   : > { %2248 = vst [vmem:[#allocation2 + $0x70] sm:$0xff] %v5121_v4  ;;  %2279 = vst.msk [vmem:[#allocation2 + $0x168] sm:$0xff] %vm348_vm0, %v2195_v61  ;;  %v1953_v52 = vpop.f32.mrb[118].mxu1  ;;  %v1412_v22 = vadd.f32 %v1322_v59, %v1085_v3  ;;  %v1087_v53 = vpop.f32.mrb[119].mxu0  ;;  %v2612_v19 = vrot.slane %v5121_v4, 1  ;;  %v2116_v61 = vld [vmem:[#allocation2 + $0x190] sm:$0xff] }
 0x254   : > { %2245 = vst.msk [vmem:[#allocation2 + $0x58] sm:$0xff] %vm348_vm0, %v2161_v33  ;;  %v2196_v28 = vadd.f32 %v1953_v52, %v4835_v51  ;;  %v1413_v9 = vadd.f32 %v1323_v50, %v1087_v53  ;;  %v1955_v44 = vpop.f32.mrb[119].mxu1  ;;  %v2638_v34 = vsel %vm2600_vm1, %v2636_v23, %v2637_v21  ;;  %v1327_v3 = vld [vmem:[#allocation2 + $0xa8] sm:$0xff] }
 0x255   : > { %v2079_v6 = vld [vmem:[#allocation2 + $0x68] sm:$0xff]  ;;  %v2166_v35 = vadd.f32 %v4993_v37, %v1412_v22  ;;  %v2197_v27 = vadd.f32 %v2113_v41, %v1955_v44  ;;  %2709 = vrot.lane.b32.xlu0 %v2638_v34, %s3754_s18  ;;  %2687 = vrot.lane.b32.xlu1 %v2610_v39, %s3754_s18  ;;  %v2613_v10 = vsel %vm2600_vm1, %v2611_v42, %v2612_v19  ;;  %v1328_v44 = vld [vmem:[#allocation2 + $0xb0] sm:$0xff] }
 0x256   : > { %v2163_v45 = vadd.f32 %v2079_v6, %v4981_v32  ;;  %1503 = vst.msk [vmem:[#allocation2 + $0x88] sm:$0xff] %vm348_vm0, %v1413_v9  ;;  %v1091_v51 = vpop.f32.mrb[120].mxu0  ;;  %v2639_v57 = vrot.slane %v2196_v28, 1 }
 0x257   : > { %2250 = vst [vmem:[#allocation2 + $0x80] sm:$0xff] %v2166_v35  ;;  %2281 = vst.msk [vmem:[#allocation2 + $0x178] sm:$0xff] %vm348_vm0, %v2197_v27  ;;  %v1959_v7 = vpop.f32.mrb[120].mxu1  ;;  %v1414_v40 = vadd.f32 %v1324_v54, %v1091_v51  ;;  %v1093_v37 = vpop.f32.mrb[121].mxu0  ;;  %v2614_v58 = vrot.slane %v2166_v35, 1  ;;  %v1329_v35 = vld [vmem:[#allocation2 + $0xb8] sm:$0xff] }
 0x258   : > { %2247 = vst.msk [vmem:[#allocation2 + $0x68] sm:$0xff] %vm348_vm0, %v2163_v45  ;;  %v5145_v47 = vadd.f32 %v1959_v7, %v4851_v16  ;;  %v1415_v32 = vadd.f32 %v1325_v55, %v1093_v37  ;;  %v1961_v38 = vpop.f32.mrb[121].mxu1  ;;  %v2640_v63 = vsel %vm2600_vm1, %v2637_v21, %v2639_v57  ;;  %v2119_v51 = vld [vmem:[#allocation2 + $0x1a8] sm:$0xff] }
 0x259   : > { %v2081_v60 = vld [vmem:[#allocation2 + $0x78] sm:$0xff]  ;;  %v5149_v49 = vadd.f32 %v5002_v5, %v1414_v40  ;;  %v2199_v18 = vadd.f32 %v2115_v11, %v1961_v38  ;;  %2711 = vrot.lane.b32.xlu1 %v2640_v63, %s3754_s18  ;;  %2689 = vrot.lane.b32.xlu0 %v2613_v10, %s3754_s18  ;;  %v2615_v52 = vsel %vm2600_vm1, %v2612_v19, %v2614_v58  ;;  %v2118_v19 = vld [vmem:[#allocation2 + $0x1a0] sm:$0xff]  ;;  %v2120_v63 = vld [vmem:[#allocation2 + $0x1b0] sm:$0xff] }
 0x25a   : > { %v2165_v36 = vadd.f32 %v2081_v60, %v4989_v2  ;;  %1505 = vst.msk [vmem:[#allocation2 + $0x98] sm:$0xff] %vm348_vm0, %v1415_v32  ;;  %v1097_v16 = vpop.f32.mrb[122].mxu0  ;;  %v2117_v2 = vld [vmem:[#allocation2 + $0x198] sm:$0xff]  ;;  %v2641_v41 = vrot.slane %v5145_v47, 1  ;;  %v1330_v32 = vld [vmem:[#allocation2 + $0xc0] sm:$0xff]  ;;  %v1331_v60 = vld [vmem:[#allocation2 + $0xc8] sm:$0xff] }
 0x25b   : > { %2252 = vst [vmem:[#allocation2 + $0x90] sm:$0xff] %v5149_v49  ;;  %2283 = vst.msk [vmem:[#allocation2 + $0x188] sm:$0xff] %vm348_vm0, %v2199_v18  ;;  %v1965_v29 = vpop.f32.mrb[122].mxu1  ;;  %v1416_v33 = vadd.f32 %v1326_v56, %v1097_v16  ;;  %v1099_v5 = vpop.f32.mrb[123].mxu0  ;;  %v2616_v37 = vrot.slane %v5149_v49, 1  ;;  %v2121_v56 = vld [vmem:[#allocation2 + $0x1b8] sm:$0xff] }
 0x25c   : > { %2249 = vst.msk [vmem:[#allocation2 + $0x78] sm:$0xff] %vm348_vm0, %v2165_v36  ;;  %v5158_v59 = vadd.f32 %v2116_v61, %v1965_v29  ;;  %v1417_v23 = vadd.f32 %v1327_v3, %v1099_v5  ;;  %v1967_v21 = vpop.f32.mrb[123].mxu1 }
 0x25d   : > { %v2083_v22 = vld [vmem:[#allocation2 + $0x88] sm:$0xff]  ;;  %v5162_v53 = vadd.f32 %v5011_v1, %v1416_v33  ;;  %v2201_v50 = vadd.f32 %v2117_v2, %v1967_v21  ;;  %2691 = vrot.lane.b32.xlu1 %v2615_v52, %s3754_s18  ;;  %v1332_v2 = vld [vmem:[#allocation2 + $0xd0] sm:$0xff] }
 0x25e   : > { %v2167_v28 = vadd.f32 %v2083_v22, %v4997_v20  ;;  %2284 = vst [vmem:[#allocation2 + $0x190] sm:$0xff] %v5158_v59  ;;  %1507 = vst.msk [vmem:[#allocation2 + $0xa8] sm:$0xff] %vm348_vm0, %v1417_v23  ;;  %v1103_v9 = vpop.f32.mrb[124].mxu0  ;;  %v2642_v34 = vrot.slane %v5158_v59, 1 }
 0x25f   : > { %2254 = vst [vmem:[#allocation2 + $0xa0] sm:$0xff] %v5162_v53  ;;  %2285 = vst.msk [vmem:[#allocation2 + $0x198] sm:$0xff] %vm348_vm0, %v2201_v50  ;;  %v1971_v1 = vpop.f32.mrb[124].mxu1  ;;  %v1418_v39 = vadd.f32 %v1328_v44, %v1103_v9  ;;  %v1105_v6 = vpop.f32.mrb[125].mxu0  ;;  %v2617_v20 = vrot.slane %v5162_v53, 1 }
 0x260   : > { %2251 = vst.msk [vmem:[#allocation2 + $0x88] sm:$0xff] %vm348_vm0, %v2167_v28  ;;  %v2202_v27 = vadd.f32 %v2118_v19, %v1971_v1  ;;  %v1419_v42 = vadd.f32 %v1329_v35, %v1105_v6  ;;  %v1973_v45 = vpop.f32.mrb[125].mxu1  ;;  %v2643_v54 = vsel %vm2600_vm1, %v2641_v41, %v2642_v34  ;;  %v1333_v28 = vld [vmem:[#allocation2 + $0xd8] sm:$0xff]  ;;  %v2123_v41 = vld [vmem:[#allocation2 + $0x1c8] sm:$0xff] }
 0x261   : > { %v2085_v57 = vld [vmem:[#allocation2 + $0x98] sm:$0xff]  ;;  %v2172_v7 = vadd.f32 %v5020_v31, %v1418_v39  ;;  %v2203_v40 = vadd.f32 %v2119_v51, %v1973_v45  ;;  %2713 = vrot.lane.b32.xlu0 %v2643_v54, %s3754_s18  ;;  %v2618_v18 = vsel %vm2600_vm1, %v2616_v37, %v2617_v20 }
 0x262   : > { %v2169_v55 = vadd.f32 %v2085_v57, %v5005_v46  ;;  %2286 = vst [vmem:[#allocation2 + $0x1a0] sm:$0xff] %v2202_v27  ;;  %1509 = vst.msk [vmem:[#allocation2 + $0xb8] sm:$0xff] %vm348_vm0, %v1419_v42  ;;  %v1109_v10 = vpop.f32.mrb[126].mxu0  ;;  %v2644_v38 = vrot.slane %v2202_v27, 1  ;;  %v1334_v27 = vld [vmem:[#allocation2 + $0xe0] sm:$0xff]  ;;  %v1335_v57 = vld [vmem:[#allocation2 + $0xe8] sm:$0xff] }
 0x263   : > { %2256 = vst [vmem:[#allocation2 + $0xb0] sm:$0xff] %v2172_v7  ;;  %2287 = vst.msk [vmem:[#allocation2 + $0x1a8] sm:$0xff] %vm348_vm0, %v2203_v40  ;;  %v1977_v11 = vpop.f32.mrb[126].mxu1  ;;  %v1420_v58 = vadd.f32 %v1330_v32, %v1109_v10  ;;  %v1111_v31 = vpop.f32.mrb[127].mxu0  ;;  %v2619_v61 = vrot.slane %v2172_v7, 1 }
 0x264   : > { %2253 = vst.msk [vmem:[#allocation2 + $0x98] sm:$0xff] %vm348_vm0, %v2169_v55  ;;  %v5183_v36 = vadd.f32 %v2120_v63, %v1977_v11  ;;  %v1421_v46 = vadd.f32 %v1331_v60, %v1111_v31  ;;  %v1979_v16 = vpop.f32.mrb[127].mxu1  ;;  %v2645_v29 = vsel %vm2600_vm1, %v2642_v34, %v2644_v38  ;;  %v2125_v55 = vld [vmem:[#allocation2 + $0x1d8] sm:$0xff] }
 0x265   : > { %v2087_v33 = vld [vmem:[#allocation2 + $0xa8] sm:$0xff]  ;;  %v5187_v5 = vadd.f32 %v5025_v25, %v1420_v58  ;;  %v2205_v3 = vadd.f32 %v2121_v56, %v1979_v16  ;;  %2715 = vrot.lane.b32.xlu1 %v2645_v29, %s3754_s18  ;;  %2693 = vrot.lane.b32.xlu0 %v2618_v18, %s3754_s18  ;;  %v2122_v25 = vld [vmem:[#allocation2 + $0x1c0] sm:$0xff]  ;;  %v2620_v34 = vsel %vm2600_vm1, %v2617_v20, %v2619_v61  ;;  %v2124_v20 = vld [vmem:[#allocation2 + $0x1d0] sm:$0xff] }
 0x266   : > { %v2171_v23 = vadd.f32 %v2087_v33, %v5014_v62  ;;  %2288 = vst [vmem:[#allocation2 + $0x1b0] sm:$0xff] %v5183_v36  ;;  %1511 = vst.msk [vmem:[#allocation2 + $0xc8] sm:$0xff] %vm348_vm0, %v1421_v46  ;;  %v1115_v21 = vpop.f32.mrb[128].mxu0  ;;  %v2646_v42 = vrot.slane %v5183_v36, 1  ;;  %v2126_v46 = vld [vmem:[#allocation2 + $0x1e0] sm:$0xff]  ;;  %v1691_v56 = vld [vmem:[#allocation2 + $0x2d8] sm:$0xff] }
 0x267   : > { %2258 = vst [vmem:[#allocation2 + $0xc0] sm:$0xff] %v5187_v5  ;;  %2289 = vst.msk [vmem:[#allocation2 + $0x1b8] sm:$0xff] %vm348_vm0, %v2205_v3  ;;  %v1983_v52 = vpop.f32.mrb[128].mxu1  ;;  %v1422_v22 = vadd.f32 %v1332_v2, %v1115_v21  ;;  %v1117_v50 = vpop.f32.mrb[129].mxu0  ;;  %v2621_v63 = vrot.slane %v5187_v5, 1  ;;  %v2127_v3 = vld [vmem:[#allocation2 + $0x1e8] sm:$0xff] }
 0x268   : > { %2255 = vst.msk [vmem:[#allocation2 + $0xa8] sm:$0xff] %vm348_vm0, %v2171_v23  ;;  %v5197_v9 = vadd.f32 %v2122_v25, %v1983_v52  ;;  %v1423_v62 = vadd.f32 %v1333_v28, %v1117_v50  ;;  %v1985_v44 = vpop.f32.mrb[129].mxu1  ;;  %v2128_v50 = vld [vmem:[#allocation2 + $0x1f0] sm:$0xff] }
 0x269   : > { %v2089_v1 = vld [vmem:[#allocation2 + $0xb8] sm:$0xff]  ;;  %v5201_v19 = vadd.f32 %v5029_v14, %v1422_v22  ;;  %v2207_v39 = vadd.f32 %v2123_v41, %v1985_v44  ;;  %2695 = vrot.lane.b32.xlu1 %v2620_v34, %s3754_s18  ;;  %v1693_v44 = vld [vmem:[#allocation2 + $0x2e8] sm:$0xff] }
 0x26a   : > { %v2173_v6 = vadd.f32 %v2089_v1, %v5022_v12  ;;  %2290 = vst [vmem:[#allocation2 + $0x1c0] sm:$0xff] %v5197_v9  ;;  %1513 = vst.msk [vmem:[#allocation2 + $0xd8] sm:$0xff] %vm348_vm0, %v1423_v62  ;;  %v1121_v35 = vpop.f32.mrb[130].mxu0  ;;  %v2647_v45 = vrot.slane %v5197_v9, 1  ;;  %v2129_v1 = vld [vmem:[#allocation2 + $0x1f8] sm:$0xff] }
 0x26b   : > { %2260 = vst [vmem:[#allocation2 + $0xd0] sm:$0xff] %v5201_v19  ;;  %2291 = vst.msk [vmem:[#allocation2 + $0x1c8] sm:$0xff] %vm348_vm0, %v2207_v39  ;;  %v1989_v14 = vpop.f32.mrb[130].mxu1  ;;  %v1424_v51 = vadd.f32 %v1334_v27, %v1121_v35  ;;  %v1123_v54 = vpop.f32.mrb[131].mxu0  ;;  %v2622_v12 = vrot.slane %v5201_v19, 1 }
 0x26c   : > { %2257 = vst.msk [vmem:[#allocation2 + $0xb8] sm:$0xff] %vm348_vm0, %v2173_v6  ;;  %v2208_v7 = vadd.f32 %v2124_v20, %v1989_v14  ;;  %v1425_v40 = vadd.f32 %v1335_v57, %v1123_v54  ;;  %v1991_v37 = vpop.f32.mrb[131].mxu1  ;;  %v2648_v10 = vsel %vm2600_vm1, %v2646_v42, %v2647_v45  ;;  %v2130_v20 = vld [vmem:[#allocation2 + $0x200] sm:$0xff]  ;;  %v1695_v57 = vld [vmem:[#allocation2 + $0x2f8] sm:$0xff] }
 0x26d   : > { %v2091_v32 = vld [vmem:[#allocation2 + $0xc8] sm:$0xff]  ;;  %v2178_v38 = vadd.f32 %v5033_v30, %v1424_v51  ;;  %v2209_v11 = vadd.f32 %v2125_v55, %v1991_v37  ;;  %2717 = vrot.lane.b32.xlu0 %v2648_v10, %s3754_s18  ;;  %v2623_v29 = vsel %vm2600_vm1, %v2621_v63, %v2622_v12 }
 0x26e   : > { %v2175_v58 = vadd.f32 %v2091_v32, %v5027_v15  ;;  %2292 = vst [vmem:[#allocation2 + $0x1d0] sm:$0xff] %v2208_v7  ;;  %1515 = vst.msk [vmem:[#allocation2 + $0xe8] sm:$0xff] %vm348_vm0, %v1425_v40  ;;  %v1660_v31 = vpop.f32.mrb[132].mxu0  ;;  %v2649_v60 = vrot.slane %v2208_v7, 1  ;;  %v2131_v40 = vld [vmem:[#allocation2 + $0x208] sm:$0xff] }
 0x26f   : > { %2262 = vst [vmem:[#allocation2 + $0xe0] sm:$0xff] %v2178_v38  ;;  %2293 = vst.msk [vmem:[#allocation2 + $0x1d8] sm:$0xff] %vm348_vm0, %v2209_v11  ;;  %v1995_v18 = vpop.f32.mrb[132].mxu1  ;;  %v5221_v16 = vadd.f32 %v1660_v31, %v5000_v24  ;;  %v1662_v30 = vpop.f32.mrb[133].mxu0  ;;  %v2624_v21 = vrot.slane %v2178_v38, 1  ;;  %v2132_v38 = vld [vmem:[#allocation2 + $0x210] sm:$0xff] }
 0x270   : > { %2259 = vst.msk [vmem:[#allocation2 + $0xc8] sm:$0xff] %vm348_vm0, %v2175_v58  ;;  %v5225_v15 = vadd.f32 %v2126_v46, %v1995_v18  ;;  %v1697_v61 = vadd.f32 %v1691_v56, %v1662_v30  ;;  %v1997_v33 = vpop.f32.mrb[133].mxu1  ;;  %v2650_v23 = vsel %vm2600_vm1, %v2647_v45, %v2649_v60  ;;  %v2133_v31 = vld [vmem:[#allocation2 + $0x218] sm:$0xff]  ;;  %v2134_v56 = vld [vmem:[#allocation2 + $0x220] sm:$0xff] }
 0x271   : > { %v2093_v2 = vld [vmem:[#allocation2 + $0xd8] sm:$0xff]  ;;  %v2211_v52 = vadd.f32 %v2127_v3, %v1997_v33  ;;  %2719 = vrot.lane.b32.xlu1 %v2650_v23, %s3754_s18  ;;  %2697 = vrot.lane.b32.xlu0 %v2623_v29, %s3754_s18  ;;  %v2625_v39 = vsel %vm2600_vm1, %v2622_v12, %v2624_v21  ;;  %v2135_v3 = vld [vmem:[#allocation2 + $0x228] sm:$0xff] }
 0x272   : > { %v2177_v24 = vadd.f32 %v2093_v2, %v5031_v48  ;;  %2294 = vst [vmem:[#allocation2 + $0x1e0] sm:$0xff] %v5225_v15  ;;  %1703 = vst.msk [vmem:[#allocation2 + $0x2d8] sm:$0xff] %vm348_vm0, %v1697_v61  ;;  %v1666_v25 = vpop.f32.mrb[134].mxu0  ;;  %v2651_v42 = vrot.slane %v5225_v15, 1 }
 0x273   : > { %2295 = vst.msk [vmem:[#allocation2 + $0x1e8] sm:$0xff] %vm348_vm0, %v2211_v52  ;;  %v2001_v22 = vpop.f32.mrb[134].mxu1  ;;  %v5235_v28 = vadd.f32 %v1666_v25, %v5009_v43  ;;  %v1668_v62 = vpop.f32.mrb[135].mxu0  ;;  %v2136_v25 = vld [vmem:[#allocation2 + $0x230] sm:$0xff] }
 0x274   : > { %2261 = vst.msk [vmem:[#allocation2 + $0xd8] sm:$0xff] %vm348_vm0, %v2177_v24  ;;  %v5238_v41 = vadd.f32 %v2128_v50, %v2001_v22  ;;  %v1699_v34 = vadd.f32 %v1693_v44, %v1668_v62  ;;  %v2003_v48 = vpop.f32.mrb[135].mxu1  ;;  %v2137_v44 = vld [vmem:[#allocation2 + $0x238] sm:$0xff] }
 0x275   : > { %v2095_v6 = vld [vmem:[#allocation2 + $0xe8] sm:$0xff]  ;;  %v2213_v35 = vadd.f32 %v2129_v1, %v2003_v48  ;;  %2699 = vrot.lane.b32.xlu1 %v2625_v39, %s3754_s18  ;;  %v2420_v39 = vld [vmem:[#allocation2 + $0x2a0] sm:$0xff] }
 0x276   : > { %v2179_v27 = vadd.f32 %v2095_v6, %v5035_v26  ;;  %2296 = vst [vmem:[#allocation2 + $0x1f0] sm:$0xff] %v5238_v41  ;;  %1705 = vst.msk [vmem:[#allocation2 + $0x2e8] sm:$0xff] %vm348_vm0, %v1699_v34  ;;  %v1672_v43 = vpop.f32.mrb[136].mxu0  ;;  %v2652_v45 = vrot.slane %v5238_v41, 1 }
 0x277   : > { %2297 = vst.msk [vmem:[#allocation2 + $0x1f8] sm:$0xff] %vm348_vm0, %v2213_v35  ;;  %v2007_v14 = vpop.f32.mrb[136].mxu1  ;;  %v5249_v51 = vadd.f32 %v1672_v43, %v5018_v0  ;;  %v1674_v54 = vpop.f32.mrb[137].mxu0 }
 0x278   : > { %2263 = vst.msk [vmem:[#allocation2 + $0xe8] sm:$0xff] %vm348_vm0, %v2179_v27  ;;  %v2214_v26 = vadd.f32 %v2130_v20, %v2007_v14  ;;  %v1701_v12 = vadd.f32 %v1695_v57, %v1674_v54  ;;  %v2009_v7 = vpop.f32.mrb[137].mxu1  ;;  %v2653_v37 = vsel %vm2600_vm1, %v2651_v42, %v2652_v45  ;;  %v2138_v27 = vld [vmem:[#allocation2 + $0x240] sm:$0xff]  ;;  %v2139_v54 = vld [vmem:[#allocation2 + $0x248] sm:$0xff] }
 0x279   : > { %v2215_v55 = vadd.f32 %v2131_v40, %v2009_v7  ;;  %2721 = vrot.lane.b32.xlu0 %v2653_v37, %s3754_s18  ;;  %v2422_v40 = vld [vmem:[#allocation2 + $0x2b0] sm:$0xff] }
 0x27a   : > { %2298 = vst [vmem:[#allocation2 + $0x200] sm:$0xff] %v2214_v26  ;;  %1707 = vst.msk [vmem:[#allocation2 + $0x2f8] sm:$0xff] %vm348_vm0, %v1701_v12  ;;  %v1678_v10 = vpop.f32.mrb[138].mxu0  ;;  %v2654_v32 = vrot.slane %v2214_v26, 1 }
 0x27b   : > { %2299 = vst.msk [vmem:[#allocation2 + $0x208] sm:$0xff] %vm348_vm0, %v2215_v55  ;;  %v2013_v0 = vpop.f32.mrb[138].mxu1  ;;  %v1679_v11 = vpop.f32.mrb[139].mxu0  ;;  %v2140_v55 = vld [vmem:[#allocation2 + $0x250] sm:$0xff] }
 0x27c   : > { %v5256_v63 = vadd.f32 %v2132_v38, %v2013_v0  ;;  %v2015_v58 = vpop.f32.mrb[139].mxu1  ;;  %v2655_v60 = vsel %vm2600_vm1, %v2652_v45, %v2654_v32  ;;  %v2421_v45 = vld [vmem:[#allocation2 + $0x2a8] sm:$0xff]  ;;  %v2423_v0 = vld [vmem:[#allocation2 + $0x2b8] sm:$0xff] }
 0x27d   : > { %v2217_v18 = vadd.f32 %v2133_v31, %v2015_v58  ;;  %2723 = vrot.lane.b32.xlu1 %v2655_v60, %s3754_s18  ;;  %v2141_v58 = vld [vmem:[#allocation2 + $0x258] sm:$0xff] }
 0x27e   : > { %2300 = vst [vmem:[#allocation2 + $0x210] sm:$0xff] %v5256_v63  ;;  %v1682_v46 = vpop.f32.mrb[140].mxu0  ;;  %v2656_v2 = vrot.slane %v5256_v63, 1 }
 0x27f   : > { %2301 = vst.msk [vmem:[#allocation2 + $0x218] sm:$0xff] %vm348_vm0, %v2217_v18  ;;  %v2019_v30 = vpop.f32.mrb[140].mxu1  ;;  %v1683_v29 = vpop.f32.mrb[141].mxu0  ;;  %v2424_v46 = vld [vmem:[#allocation2 + $0x2c0] sm:$0xff] }
 0x280   : > { %v5262_v61 = vadd.f32 %v2134_v56, %v2019_v30  ;;  %v2021_v33 = vpop.f32.mrb[141].mxu1 }
 0x281   : > { %v2219_v23 = vadd.f32 %v2135_v3, %v2021_v33  ;;  %v2142_v33 = vld [vmem:[#allocation2 + $0x260] sm:$0xff] }
 0x282   : > { %2302 = vst [vmem:[#allocation2 + $0x220] sm:$0xff] %v5262_v61  ;;  %v1686_v21 = vpop.f32.mrb[142].mxu0  ;;  %v2657_v52 = vrot.slane %v5262_v61, 1 }
 0x283   : > { %2303 = vst.msk [vmem:[#allocation2 + $0x228] sm:$0xff] %vm348_vm0, %v2219_v23  ;;  %v2025_v24 = vpop.f32.mrb[142].mxu1  ;;  %v1687_v22 = vpop.f32.mrb[143].mxu0  ;;  %v2425_v21 = vld [vmem:[#allocation2 + $0x2c8] sm:$0xff] }
 0x284   : > { %v2220_v50 = vadd.f32 %v2136_v25, %v2025_v24  ;;  %v2027_v62 = vpop.f32.mrb[143].mxu1  ;;  %v2658_v34 = vsel %vm2600_vm1, %v2656_v2, %v2657_v52  ;;  %v2143_v25 = vld [vmem:[#allocation2 + $0x268] sm:$0xff] }
 0x285   : > { %v2221_v48 = vadd.f32 %v2137_v44, %v2027_v62  ;;  %2725 = vrot.lane.b32.xlu0 %v2658_v34, %s3754_s18 }
 0x286   : > { %2304 = vst [vmem:[#allocation2 + $0x230] sm:$0xff] %v2220_v50  ;;  %v2384_v1 = vpop.f32.mrb[144].mxu0  ;;  %v2659_v6 = vrot.slane %v2220_v50, 1 }
 0x287   : > { %2305 = vst.msk [vmem:[#allocation2 + $0x238] sm:$0xff] %vm348_vm0, %v2221_v48  ;;  %v2031_v35 = vpop.f32.mrb[144].mxu1  ;;  %v5271_v43 = vadd.f32 %v2420_v39, %v2384_v1  ;;  %v2386_v42 = vpop.f32.mrb[145].mxu0  ;;  %v2144_v39 = vld [vmem:[#allocation2 + $0x270] sm:$0xff] }
 0x288   : > { %v5273_v14 = vadd.f32 %v2138_v27, %v2031_v35  ;;  %v2033_v20 = vpop.f32.mrb[145].mxu1  ;;  %v2433_v57 = vadd.f32 %v2421_v45, %v2386_v42  ;;  %v2660_v26 = vsel %vm2600_vm1, %v2657_v52, %v2659_v6  ;;  %v2427_v27 = vld [vmem:[#allocation2 + $0x2d8] sm:$0xff] }
 0x289   : > { %2444 = vst [vmem:[#allocation2 + $0x2a0] sm:$0xff] %v5271_v43  ;;  %v2223_v12 = vadd.f32 %v2139_v54, %v2033_v20  ;;  %2727 = vrot.lane.b32.xlu1 %v2660_v26, %s3754_s18  ;;  %v2671_v44 = vrot.slane %v5271_v43, 1  ;;  %v2145_v54 = vld [vmem:[#allocation2 + $0x278] sm:$0xff] }
 0x28a   : > { %2306 = vst [vmem:[#allocation2 + $0x240] sm:$0xff] %v5273_v14  ;;  %2445 = vst.msk [vmem:[#allocation2 + $0x2a8] sm:$0xff] %vm348_vm0, %v2433_v57  ;;  %v2390_v7 = vpop.f32.mrb[146].mxu0  ;;  %v2661_v30 = vrot.slane %v5273_v14, 1 }
 0x28b   : > { %2307 = vst.msk [vmem:[#allocation2 + $0x248] sm:$0xff] %vm348_vm0, %v2223_v12  ;;  %v2037_v37 = vpop.f32.mrb[146].mxu1  ;;  %v5281_v10 = vadd.f32 %v2422_v40, %v2390_v7  ;;  %v2392_v32 = vpop.f32.mrb[147].mxu0 }
 0x28c   : > { %v5283_v38 = vadd.f32 %v2140_v55, %v2037_v37  ;;  %v2039_v11 = vpop.f32.mrb[147].mxu1  ;;  %v2435_v31 = vadd.f32 %v2423_v0, %v2392_v32  ;;  %v2146_v37 = vld [vmem:[#allocation2 + $0x280] sm:$0xff]  ;;  %v2429_v0 = vld [vmem:[#allocation2 + $0x2e8] sm:$0xff] }
 0x28d   : > { %2446 = vst [vmem:[#allocation2 + $0x2b0] sm:$0xff] %v5281_v10  ;;  %v2225_v60 = vadd.f32 %v2141_v58, %v2039_v11  ;;  %v2672_v2 = vrot.slane %v5281_v10, 1 }
 0x28e   : > { %2308 = vst [vmem:[#allocation2 + $0x250] sm:$0xff] %v5283_v38  ;;  %2447 = vst.msk [vmem:[#allocation2 + $0x2b8] sm:$0xff] %vm348_vm0, %v2435_v31  ;;  %v2396_v18 = vpop.f32.mrb[148].mxu0  ;;  %v2662_v56 = vrot.slane %v5283_v38, 1  ;;  %v2147_v31 = vld [vmem:[#allocation2 + $0x288] sm:$0xff] }
 0x28f   : > { %2309 = vst.msk [vmem:[#allocation2 + $0x258] sm:$0xff] %vm348_vm0, %v2225_v60  ;;  %v2043_v29 = vpop.f32.mrb[148].mxu1  ;;  %v2436_v3 = vadd.f32 %v2424_v46, %v2396_v18  ;;  %v2398_v23 = vpop.f32.mrb[149].mxu0  ;;  %v2673_v42 = vsel %vm2600_vm1, %v2671_v44, %v2672_v2 }
 0x290   : > { %v2226_v52 = vadd.f32 %v2142_v33, %v2043_v29  ;;  %v2045_v24 = vpop.f32.mrb[149].mxu1  ;;  %v2437_v22 = vadd.f32 %v2425_v21, %v2398_v23  ;;  %v2663_v50 = vsel %vm2600_vm1, %v2661_v30, %v2662_v56  ;;  %v2148_v33 = vld [vmem:[#allocation2 + $0x290] sm:$0xff]  ;;  %v2431_v21 = vld [vmem:[#allocation2 + $0x2f8] sm:$0xff] }
 0x291   : > { %2448 = vst [vmem:[#allocation2 + $0x2c0] sm:$0xff] %v2436_v3  ;;  %v2227_v62 = vadd.f32 %v2143_v25, %v2045_v24  ;;  %2729 = vrot.lane.b32.xlu0 %v2663_v50, %s3754_s18  ;;  %v2674_v12 = vrot.slane %v2436_v3, 1  ;;  %v2149_v24 = vld [vmem:[#allocation2 + $0x298] sm:$0xff] }
 0x292   : > { %2310 = vst [vmem:[#allocation2 + $0x260] sm:$0xff] %v2226_v52  ;;  %2449 = vst.msk [vmem:[#allocation2 + $0x2c8] sm:$0xff] %vm348_vm0, %v2437_v22  ;;  %v2402_v34 = vpop.f32.mrb[150].mxu0  ;;  %v2664_v48 = vrot.slane %v2226_v52, 1 }
 0x293   : > { %2311 = vst.msk [vmem:[#allocation2 + $0x268] sm:$0xff] %vm348_vm0, %v2227_v62  ;;  %v2049_v1 = vpop.f32.mrb[150].mxu1  ;;  %v5298_v6 = vadd.f32 %v2402_v34, %v5221_v16  ;;  %v2404_v35 = vpop.f32.mrb[151].mxu0  ;;  %v2675_v18 = vsel %vm2600_vm1, %v2672_v2, %v2674_v12  ;;  %v3557_v12 = vld [vmem:[#allocation2 + $0xf0] sm:$0xff] }
 0x294   : > { %v5301_v45 = vadd.f32 %v2144_v39, %v2049_v1  ;;  %v2051_v20 = vpop.f32.mrb[151].mxu1  ;;  %v2439_v57 = vadd.f32 %v2427_v27, %v2404_v35  ;;  %v2665_v26 = vsel %vm2600_vm1, %v2662_v56, %v2664_v48  ;;  %v2489_v35 = vld [vmem:[#allocation2 + $0x108] sm:$0xff]  ;;  %v2487_v27 = vld [vmem:[#allocation2 + $0xf8] sm:$0xff] }
 0x295   : > { %v2229_v7 = vadd.f32 %v2145_v54, %v2051_v20  ;;  %2731 = vrot.lane.b32.xlu1 %v2665_v26, %s3754_s18  ;;  %2737 = vrot.lane.b32.xlu0 %v2673_v42, %s3754_s18  ;;  %v2676_v34 = vrot.slane %v5298_v6, 1  ;;  %v2884_v42 = vrot.slane %v2489_v35, 2  ;;  %v2491_v20 = vld [vmem:[#allocation2 + $0x118] sm:$0xff] }
 0x296   : > { %2312 = vst [vmem:[#allocation2 + $0x270] sm:$0xff] %v5301_v45  ;;  %2451 = vst.msk [vmem:[#allocation2 + $0x2d8] sm:$0xff] %vm348_vm0, %v2439_v57  ;;  %v2408_v16 = vpop.f32.mrb[152].mxu0  ;;  %v2459_v54 = vld [vmem:[#allocation2 + $0x18] sm:$0xff]  ;;  %v2883_v57 = vrot.slane %v2487_v27, 2  ;;  %v2465_v27 = vld [vmem:[#allocation2 + $0x48] sm:$0xff] }
 0x297   : > { %2313 = vst.msk [vmem:[#allocation2 + $0x278] sm:$0xff] %vm348_vm0, %v2229_v7  ;;  %v2055_v40 = vpop.f32.mrb[152].mxu1  ;;  %v5310_v55 = vadd.f32 %v2408_v16, %v5235_v28  ;;  %v2410_v32 = vpop.f32.mrb[153].mxu0  ;;  %v2666_v28 = vrot.slane %v5301_v45, 1  ;;  %v2457_v16 = vld [vmem:[#allocation2 + $0x8] sm:$0xff] }
 0x298   : > { %v5312_v11 = vadd.f32 %v2146_v37, %v2055_v40  ;;  %v2057_v58 = vpop.f32.mrb[153].mxu1  ;;  %v2441_v60 = vadd.f32 %v2429_v0, %v2410_v32  ;;  %v2885_v40 = vsel %vm2857_vm2, %v2883_v57, %v2884_v42  ;;  %v2886_v37 = vrot.slane %v2491_v20, 2  ;;  %v3561_v57 = vld [vmem:[#allocation2 + $0x130] sm:$0xff] }
 0x299   : > { %v2231_v46 = vadd.f32 %v2147_v31, %v2057_v58  ;;  %2739 = vrot.lane.b32.xlu1 %v2675_v18, %s3754_s18  ;;  %v2677_v50 = vrot.slane %v5310_v55, 1  ;;  %v2859_v32 = vrot.slane %v2459_v54, 2  ;;  %v2858_v31 = vrot.slane %v2457_v16, 2  ;;  %v2463_v16 = vld [vmem:[#allocation2 + $0x38] sm:$0xff] }
 0x29a   : > { %2314 = vst [vmem:[#allocation2 + $0x280] sm:$0xff] %v5312_v11  ;;  %2453 = vst.msk [vmem:[#allocation2 + $0x2e8] sm:$0xff] %vm348_vm0, %v2441_v60  ;;  %v2414_v30 = vpop.f32.mrb[154].mxu0  ;;  %v2667_v56 = vrot.slane %v5312_v11, 1 }
 0x29b   : > { %2315 = vst.msk [vmem:[#allocation2 + $0x288] sm:$0xff] %vm348_vm0, %v2231_v46  ;;  %v2061_v29 = vpop.f32.mrb[154].mxu1  ;;  %v2442_v3 = vadd.f32 %v2414_v30, %v5249_v51  ;;  %v2416_v23 = vpop.f32.mrb[155].mxu0  ;;  %v2678_v48 = vsel %vm2600_vm1, %v2676_v34, %v2677_v50  ;;  %v3558_v46 = vld [vmem:[#allocation2 + $0x100] sm:$0xff] }
 0x29c   : > { %v2232_v2 = vadd.f32 %v2148_v33, %v2061_v29  ;;  %v2063_v52 = vpop.f32.mrb[155].mxu1  ;;  %v2443_v25 = vadd.f32 %v2431_v21, %v2416_v23  ;;  %v2668_v22 = vsel %vm2600_vm1, %v2666_v28, %v2667_v56  ;;  %v3559_v28 = vld [vmem:[#allocation2] sm:$0xff]  ;;  %v2887_v29 = vsel %vm2857_vm2, %v2884_v42, %v2886_v37  ;;  %v2495_v21 = vld [vmem:[#allocation2 + $0x138] sm:$0xff] }
 0x29d   : > { %v2233_v62 = vadd.f32 %v2149_v24, %v2063_v52  ;;  %2733 = vrot.lane.b32.xlu0 %v2668_v22, %s3754_s18  ;;  %v2679_v1 = vrot.slane %v2442_v3, 1  ;;  %v2860_v33 = vsel %vm2857_vm2, %v2858_v31, %v2859_v32  ;;  %v2493_v24 = vld [vmem:[#allocation2 + $0x128] sm:$0xff]  ;;  %v3560_v34 = vld [vmem:[#allocation2 + $0x120] sm:$0xff] }
 0x29e   : > { %2316 = vst [vmem:[#allocation2 + $0x290] sm:$0xff] %v2232_v2  ;;  %2455 = vst.msk [vmem:[#allocation2 + $0x2f8] sm:$0xff] %vm348_vm0, %v2443_v25  ;;  %v2669_v44 = vrot.slane %v2232_v2, 1  ;;  %v2889_v25 = vrot.slane %v2495_v21, 2  ;;  %v2497_v22 = vld [vmem:[#allocation2 + $0x148] sm:$0xff] }
 0x29f   : > { %2317 = vst.msk [vmem:[#allocation2 + $0x298] sm:$0xff] %vm348_vm0, %v2233_v62  ;;  %v2680_v39 = vsel %vm2600_vm1, %v2677_v50, %v2679_v1  ;;  %v2461_v50 = vld [vmem:[#allocation2 + $0x28] sm:$0xff]  ;;  %v2888_v62 = vrot.slane %v2493_v24, 2  ;;  %v2891_v1 = vrot.slane %v2497_v22, 2  ;;  %v2471_v24 = vld [vmem:[#allocation2 + $0x78] sm:$0xff] }
 0x2a0   : > { %v2670_v51 = vsel %vm2600_vm1, %v2667_v56, %v2669_v44 }
 0x2a1   : > { %2735 = vrot.lane.b32.xlu1 %v2670_v51, %s3754_s18  ;;  %2741 = vrot.lane.b32.xlu0 %v2678_v48, %s3754_s18  ;;  %v2890_v48 = vsel %vm2857_vm2, %v2888_v62, %v2889_v25 }
 0x2a5   : > { %2743 = vrot.lane.b32.xlu1 %v2680_v39, %s3754_s18  ;;  %v2861_v39 = vrot.slane %v2461_v50, 2 }
 0x2a7   : > { %v2862_v37 = vsel %vm2857_vm2, %v2859_v32, %v2861_v39 }
 0x2af   : > { %v2702_v26 = vpop.permute.xlu0 %2701 }
 0x2b0   : > { %v2787_v7 = vadd.f32 %v3557_v12, %v2702_v26  ;;  %v3562_v12 = vld [vmem:[#allocation2 + $0x10] sm:$0xff] }
 0x2b2   : > { %v2980_v0 = vadd.f32 %v2885_v40, %v2787_v7  ;;  %v2892_v40 = vsel %vm2857_vm2, %v2889_v25, %v2891_v1 }
 0x2b3   : > { %v2704_v58 = vpop.permute.xlu1 %2703  ;;  %v2682_v60 = vpop.permute.xlu0 %2681 }
 0x2b4   : > { %v3012_v18 = vmax.f32 %v2980_v0, 0.0  ;;  %v2788_v30 = vadd.f32 %v3558_v46, %v2704_v58  ;;  %v2777_v56 = vadd.f32 %v3559_v28, %v2682_v60  ;;  %v2864_v0 = vrot.slane %v2465_v27, 2  ;;  %v2501_v60 = vld [vmem:[#allocation2 + $0x168] sm:$0xff] }
 0x2b5   : > { %v2863_v46 = vrot.slane %v2463_v16, 2  ;;  %v2894_v21 = vrot.slane %v2501_v60, 2  ;;  %v2869_v27 = vrot.slane %v2471_v24, 2  ;;  %v2475_v24 = vld [vmem:[#allocation2 + $0x98] sm:$0xff] }
 0x2b6   : > { %3044 = vst.msk [vmem:[%s5338_s11 + $0x50] sm:$0xff] %vm348_vm0, %v3012_v18  ;;  %v2981_v3 = vadd.f32 %v2887_v29, %v2788_v30  ;;  %v2970_v23 = vadd.f32 %v2860_v33, %v2777_v56  ;;  %v2467_v18 = vld [vmem:[#allocation2 + $0x58] sm:$0xff]  ;;  %v3563_v29 = vld [vmem:[#allocation2 + $0x30] sm:$0xff] }
 0x2b7   : > { %v2866_v32 = vrot.slane %v2467_v18, 2  ;;  %v2507_v18 = vld [vmem:[#allocation2 + $0x198] sm:$0xff] }
 0x2b8   : > { %v3013_v2 = vmax.f32 %v2981_v3, 0.0  ;;  %v3002_v52 = vmax.f32 %v2970_v23, 0.0  ;;  %v2499_v3 = vld [vmem:[#allocation2 + $0x158] sm:$0xff]  ;;  %v2865_v23 = vsel %vm2857_vm2, %v2863_v46, %v2864_v0 }
 0x2b9   : > { %v2893_v25 = vrot.slane %v2499_v3, 2  ;;  %v2867_v39 = vsel %vm2857_vm2, %v2864_v0, %v2866_v32  ;;  %v2509_v3 = vld [vmem:[#allocation2 + $0x1a8] sm:$0xff] }
 0x2ba   : > { %3045 = vst.msk [vmem:[%s5338_s11 + $0x58] sm:$0xff] %vm348_vm0, %v3013_v2  ;;  %3034 = vst.msk [vmem:[%s5338_s11] sm:$0xff] %vm348_vm0, %v3002_v52  ;;  %v2503_v52 = vld [vmem:[#allocation2 + $0x178] sm:$0xff] }
 0x2bb   : > { %v2706_v44 = vpop.permute.xlu0 %2705  ;;  %v2895_v1 = vsel %vm2857_vm2, %v2893_v25, %v2894_v21  ;;  %v2901_v25 = vrot.slane %v2509_v3, 2 }
 0x2bc   : > { %v2789_v51 = vadd.f32 %v3560_v34, %v2706_v44  ;;  %v3564_v34 = vld [vmem:[#allocation2 + $0x40] sm:$0xff] }
 0x2be   : > { %v2982_v35 = vadd.f32 %v2890_v48, %v2789_v51  ;;  %v2469_v48 = vld [vmem:[#allocation2 + $0x68] sm:$0xff] }
 0x2bf   : > { %v2708_v42 = vpop.permute.xlu1 %2707  ;;  %v2684_v20 = vpop.permute.xlu0 %2683 }
 0x2c0   : > { %v3014_v54 = vmax.f32 %v2982_v35, 0.0  ;;  %v2790_v26 = vadd.f32 %v3561_v57, %v2708_v42  ;;  %v2778_v7 = vadd.f32 %v3562_v12, %v2684_v20  ;;  %v2896_v35 = vrot.slane %v2503_v52, 2 }
 0x2c2   : > { %3046 = vst.msk [vmem:[%s5338_s11 + $0x60] sm:$0xff] %vm348_vm0, %v3014_v54  ;;  %v2983_v58 = vadd.f32 %v2892_v40, %v2790_v26  ;;  %v2971_v31 = vadd.f32 %v2862_v37, %v2778_v7  ;;  %v2473_v54 = vld [vmem:[#allocation2 + $0x88] sm:$0xff]  ;;  %v2868_v26 = vrot.slane %v2469_v48, 2  ;;  %v2897_v37 = vsel %vm2857_vm2, %v2894_v21, %v2896_v35 }
 0x2c3   : > { %v2686_v30 = vpop.permute.xlu1 %2685 }
 0x2c4   : > { %v3015_v28 = vmax.f32 %v2983_v58, 0.0  ;;  %v3003_v56 = vmax.f32 %v2971_v31, 0.0  ;;  %v2779_v33 = vadd.f32 %v3563_v29, %v2686_v30  ;;  %v2870_v0 = vsel %vm2857_vm2, %v2868_v26, %v2869_v27 }
 0x2c5   : > { %v2871_v58 = vrot.slane %v2473_v54, 2  ;;  %v2513_v54 = vld [vmem:[#allocation2 + $0x1c8] sm:$0xff] }
 0x2c6   : > { %3047 = vst.msk [vmem:[%s5338_s11 + $0x68] sm:$0xff] %vm348_vm0, %v3015_v28  ;;  %3035 = vst.msk [vmem:[%s5338_s11 + $0x8] sm:$0xff] %vm348_vm0, %v3003_v56  ;;  %v2972_v2 = vadd.f32 %v2865_v23, %v2779_v33  ;;  %v2899_v56 = vrot.slane %v2507_v18, 2  ;;  %v2477_v23 = vld [vmem:[#allocation2 + $0xa8] sm:$0xff] }
 0x2c7   : > { %v2710_v22 = vpop.permute.xlu0 %2709  ;;  %v2688_v50 = vpop.permute.xlu1 %2687  ;;  %v2872_v29 = vsel %vm2857_vm2, %v2869_v27, %v2871_v58  ;;  %v2481_v18 = vld [vmem:[#allocation2 + $0xc8] sm:$0xff] }
 0x2c8   : > { %v3004_v62 = vmax.f32 %v2972_v2, 0.0  ;;  %v2791_v44 = vadd.f32 %v2710_v22, %v5100_v8  ;;  %v2780_v51 = vadd.f32 %v3564_v34, %v2688_v50  ;;  %v2874_v22 = vrot.slane %v2477_v23, 2 }
 0x2c9   : > { %v2873_v34 = vrot.slane %v2475_v24, 2  ;;  %v2519_v24 = vld [vmem:[#allocation2 + $0x1f8] sm:$0xff] }
 0x2ca   : > { %3036 = vst.msk [vmem:[%s5338_s11 + $0x10] sm:$0xff] %vm348_vm0, %v3004_v62  ;;  %v2984_v42 = vadd.f32 %v2895_v1, %v2791_v44  ;;  %v2973_v20 = vadd.f32 %v2867_v39, %v2780_v51  ;;  %v2479_v62 = vld [vmem:[#allocation2 + $0xb8] sm:$0xff]  ;;  %v2902_v39 = vsel %vm2857_vm2, %v2899_v56, %v2901_v25 }
 0x2cb   : > { %v2712_v57 = vpop.permute.xlu1 %2711  ;;  %v2690_v12 = vpop.permute.xlu0 %2689  ;;  %v2875_v35 = vsel %vm2857_vm2, %v2873_v34, %v2874_v22  ;;  %v2876_v27 = vrot.slane %v2479_v62, 2  ;;  %v2909_v62 = vrot.slane %v2519_v24, 2  ;;  %v2521_v34 = vld [vmem:[#allocation2 + $0x208] sm:$0xff] }
 0x2cc   : > { %v3016_v8 = vmax.f32 %v2984_v42, 0.0  ;;  %v3005_v7 = vmax.f32 %v2973_v20, 0.0  ;;  %v2792_v16 = vadd.f32 %v2712_v57, %v5116_v13  ;;  %v2781_v40 = vadd.f32 %v2690_v12, %v5105_v17  ;;  %v2505_v13 = vld [vmem:[#allocation2 + $0x188] sm:$0xff] }
 0x2cd   : > { %v2898_v21 = vrot.slane %v2505_v13, 2  ;;  %v2485_v13 = vld [vmem:[#allocation2 + $0xe8] sm:$0xff] }
 0x2ce   : > { %3048 = vst.msk [vmem:[%s5338_s11 + $0x70] sm:$0xff] %vm348_vm0, %v3016_v8  ;;  %3037 = vst.msk [vmem:[%s5338_s11 + $0x18] sm:$0xff] %vm348_vm0, %v3005_v7  ;;  %v2985_v31 = vadd.f32 %v2897_v37, %v2792_v16  ;;  %v2974_v60 = vadd.f32 %v2870_v0, %v2781_v40  ;;  %v2511_v8 = vld [vmem:[#allocation2 + $0x1b8] sm:$0xff]  ;;  %v2904_v7 = vrot.slane %v2513_v54, 2 }
 0x2cf   : > { %v2692_v46 = vpop.permute.xlu1 %2691  ;;  %v2515_v40 = vld [vmem:[#allocation2 + $0x1d8] sm:$0xff]  ;;  %v2903_v0 = vrot.slane %v2511_v8, 2 }
 0x2d0   : > { %v3017_v30 = vmax.f32 %v2985_v31, 0.0  ;;  %v3006_v28 = vmax.f32 %v2974_v60, 0.0  ;;  %v2782_v17 = vadd.f32 %v2692_v46, %v5121_v4  ;;  %v2900_v4 = vsel %vm2857_vm2, %v2898_v21, %v2899_v56  ;;  %v2483_v37 = vld [vmem:[#allocation2 + $0xd8] sm:$0xff] }
 0x2d1   : > { %v2906_v46 = vrot.slane %v2515_v40, 2  ;;  %v2878_v56 = vrot.slane %v2481_v18, 2 }
 0x2d2   : > { %3049 = vst.msk [vmem:[%s5338_s11 + $0x78] sm:$0xff] %vm348_vm0, %v3017_v30  ;;  %3038 = vst.msk [vmem:[%s5338_s11 + $0x20] sm:$0xff] %vm348_vm0, %v3006_v28  ;;  %v2975_v33 = vadd.f32 %v2872_v29, %v2782_v17  ;;  %v2879_v30 = vrot.slane %v2483_v37, 2 }
 0x2d3   : > { %v2714_v32 = vpop.permute.xlu0 %2713  ;;  %v2907_v23 = vsel %vm2857_vm2, %v2904_v7, %v2906_v46 }
 0x2d4   : > { %v2793_v2 = vadd.f32 %v2714_v32, %v5145_v47  ;;  %v3007_v52 = vmax.f32 %v2975_v33, 0.0  ;;  %v2880_v21 = vsel %vm2857_vm2, %v2878_v56, %v2879_v30  ;;  %v2881_v32 = vrot.slane %v2485_v13, 2  ;;  %v2543_v13 = vld [vmem:[#allocation2 + $0x2b8] sm:$0xff] }
 0x2d6   : > { %v2986_v50 = vadd.f32 %v2900_v4, %v2793_v2  ;;  %3039 = vst.msk [vmem:[%s5338_s11 + $0x28] sm:$0xff] %vm348_vm0, %v3007_v52 }
 0x2d7   : > { %v2716_v44 = vpop.permute.xlu1 %2715  ;;  %v2694_v51 = vpop.permute.xlu0 %2693 }
 0x2d8   : > { %v3018_v48 = vmax.f32 %v2986_v50, 0.0  ;;  %v2794_v1 = vadd.f32 %v2716_v44, %v5158_v59  ;;  %v2783_v47 = vadd.f32 %v2694_v51, %v5149_v49  ;;  %v2877_v49 = vsel %vm2857_vm2, %v2874_v22, %v2876_v27  ;;  %v2517_v50 = vld [vmem:[#allocation2 + $0x1e8] sm:$0xff] }
 0x2d9   : > { %v2908_v51 = vrot.slane %v2517_v50, 2 }
 0x2da   : > { %3050 = vst.msk [vmem:[%s5338_s11 + $0x80] sm:$0xff] %vm348_vm0, %v3018_v48  ;;  %v2987_v42 = vadd.f32 %v2902_v39, %v2794_v1  ;;  %v2976_v20 = vadd.f32 %v2875_v35, %v2783_v47  ;;  %v2911_v35 = vrot.slane %v2521_v34, 2 }
 0x2db   : > { %v2696_v57 = vpop.permute.xlu1 %2695  ;;  %v2910_v39 = vsel %vm2857_vm2, %v2908_v51, %v2909_v62 }
 0x2dc   : > { %v3019_v26 = vmax.f32 %v2987_v42, 0.0  ;;  %v3008_v12 = vmax.f32 %v2976_v20, 0.0  ;;  %v2784_v59 = vadd.f32 %v2696_v57, %v5162_v53  ;;  %v2905_v53 = vsel %vm2857_vm2, %v2903_v0, %v2904_v7 }
 0x2dd   : > { %v2912_v54 = vsel %vm2857_vm2, %v2909_v62, %v2911_v35  ;;  %v2549_v35 = vld [vmem:[#allocation2 + $0x2e8] sm:$0xff] }
 0x2de   : > { %3051 = vst.msk [vmem:[%s5338_s11 + $0x88] sm:$0xff] %vm348_vm0, %v3019_v26  ;;  %3040 = vst.msk [vmem:[%s5338_s11 + $0x30] sm:$0xff] %vm348_vm0, %v3008_v12  ;;  %v2977_v16 = vadd.f32 %v2877_v49, %v2784_v59  ;;  %v2525_v26 = vld [vmem:[#allocation2 + $0x228] sm:$0xff]  ;;  %v2523_v12 = vld [vmem:[#allocation2 + $0x218] sm:$0xff] }
 0x2df   : > { %v2718_v58 = vpop.permute.xlu0 %2717  ;;  %v2914_v8 = vrot.slane %v2525_v26, 2  ;;  %v2527_v59 = vld [vmem:[#allocation2 + $0x238] sm:$0xff]  ;;  %v2913_v7 = vrot.slane %v2523_v12, 2  ;;  %v2934_v26 = vrot.slane %v2549_v35, 2 }
 0x2e0   : > { %v2795_v31 = vadd.f32 %v2718_v58, %v5183_v36  ;;  %v3009_v60 = vmax.f32 %v2977_v16, 0.0  ;;  %v2916_v40 = vrot.slane %v2527_v59, 2  ;;  %v2551_v12 = vld [vmem:[#allocation2 + $0x2f8] sm:$0xff] }
 0x2e2   : > { %v2988_v28 = vadd.f32 %v2905_v53, %v2795_v31  ;;  %3041 = vst.msk [vmem:[%s5338_s11 + $0x38] sm:$0xff] %vm348_vm0, %v3009_v60  ;;  %v2917_v60 = vsel %vm2857_vm2, %v2914_v8, %v2916_v40  ;;  %v2531_v53 = vld [vmem:[#allocation2 + $0x258] sm:$0xff] }
 0x2e3   : > { %v2720_v17 = vpop.permute.xlu1 %2719  ;;  %v2698_v29 = vpop.permute.xlu0 %2697 }
 0x2e4   : > { %v3020_v33 = vmax.f32 %v2988_v28, 0.0  ;;  %v2796_v3 = vadd.f32 %v2720_v17, %v5197_v9  ;;  %v2785_v36 = vadd.f32 %v2698_v29, %v5187_v5  ;;  %v2882_v5 = vsel %vm2857_vm2, %v2879_v30, %v2881_v32  ;;  %v2529_v30 = vld [vmem:[#allocation2 + $0x248] sm:$0xff] }
 0x2e5   : > { %v2919_v28 = vrot.slane %v2531_v53, 2  ;;  %v2918_v17 = vrot.slane %v2529_v30, 2 }
 0x2e6   : > { %3052 = vst.msk [vmem:[%s5338_s11 + $0x90] sm:$0xff] %vm348_vm0, %v3020_v33  ;;  %v2989_v2 = vadd.f32 %v2907_v23, %v2796_v3  ;;  %v2978_v52 = vadd.f32 %v2880_v21, %v2785_v36  ;;  %v2541_v33 = vld [vmem:[#allocation2 + $0x2a8] sm:$0xff]  ;;  %v2929_v36 = vrot.slane %v2543_v13, 2 }
 0x2e7   : > { %v2700_v4 = vpop.permute.xlu1 %2699  ;;  %v2545_v21 = vld [vmem:[#allocation2 + $0x2c8] sm:$0xff] }
 0x2e8   : > { %v3021_v25 = vmax.f32 %v2989_v2, 0.0  ;;  %v3010_v22 = vmax.f32 %v2978_v52, 0.0  ;;  %v2786_v9 = vadd.f32 %v2700_v4, %v5201_v19  ;;  %v2928_v2 = vrot.slane %v2541_v33, 2 }
 0x2e9   : > { %v2931_v50 = vrot.slane %v2545_v21, 2 }
 0x2ea   : > { %3053 = vst.msk [vmem:[%s5338_s11 + $0x98] sm:$0xff] %vm348_vm0, %v3021_v25  ;;  %3042 = vst.msk [vmem:[%s5338_s11 + $0x40] sm:$0xff] %vm348_vm0, %v3010_v22  ;;  %v2979_v44 = vadd.f32 %v2882_v5, %v2786_v9  ;;  %v2930_v22 = vsel %vm2857_vm2, %v2928_v2, %v2929_v36  ;;  %v2537_v5 = vld [vmem:[#allocation2 + $0x288] sm:$0xff] }
 0x2eb   : > { %v2722_v48 = vpop.permute.xlu0 %2721 }
 0x2ec   : > { %v2797_v1 = vadd.f32 %v2722_v48, %v5225_v15  ;;  %v3011_v47 = vmax.f32 %v2979_v44, 0.0 }
 0x2ee   : > { %v2990_v19 = vadd.f32 %v2910_v39, %v2797_v1  ;;  %3043 = vst.msk [vmem:[%s5338_s11 + $0x48] sm:$0xff] %vm348_vm0, %v3011_v47  ;;  %v2924_v1 = vrot.slane %v2537_v5, 2  ;;  %v2539_v39 = vld [vmem:[#allocation2 + $0x298] sm:$0xff] }
 0x2ef   : > { %v2724_v27 = vpop.permute.xlu1 %2723 }
 0x2f0   : > { %v3022_v42 = vmax.f32 %v2990_v19, 0.0  ;;  %v2798_v20 = vadd.f32 %v2724_v27, %v5238_v41  ;;  %v2915_v41 = vsel %vm2857_vm2, %v2913_v7, %v2914_v8 }
 0x2f2   : > { %3054 = vst.msk [vmem:[%s5338_s11 + $0xa0] sm:$0xff] %vm348_vm0, %v3022_v42  ;;  %v2991_v57 = vadd.f32 %v2912_v54, %v2798_v20  ;;  %v2547_v54 = vld [vmem:[#allocation2 + $0x2d8] sm:$0xff] }
 0x2f3   : > { %v2933_v59 = vrot.slane %v2547_v54, 2 }
 0x2f4   : > { %v3023_v15 = vmax.f32 %v2991_v57, 0.0  ;;  %v2926_v57 = vrot.slane %v2539_v39, 2 }
 0x2f5   : > { %v2935_v40 = vsel %vm2857_vm2, %v2933_v59, %v2934_v26 }
 0x2f6   : > { %3055 = vst.msk [vmem:[%s5338_s11 + $0xa8] sm:$0xff] %vm348_vm0, %v3023_v15 }
 0x2f7   : > { %v2726_v49 = vpop.permute.xlu0 %2725 }
 0x2f8   : > { %v2799_v16 = vadd.f32 %v2726_v49, %v5256_v63  ;;  %v2533_v63 = vld [vmem:[#allocation2 + $0x268] sm:$0xff] }
 0x2f9   : > { %v2921_v3 = vrot.slane %v2533_v63, 2 }
 0x2fa   : > { %v2992_v37 = vadd.f32 %v2915_v41, %v2799_v16  ;;  %v2927_v41 = vsel %vm2857_vm2, %v2924_v1, %v2926_v57 }
 0x2fb   : > { %v2728_v0 = vpop.permute.xlu1 %2727 }
 0x2fc   : > { %v3024_v58 = vmax.f32 %v2992_v37, 0.0  ;;  %v2800_v31 = vadd.f32 %v2728_v0, %v5262_v61  ;;  %v2920_v61 = vsel %vm2857_vm2, %v2918_v17, %v2919_v28  ;;  %v2936_v37 = vrot.slane %v2551_v12, 2 }
 0x2fe   : > { %3056 = vst.msk [vmem:[%s5338_s11 + $0xb0] sm:$0xff] %vm348_vm0, %v3024_v58  ;;  %v2993_v18 = vadd.f32 %v2917_v60, %v2800_v31 }
 0x300   : > { %v3025_v46 = vmax.f32 %v2993_v18, 0.0 }
 0x302   : > { %3057 = vst.msk [vmem:[%s5338_s11 + $0xb8] sm:$0xff] %vm348_vm0, %v3025_v46 }
 0x303   : > { %v2730_v56 = vpop.permute.xlu0 %2729 }
 0x304   : > { %v2801_v29 = vadd.f32 %v2730_v56, %v5273_v14  ;;  %v2922_v14 = vsel %vm2857_vm2, %v2919_v28, %v2921_v3 }
 0x306   : > { %v2994_v23 = vadd.f32 %v2920_v61, %v2801_v29 }
 0x307   : > { %v2732_v32 = vpop.permute.xlu1 %2731  ;;  %v2738_v52 = vpop.permute.xlu0 %2737 }
 0x308   : > { %v3026_v24 = vmax.f32 %v2994_v23, 0.0  ;;  %v2802_v4 = vadd.f32 %v2732_v32, %v5283_v38  ;;  %v2805_v25 = vadd.f32 %v2738_v52, %v5271_v43  ;;  %v2535_v38 = vld [vmem:[#allocation2 + $0x278] sm:$0xff]  ;;  %v2932_v43 = vsel %vm2857_vm2, %v2929_v36, %v2931_v50 }
 0x309   : > { %v2923_v19 = vrot.slane %v2535_v38, 2 }
 0x30a   : > { %3058 = vst.msk [vmem:[%s5338_s11 + $0xc0] sm:$0xff] %vm348_vm0, %v3026_v24  ;;  %v2995_v9 = vadd.f32 %v2922_v14, %v2802_v4  ;;  %v2998_v62 = vadd.f32 %v2930_v22, %v2805_v25 }
 0x30b   : > { %v2740_v44 = vpop.permute.xlu1 %2739 }
 0x30c   : > { %v3027_v34 = vmax.f32 %v2995_v9, 0.0  ;;  %v3030_v51 = vmax.f32 %v2998_v62, 0.0  ;;  %v2806_v48 = vadd.f32 %v2740_v44, %v5281_v10  ;;  %v2925_v10 = vsel %vm2857_vm2, %v2923_v19, %v2924_v1 }
 0x30e   : > { %3059 = vst.msk [vmem:[%s5338_s11 + $0xc8] sm:$0xff] %vm348_vm0, %v3027_v34  ;;  %3062 = vst.msk [vmem:[%s5338_s11 + $0xe0] sm:$0xff] %vm348_vm0, %v3030_v51  ;;  %v2999_v47 = vadd.f32 %v2932_v43, %v2806_v48 }
 0x30f   : > { %v2734_v27 = vpop.permute.xlu0 %2733 }
 0x310   : > { %v3031_v42 = vmax.f32 %v2999_v47, 0.0  ;;  %v2803_v20 = vadd.f32 %v2734_v27, %v5301_v45 }
 0x312   : > { %3063 = vst.msk [vmem:[%s5338_s11 + $0xe8] sm:$0xff] %vm348_vm0, %v3031_v42  ;;  %v2996_v15 = vadd.f32 %v2925_v10, %v2803_v20 }
 0x313   : > { %v2736_v8 = vpop.permute.xlu1 %2735  ;;  %v2742_v7 = vpop.permute.xlu0 %2741 }
 0x314   : > { %v3028_v49 = vmax.f32 %v2996_v15, 0.0  ;;  %v2804_v16 = vadd.f32 %v2736_v8, %v5312_v11  ;;  %v2807_v45 = vadd.f32 %v2742_v7, %v5298_v6  ;;  %v2937_v6 = vsel %vm2857_vm2, %v2934_v26, %v2936_v37 }
 0x316   : > { %3060 = vst.msk [vmem:[%s5338_s11 + $0xd0] sm:$0xff] %vm348_vm0, %v3028_v49  ;;  %v2997_v0 = vadd.f32 %v2927_v41, %v2804_v16  ;;  %v3000_v58 = vadd.f32 %v2935_v40, %v2807_v45 }
 0x317   : > { %v2744_v31 = vpop.permute.xlu1 %2743 }
 0x318   : > { %v3029_v60 = vmax.f32 %v2997_v0, 0.0  ;;  %v3032_v18 = vmax.f32 %v3000_v58, 0.0  ;;  %v2808_v11 = vadd.f32 %v2744_v31, %v5310_v55 }
 0x31a   : > { %3061 = vst.msk [vmem:[%s5338_s11 + $0xd8] sm:$0xff] %vm348_vm0, %v3029_v60  ;;  %3064 = vst.msk [vmem:[%s5338_s11 + $0xf0] sm:$0xff] %vm348_vm0, %v3032_v18  ;;  %v3001_v53 = vadd.f32 %v2937_v6, %v2808_v11 }
 0x31c   : > { %v3033_v55 = vmax.f32 %v3001_v53, 0.0 }
 0x31e   : > { %3065 = vst.msk [vmem:[%s5338_s11 + $0xf8] sm:$0xff] %vm348_vm0, %v3033_v55 }
 0x31f   : > { %3667 = shalt.err (!%p3664_p8)
}
 0x320   : > { %s3668_s7 = scalar_lea.hbm %s5460_s8, 4096  ;;  %s3672_s27 = scalar_lea.hbm %s5516_s3, 8192 }
 0x321   : > { %p3669_p12 = scmp.ne.s32.totalorder %s5460_s8, %s3668_s7  ;;  %p3673_p6 = scmp.lt.u32.totalorder %s5460_s8, %s5516_s3 }
 0x322   : > { %p3674_p11 = scmp.lt.u32.totalorder %s3672_s27, %s3668_s7  ;;  %p3676_p5 = scmp.lt.u32.totalorder %s3668_s7, %s5460_s8 }
 0x323   : > { %p3670_p13 = pnand %p3669_p12, %p3866_p10 }
 0x324   : > { %p3675_p0 = por %p3674_p11, %p3673_p6 }
 0x325   : > { %p3671_p3 = pneg %p3670_p13 }
 0x326   : > { %p3677_p9 = por %p3676_p5, %p3675_p0 }
 0x328   : > { %p3678_p1 = pnand %p3677_p9, %p3671_p3 }
 0x32a   : > { %3681 = shalt.err (!%p3678_p1)
}
 0x32b   : > { %s3756_s26 = smov 128   ;;  %s3757_s5 = smov 8  }
 0x32c   : > { %3479 = dma.vmem_to_hbm [thread:$0]  (%p3866_p10), %s5462_s30, 4096, %s5460_s8, %s3067_s15, %s3756_s26, %s3756_s26, %s3757_s5  }
 0x32d PF: > { %s3098_s18 = sand.u32 1, %s3724_s12   ;;  %p5539_p2 = scmp.ne.s32.totalorder %s5524_s21, 0 }
 0x32e   : > { %p5540_p7 = scmp.ge.s32.totalorder %s3744_s17, 2  ;;  %s3099_s20 = scalar_lea.sflag [#allocation5], %s3098_s18 }
 0x330   : > { %p3493_p4 = pnand %p5540_p7, %p5539_p2 }
 0x332   : > { %3719 = dma.done.wait (!%p3493_p4), %s3099_s20, 4096  }
 0x333   : > { %3721 = vsyncadd (!%p3493_p4), %s3099_s20, 4294963200  ;;  %s22_s17 = sadd.s32 1, %s3744_s17   ;;  %s5541_s11 = sld [smem:[#allocation15_spill]] }
 0x334   : > { %p19_p8 = scmp.ge.s32.totalorder %s22_s17, 4   ;;  %s5542_s23 = sld [smem:[#allocation14_spill]] }
 0x335   : > { %s5543_s12 = smov %s3728_s13  ;;  %s5544_s13 = smov %s3732_s14 }
 0x336   : > { %s5546_s15 = smov %s3740_s16  ;;  %21 = sbr.rel (!%p19_p8) target bundleno = 11 (0xb), region = 98 }
 0x339   : > { %s5545_s14 = smov %s5541_s11 }
 0x33a   : > { %s5547_s16 = smov %s5542_s23 }
 0x33d   :  { %3104 = vsyncpa [#allocation4], 1 }
 0x33e   :  { %3106 = vsyncpa [#allocation4 + $0x1], 1 }
 0x33f   :  { %3107 = vsyncpa [#allocation7], 1 }
 0x340   :  { %3109 = vsyncpa [#allocation7 + $0x1], 1 }
 0x341   :  { %3110 = vsyncpa [#allocation5], 1 }
 0x342   :  { %3112 = vsyncpa [#allocation5 + $0x1], 1 }

</bundles_post_ra>
